<compile_context>
chip_gen: v6e
topology: v6e:2x2x1
jax: 0.10.0
libtpu: 0.0.40
codegen_flags: <defaults>
</compile_context>

<pallas_src>
import numpy as np

import jax
import jax.numpy as jnp
from jax.experimental import pallas as pl
from jax.experimental.pallas import tpu as pltpu


# ---------------------------------------------------------------------------
# In-kernel helpers (trace-time only)
# ---------------------------------------------------------------------------

def _mm(a_bf, b_bf):
    """bf16 x bf16 MXU matmul with f32 accumulation (operands already bf16)."""
    return jnp.dot(a_bf, b_bf, preferred_element_type=jnp.float32)


def _conv_block(x_bf, r_ref, m_ref, bias_ref, relu, r_first):
    """(De)convolution expressed as sum_kh R[kh] @ X @ M[kh] + bias.

    r_first=True  -> (R @ X) @ M   (cheaper when H_out < H_in, encoder convs;
                                    R@X is an exact bf16 row selection)
    r_first=False -> R @ (X @ M)   (cheaper when H_out > H_in, decoder deconvs)
    """
    acc = None
    for kh in range(4):
        if r_first:
            sel = _mm(r_ref[kh], x_bf)                       # exact row gather
            term = _mm(sel.astype(jnp.bfloat16), m_ref[kh])
        else:
            prod = _mm(x_bf, m_ref[kh])
            term = _mm(r_ref[kh], prod.astype(jnp.bfloat16))
        acc = term if acc is None else acc + term
    acc = acc + bias_ref[...]                                # f32 epilogue
    if relu:
        acc = jnp.maximum(acc, 0.0)
    return acc


# ---------------------------------------------------------------------------
# The fused VAE kernel (one grid step == one batch element)
# ---------------------------------------------------------------------------

def _vae_kernel(x_ref, eps_ref,
                r1_ref, m1_ref, b1_ref,
                r2_ref, m2_ref, b2_ref,
                w1g_ref, bfc1_ref,
                wmu_ref, bmu_ref, wls_ref, bls_ref,
                wd1_ref, bd1_ref,
                wd2g_ref, bd2g_ref,
                rt1_ref, mt1_ref, bt1_ref,
                rt2_ref, mt2_ref, bt2_ref,
                xp_ref, mu_ref, ls_ref,
                xs_ref):
    # ------------------------- encoder -------------------------
    xb_bf = x_ref[0].astype(jnp.bfloat16)                         # (28, 28), Cin = 1
    y1 = _conv_block(xb_bf, r1_ref, m1_ref, b1_ref,
                     relu=True, r_first=True)                     # conv1+ReLU -> (14, 14*16)
    y1_bf = y1.astype(jnp.bfloat16)
    y2 = _conv_block(y1_bf, r2_ref, m2_ref, b2_ref,
                     relu=True, r_first=True)                     # conv2+ReLU -> (7, 7*32)
    y2_bf = y2.astype(jnp.bfloat16)

    # enc fc1: PyTorch flatten of the (32,7,7) map handled via per-row weight groups
    h = bfc1_ref[...]                                             # (1, hidden)
    for hh in range(7):
        h = h + _mm(y2_bf[hh:hh + 1, :], w1g_ref[hh])
    h = jnp.maximum(h, 0.0)
    h_bf = h.astype(jnp.bfloat16)

    # enc fc2 split into mu / logsigma heads + fused reparameterization
    mu = _mm(h_bf, wmu_ref[...]) + bmu_ref[...]                   # (1, latent)
    logsigma = _mm(h_bf, wls_ref[...]) + bls_ref[...]             # (1, latent)
    z = mu + jnp.exp(logsigma) * eps_ref[0]                       # z = mu + exp(logsigma)*eps

    mu_ref[0] = mu
    ls_ref[0] = logsigma

    # ------------------------- decoder -------------------------
    z_bf = z.astype(jnp.bfloat16)
    d1 = jnp.maximum(_mm(z_bf, wd1_ref[...]) + bd1_ref[...], 0.0)  # dec fc1+ReLU, (1, hidden)
    d1_bf = d1.astype(jnp.bfloat16)

    # dec fc2 (+ReLU), produced directly as the (7, 7*32) spatial map row by row
    for hh in range(7):
        xs_ref[hh:hh + 1, :] = jnp.maximum(
            _mm(d1_bf, wd2g_ref[hh]) + bd2g_ref[hh], 0.0)
    xdec_bf = xs_ref[...].astype(jnp.bfloat16)                     # (7, 7*32)

    y3 = _conv_block(xdec_bf, rt1_ref, mt1_ref, bt1_ref,
                     relu=True, r_first=False)                     # deconv1+ReLU -> (14, 14*16)
    y3_bf = y3.astype(jnp.bfloat16)
    y4 = _conv_block(y3_bf, rt2_ref, mt2_ref, bt2_ref,
                     relu=False, r_first=False)                    # deconv2      -> (28, 28)
    xp_ref[0] = y4


# ---------------------------------------------------------------------------
# Host-side one-time weight packing (all transposes / flips / tiling here)
# ---------------------------------------------------------------------------

def prepare_params(params, latent_dim, hidden_dim):
    f32 = np.float32

    def conv_factor_mats(wt, stride, pad, h_in, w_in):
        # wt: (Cout, Cin, k, k)   (PyTorch Conv2d layout)
        wt = np.asarray(wt, f32)
        c_out, c_in, k, _ = wt.shape
        h_out = (h_in + 2 * pad - k) // stride + 1
        w_out = (w_in + 2 * pad - k) // stride + 1
        r = np.zeros((k, h_out, h_in), f32)
        m = np.zeros((k, w_in * c_in, w_out * c_out), f32)
        for kh in range(k):
            for oh in range(h_out):
                ih = stride * oh + kh - pad
                if 0 <= ih < h_in:
                    r[kh, oh, ih] = 1.0
            for ow in range(w_out):
                for iw in range(w_in):
                    kw = iw - stride * ow + pad
                    if 0 <= kw < k:
                        m[kh, iw * c_in:(iw + 1) * c_in,
                          ow * c_out:(ow + 1) * c_out] = wt[:, :, kh, kw].T
        return r, m, h_out, w_out

    def deconv_factor_mats(wt, stride, pad, h_in, w_in):
        # wt: (Cin, Cout, k, k)   (PyTorch ConvTranspose2d layout)
        wt = np.asarray(wt, f32)
        c_in, c_out, k, _ = wt.shape
        h_out = (h_in - 1) * stride - 2 * pad + k
        w_out = (w_in - 1) * stride - 2 * pad + k
        r = np.zeros((k, h_out, h_in), f32)
        m = np.zeros((k, w_in * c_in, w_out * c_out), f32)
        for kh in range(k):
            for ih in range(h_in):
                oh = stride * ih - pad + kh
                if 0 <= oh < h_out:
                    r[kh, oh, ih] = 1.0
            for iw in range(w_in):
                for ow in range(w_out):
                    kw = ow - stride * iw + pad
                    if 0 <= kw < k:
                        m[kh, iw * c_in:(iw + 1) * c_in,
                          ow * c_out:(ow + 1) * c_out] = wt[:, :, kh, kw]
        return r, m, h_out, w_out

    p = {k: np.asarray(v, f32) for k, v in params.items()}

    # encoder convolutions
    r1, m1, _, w1o = conv_factor_mats(p["enc_conv1_w"], 2, 1, 28, 28)   # -> 14x14
    b1t = np.tile(p["enc_conv1_b"], w1o)[None, :]                       # (1, 14*16)
    r2, m2, _, w2o = conv_factor_mats(p["enc_conv2_w"], 2, 1, 14, 14)   # -> 7x7
    b2t = np.tile(p["enc_conv2_b"], w2o)[None, :]                       # (1, 7*32)

    # enc fc1: PyTorch flatten order of the (32,7,7) map is (c, h, w)
    wfc1 = p["enc_fc1_w"]                                               # (hidden, 1568)
    w1g = np.zeros((7, 7 * 32, hidden_dim), f32)
    for h_idx in range(7):
        for w_idx in range(7):
            for c_idx in range(32):
                w1g[h_idx, w_idx * 32 + c_idx, :] = \
                    wfc1[:, c_idx * 49 + h_idx * 7 + w_idx]
    bfc1 = p["enc_fc1_b"][None, :]                                      # (1, hidden)

    # enc fc2 split into mu / logsigma heads
    wfc2 = p["enc_fc2_w"]                                               # (2*latent, hidden)
    wmu = wfc2[:latent_dim, :].T                                        # (hidden, latent)
    wls = wfc2[latent_dim:, :].T
    bmu = p["enc_fc2_b"][None, :latent_dim]
    bls = p["enc_fc2_b"][None, latent_dim:]

    # dec fc1
    wd1 = p["dec_fc1_w"].T                                              # (latent, hidden)
    bd1 = p["dec_fc1_b"][None, :]

    # dec fc2, regrouped so that row h of the output is the (w, c) slab of the
    # (32,7,7) spatial map (PyTorch feature order is (c, h, w))
    wdf2 = p["dec_fc2_w"]                                               # (1568, hidden)
    bdf2 = p["dec_fc2_b"]
    wd2g = np.zeros((7, hidden_dim, 7 * 32), f32)
    bd2g = np.zeros((7, 1, 7 * 32), f32)
    for h_idx in range(7):
        for w_idx in range(7):
            for c_idx in range(32):
                f_idx = c_idx * 49 + h_idx * 7 + w_idx
                wd2g[h_idx, :, w_idx * 32 + c_idx] = wdf2[f_idx, :]
                bd2g[h_idx, 0, w_idx * 32 + c_idx] = bdf2[f_idx]

    # decoder transposed convolutions
    rt1, mt1, _, w3o = deconv_factor_mats(p["dec_deconv1_w"], 2, 1, 7, 7)    # -> 14x14
    bt1 = np.tile(p["dec_deconv1_b"], w3o)[None, :]                          # (1, 14*16)
    rt2, mt2, _, w4o = deconv_factor_mats(p["dec_deconv2_w"], 2, 1, 14, 14)  # -> 28x28
    bt2 = np.tile(p["dec_deconv2_b"], w4o)[None, :]                          # (1, 28)

    def bf(a):
        return jnp.asarray(a, jnp.bfloat16)

    def f(a):
        return jnp.asarray(a, jnp.float32)

    return (
        bf(r1), bf(m1), f(b1t),
        bf(r2), bf(m2), f(b2t),
        bf(w1g), f(bfc1),
        bf(wmu), f(bmu), bf(wls), f(bls),
        bf(wd1), f(bd1),
        bf(wd2g), f(bd2g),
        bf(rt1), bf(mt1), f(bt1),
        bf(rt2), bf(mt2), f(bt2),
    )


# ---------------------------------------------------------------------------
# Fused forward wrapper
# ---------------------------------------------------------------------------

def vae_forward_pallas(packed, x, eps):
    """x: (B, 1, 28, 28) f32; eps: (B, latent) ~ N(0,1).  Returns
    (x_prime, mu, logsigma) matching the PyTorch VAE.forward."""
    B = x.shape[0]
    latent = eps.shape[-1]
    x3 = x.reshape(B, 28, 28).astype(jnp.float32)
    eps3 = eps.reshape(B, 1, latent).astype(jnp.float32)

    def full_spec(a):
        # Whole array resident in VMEM; block index constant across the grid,
        # so the weight DMA happens once (not per grid step).
        return pl.BlockSpec(a.shape, lambda b, n=a.ndim: (0,) * n)

    in_specs = [
        pl.BlockSpec((1, 28, 28), lambda b: (b, 0, 0)),
        pl.BlockSpec((1, 1, latent), lambda b: (b, 0, 0)),
    ] + [full_spec(a) for a in packed]

    out_shape = (
        jax.ShapeDtypeStruct((B, 28, 28), jnp.float32),
        jax.ShapeDtypeStruct((B, 1, latent), jnp.float32),
        jax.ShapeDtypeStruct((B, 1, latent), jnp.float32),
    )
    out_specs = (
        pl.BlockSpec((1, 28, 28), lambda b: (b, 0, 0)),
        pl.BlockSpec((1, 1, latent), lambda b: (b, 0, 0)),
        pl.BlockSpec((1, 1, latent), lambda b: (b, 0, 0)),
    )

    xp, mu, ls = pl.pallas_call(
        _vae_kernel,
        grid=(B,),
        in_specs=in_specs,
        out_specs=out_specs,
        out_shape=out_shape,
        scratch_shapes=[pltpu.VMEM((7, 7 * 32), jnp.float32)],
        compiler_params=pltpu.CompilerParams(
            dimension_semantics=("parallel",),
        ),
    )(x3, eps3, *packed)

    return xp.reshape(B, 1, 28, 28), mu.reshape(B, latent), ls.reshape(B, latent)


# ---------------------------------------------------------------------------
# Deterministic PyTorch-like parameter init (same as the reference module)
# ---------------------------------------------------------------------------

def init_params(key, latent_dim, hidden_dim):
    ks = jax.random.split(key, 16)

    def u(k, shape, fan_in):
        bound = 1.0 / float(fan_in) ** 0.5
        return jax.random.uniform(k, shape, jnp.float32, -bound, bound)

    p = {}
    p["enc_conv1_w"] = u(ks[0], (16, 1, 4, 4), 1 * 4 * 4)
    p["enc_conv1_b"] = u(ks[1], (16,), 1 * 4 * 4)
    p["enc_conv2_w"] = u(ks[2], (32, 16, 4, 4), 16 * 4 * 4)
    p["enc_conv2_b"] = u(ks[3], (32,), 16 * 4 * 4)
    p["enc_fc1_w"] = u(ks[4], (hidden_dim, 32 * 7 * 7), 32 * 7 * 7)
    p["enc_fc1_b"] = u(ks[5], (hidden_dim,), 32 * 7 * 7)
    p["enc_fc2_w"] = u(ks[6], (latent_dim * 2, hidden_dim), hidden_dim)
    p["enc_fc2_b"] = u(ks[7], (latent_dim * 2,), hidden_dim)
    p["dec_fc1_w"] = u(ks[8], (hidden_dim, latent_dim), latent_dim)
    p["dec_fc1_b"] = u(ks[9], (hidden_dim,), latent_dim)
    p["dec_fc2_w"] = u(ks[10], (32 * 7 * 7, hidden_dim), hidden_dim)
    p["dec_fc2_b"] = u(ks[11], (32 * 7 * 7,), hidden_dim)
    p["dec_deconv1_w"] = u(ks[12], (32, 16, 4, 4), 32 * 4 * 4)   # (Cin, Cout, k, k)
    p["dec_deconv1_b"] = u(ks[13], (16,), 32 * 4 * 4)
    p["dec_deconv2_w"] = u(ks[14], (16, 1, 4, 4), 16 * 4 * 4)
    p["dec_deconv2_b"] = u(ks[15], (1,), 16 * 4 * 4)
    return p


# ---------------------------------------------------------------------------
# Plain-XLA f32 reference of the PyTorch module (for the correctness check)
# ---------------------------------------------------------------------------

def vae_reference(params, x, eps):
    B = x.shape[0]
    dn = ("NCHW", "OIHW", "NCHW")

    def conv(v, w, b, s, p):
        out = jax.lax.conv_general_dilated(
            v, w, (s, s), [(p, p), (p, p)], dimension_numbers=dn)
        return out + b.reshape(1, -1, 1, 1)

    def deconv(v, w, b, s, p):
        k = w.shape[-1]
        w2 = jnp.flip(w, (2, 3)).transpose(1, 0, 2, 3)          # (Cout, Cin, k, k)
        out = jax.lax.conv_general_dilated(
            v, w2, (1, 1), [(k - 1 - p, k - 1 - p)] * 2,
            lhs_dilation=(s, s), dimension_numbers=dn)
        return out + b.reshape(1, -1, 1, 1)

    h = jax.nn.relu(conv(x, params["enc_conv1_w"], params["enc_conv1_b"], 2, 1))
    h = jax.nn.relu(conv(h, params["enc_conv2_w"], params["enc_conv2_b"], 2, 1))
    h = h.reshape(B, 32 * 7 * 7)
    h = jax.nn.relu(h @ params["enc_fc1_w"].T + params["enc_fc1_b"])
    h = h @ params["enc_fc2_w"].T + params["enc_fc2_b"]
    latent = h.shape[1] // 2
    mu, logsigma = h[:, :latent], h[:, latent:]
    z = mu + jnp.exp(logsigma) * eps
    d = jax.nn.relu(z @ params["dec_fc1_w"].T + params["dec_fc1_b"])
    d = jax.nn.relu(d @ params["dec_fc2_w"].T + params["dec_fc2_b"])
    d = d.reshape(B, 32, 7, 7)
    d = jax.nn.relu(deconv(d, params["dec_deconv1_w"], params["dec_deconv1_b"], 2, 1))
    xp = deconv(d, params["dec_deconv2_w"], params["dec_deconv2_b"], 2, 1)
    return xp, mu, logsigma


# ---------------------------------------------------------------------------

if __name__ == "__main__":
    latent_dim_size = 8
    hidden_dim_size = 32
    batch = 2

    key = jax.random.PRNGKey(0)
    k_param, k_x, k_eps = jax.random.split(key, 3)

    params = init_params(k_param, latent_dim_size, hidden_dim_size)
    x = jax.random.normal(k_x, (batch, 1, 28, 28), jnp.float32)
    # deterministic stand-in for t.randn_like(mu) inside sample_latent_vector
    eps = jax.random.normal(k_eps, (batch, latent_dim_size), jnp.float32)

    packed = prepare_params(params, latent_dim_size, hidden_dim_size)

    fwd = jax.jit(vae_forward_pallas)
    x_prime, mu, logsigma = fwd(packed, x, eps)
    jax.block_until_ready((x_prime, mu, logsigma))

    assert x_prime.shape == (batch, 1, 28, 28) and x_prime.dtype == jnp.float32
    assert mu.shape == (batch, latent_dim_size)
    assert logsigma.shape == (batch, latent_dim_size)

    # correctness vs. plain-XLA f32 reference (kernel uses bf16 MXU operands)
    xr, mur, lsr = jax.jit(vae_reference)(params, x, eps)
    np.testing.assert_allclose(np.asarray(mu), np.asarray(mur), rtol=0.05, atol=0.02)
    np.testing.assert_allclose(np.asarray(logsigma), np.asarray(lsr), rtol=0.05, atol=0.02)
    np.testing.assert_allclose(np.asarray(x_prime), np.asarray(xr), rtol=0.05, atol=0.02)

    print("KERNEL_OK")
</pallas_src>

<mosaic_0001>
module attributes {stable_mosaic.version = 11 : i64} {
  func.func @_vae_kernel(%arg0: i32, %arg1: memref<1x28x28xf32, #tpu.memory_space<vmem>>, %arg2: memref<1x1x8xf32, #tpu.memory_space<vmem>>, %arg3: memref<4x14x28xbf16, #tpu.memory_space<vmem>>, %arg4: memref<4x28x224xbf16, #tpu.memory_space<vmem>>, %arg5: memref<1x224xf32, #tpu.memory_space<vmem>>, %arg6: memref<4x7x14xbf16, #tpu.memory_space<vmem>>, %arg7: memref<4x224x224xbf16, #tpu.memory_space<vmem>>, %arg8: memref<1x224xf32, #tpu.memory_space<vmem>>, %arg9: memref<7x224x32xbf16, #tpu.memory_space<vmem>>, %arg10: memref<1x32xf32, #tpu.memory_space<vmem>>, %arg11: memref<32x8xbf16, #tpu.memory_space<vmem>>, %arg12: memref<1x8xf32, #tpu.memory_space<vmem>>, %arg13: memref<32x8xbf16, #tpu.memory_space<vmem>>, %arg14: memref<1x8xf32, #tpu.memory_space<vmem>>, %arg15: memref<8x32xbf16, #tpu.memory_space<vmem>>, %arg16: memref<1x32xf32, #tpu.memory_space<vmem>>, %arg17: memref<7x32x224xbf16, #tpu.memory_space<vmem>>, %arg18: memref<7x1x224xf32, #tpu.memory_space<vmem>>, %arg19: memref<4x14x7xbf16, #tpu.memory_space<vmem>>, %arg20: memref<4x224x224xbf16, #tpu.memory_space<vmem>>, %arg21: memref<1x224xf32, #tpu.memory_space<vmem>>, %arg22: memref<4x28x14xbf16, #tpu.memory_space<vmem>>, %arg23: memref<4x224x28xbf16, #tpu.memory_space<vmem>>, %arg24: memref<1x28xf32, #tpu.memory_space<vmem>>, %arg25: memref<1x28x28xf32, #tpu.memory_space<vmem>>, %arg26: memref<1x1x8xf32, #tpu.memory_space<vmem>>, %arg27: memref<1x1x8xf32, #tpu.memory_space<vmem>>, %arg28: memref<7x224xf32, #tpu.memory_space<vmem>>) attributes {dimension_semantics = [#tpu.dimension_semantics<parallel>], iteration_bounds = array<i64: 2>, scalar_prefetch = 0 : i64, scratch_operands = 1 : i64, tpu.core_type = #tpu.core_type<tc>, window_params = [{transform_indices = @transform_0, window_bounds = array<i64: 1, 28, 28>}, {transform_indices = @transform_1, window_bounds = array<i64: 1, 1, 8>}, {pipeline_mode = #tpu.pipeline_mode<synchronous>, transform_indices = @transform_2, window_bounds = array<i64: 4, 14, 28>}, {pipeline_mode = #tpu.pipeline_mode<synchronous>, transform_indices = @transform_3, window_bounds = array<i64: 4, 28, 224>}, {pipeline_mode = #tpu.pipeline_mode<synchronous>, transform_indices = @transform_4, window_bounds = array<i64: 1, 224>}, {pipeline_mode = #tpu.pipeline_mode<synchronous>, transform_indices = @transform_5, window_bounds = array<i64: 4, 7, 14>}, {pipeline_mode = #tpu.pipeline_mode<synchronous>, transform_indices = @transform_6, window_bounds = array<i64: 4, 224, 224>}, {pipeline_mode = #tpu.pipeline_mode<synchronous>, transform_indices = @transform_7, window_bounds = array<i64: 1, 224>}, {pipeline_mode = #tpu.pipeline_mode<synchronous>, transform_indices = @transform_8, window_bounds = array<i64: 7, 224, 32>}, {pipeline_mode = #tpu.pipeline_mode<synchronous>, transform_indices = @transform_9, window_bounds = array<i64: 1, 32>}, {pipeline_mode = #tpu.pipeline_mode<synchronous>, transform_indices = @transform_10, window_bounds = array<i64: 32, 8>}, {pipeline_mode = #tpu.pipeline_mode<synchronous>, transform_indices = @transform_11, window_bounds = array<i64: 1, 8>}, {pipeline_mode = #tpu.pipeline_mode<synchronous>, transform_indices = @transform_12, window_bounds = array<i64: 32, 8>}, {pipeline_mode = #tpu.pipeline_mode<synchronous>, transform_indices = @transform_13, window_bounds = array<i64: 1, 8>}, {pipeline_mode = #tpu.pipeline_mode<synchronous>, transform_indices = @transform_14, window_bounds = array<i64: 8, 32>}, {pipeline_mode = #tpu.pipeline_mode<synchronous>, transform_indices = @transform_15, window_bounds = array<i64: 1, 32>}, {pipeline_mode = #tpu.pipeline_mode<synchronous>, transform_indices = @transform_16, window_bounds = array<i64: 7, 32, 224>}, {pipeline_mode = #tpu.pipeline_mode<synchronous>, transform_indices = @transform_17, window_bounds = array<i64: 7, 1, 224>}, {pipeline_mode = #tpu.pipeline_mode<synchronous>, transform_indices = @transform_18, window_bounds = array<i64: 4, 14, 7>}, {pipeline_mode = #tpu.pipeline_mode<synchronous>, transform_indices = @transform_19, window_bounds = array<i64: 4, 224, 224>}, {pipeline_mode = #tpu.pipeline_mode<synchronous>, transform_indices = @transform_20, window_bounds = array<i64: 1, 224>}, {pipeline_mode = #tpu.pipeline_mode<synchronous>, transform_indices = @transform_21, window_bounds = array<i64: 4, 28, 14>}, {pipeline_mode = #tpu.pipeline_mode<synchronous>, transform_indices = @transform_22, window_bounds = array<i64: 4, 224, 28>}, {pipeline_mode = #tpu.pipeline_mode<synchronous>, transform_indices = @transform_23, window_bounds = array<i64: 1, 28>}, {transform_indices = @transform_24, window_bounds = array<i64: 1, 28, 28>}, {transform_indices = @transform_25, window_bounds = array<i64: 1, 1, 8>}, {transform_indices = @transform_26, window_bounds = array<i64: 1, 1, 8>}]} {
    %c0 = arith.constant 0 : index
    %c0_0 = arith.constant 0 : index
    %c0_1 = arith.constant 0 : index
    %0 = vector.load %arg1[%c0, %c0_0, %c0_1] : memref<1x28x28xf32, #tpu.memory_space<vmem>>, vector<1x28x28xf32>
    %1 = vector.shape_cast %0 : vector<1x28x28xf32> to vector<28x28xf32>
    %2 = arith.truncf %1 : vector<28x28xf32> to vector<28x28xbf16>
    %c0_2 = arith.constant 0 : index
    %c0_3 = arith.constant 0 : index
    %c0_4 = arith.constant 0 : index
    %3 = vector.load %arg3[%c0_2, %c0_3, %c0_4] : memref<4x14x28xbf16, #tpu.memory_space<vmem>>, vector<1x14x28xbf16>
    %4 = vector.shape_cast %3 : vector<1x14x28xbf16> to vector<14x28xbf16>
    %cst = arith.constant dense<0.000000e+00> : vector<14x28xf32>
    %5 = tpu.matmul %4, %2, %cst {dimension_numbers = #tpu.dot_dimension_numbers<[1], [0], [0], [1], [0, 0, 1, 1], [], []>} : vector<14x28xbf16>, vector<28x28xbf16>, vector<14x28xf32> -> vector<14x28xf32>
    %6 = arith.truncf %5 : vector<14x28xf32> to vector<14x28xbf16>
    %c0_5 = arith.constant 0 : index
    %c0_6 = arith.constant 0 : index
    %c0_7 = arith.constant 0 : index
    %7 = vector.load %arg4[%c0_5, %c0_6, %c0_7] : memref<4x28x224xbf16, #tpu.memory_space<vmem>>, vector<1x28x224xbf16>
    %8 = vector.shape_cast %7 : vector<1x28x224xbf16> to vector<28x224xbf16>
    %cst_8 = arith.constant dense<0.000000e+00> : vector<14x224xf32>
    %9 = tpu.matmul %6, %8, %cst_8 {dimension_numbers = #tpu.dot_dimension_numbers<[1], [0], [0], [1], [0, 0, 1, 1], [], []>} : vector<14x28xbf16>, vector<28x224xbf16>, vector<14x224xf32> -> vector<14x224xf32>
    %c1 = arith.constant 1 : index
    %c0_9 = arith.constant 0 : index
    %c0_10 = arith.constant 0 : index
    %10 = vector.load %arg3[%c1, %c0_9, %c0_10] : memref<4x14x28xbf16, #tpu.memory_space<vmem>>, vector<1x14x28xbf16>
    %11 = vector.shape_cast %10 : vector<1x14x28xbf16> to vector<14x28xbf16>
    %cst_11 = arith.constant dense<0.000000e+00> : vector<14x28xf32>
    %12 = tpu.matmul %11, %2, %cst_11 {dimension_numbers = #tpu.dot_dimension_numbers<[1], [0], [0], [1], [0, 0, 1, 1], [], []>} : vector<14x28xbf16>, vector<28x28xbf16>, vector<14x28xf32> -> vector<14x28xf32>
    %13 = arith.truncf %12 : vector<14x28xf32> to vector<14x28xbf16>
    %c1_12 = arith.constant 1 : index
    %c0_13 = arith.constant 0 : index
    %c0_14 = arith.constant 0 : index
    %14 = vector.load %arg4[%c1_12, %c0_13, %c0_14] : memref<4x28x224xbf16, #tpu.memory_space<vmem>>, vector<1x28x224xbf16>
    %15 = vector.shape_cast %14 : vector<1x28x224xbf16> to vector<28x224xbf16>
    %cst_15 = arith.constant dense<0.000000e+00> : vector<14x224xf32>
    %16 = tpu.matmul %13, %15, %cst_15 {dimension_numbers = #tpu.dot_dimension_numbers<[1], [0], [0], [1], [0, 0, 1, 1], [], []>} : vector<14x28xbf16>, vector<28x224xbf16>, vector<14x224xf32> -> vector<14x224xf32>
    %17 = arith.addf %9, %16 : vector<14x224xf32>
    %c2 = arith.constant 2 : index
    %c0_16 = arith.constant 0 : index
    %c0_17 = arith.constant 0 : index
    %18 = vector.load %arg3[%c2, %c0_16, %c0_17] : memref<4x14x28xbf16, #tpu.memory_space<vmem>>, vector<1x14x28xbf16>
    %19 = vector.shape_cast %18 : vector<1x14x28xbf16> to vector<14x28xbf16>
    %cst_18 = arith.constant dense<0.000000e+00> : vector<14x28xf32>
    %20 = tpu.matmul %19, %2, %cst_18 {dimension_numbers = #tpu.dot_dimension_numbers<[1], [0], [0], [1], [0, 0, 1, 1], [], []>} : vector<14x28xbf16>, vector<28x28xbf16>, vector<14x28xf32> -> vector<14x28xf32>
    %21 = arith.truncf %20 : vector<14x28xf32> to vector<14x28xbf16>
    %c2_19 = arith.constant 2 : index
    %c0_20 = arith.constant 0 : index
    %c0_21 = arith.constant 0 : index
    %22 = vector.load %arg4[%c2_19, %c0_20, %c0_21] : memref<4x28x224xbf16, #tpu.memory_space<vmem>>, vector<1x28x224xbf16>
    %23 = vector.shape_cast %22 : vector<1x28x224xbf16> to vector<28x224xbf16>
    %cst_22 = arith.constant dense<0.000000e+00> : vector<14x224xf32>
    %24 = tpu.matmul %21, %23, %cst_22 {dimension_numbers = #tpu.dot_dimension_numbers<[1], [0], [0], [1], [0, 0, 1, 1], [], []>} : vector<14x28xbf16>, vector<28x224xbf16>, vector<14x224xf32> -> vector<14x224xf32>
    %25 = arith.addf %17, %24 : vector<14x224xf32>
    %c3 = arith.constant 3 : index
    %c0_23 = arith.constant 0 : index
    %c0_24 = arith.constant 0 : index
    %26 = vector.load %arg3[%c3, %c0_23, %c0_24] : memref<4x14x28xbf16, #tpu.memory_space<vmem>>, vector<1x14x28xbf16>
    %27 = vector.shape_cast %26 : vector<1x14x28xbf16> to vector<14x28xbf16>
    %cst_25 = arith.constant dense<0.000000e+00> : vector<14x28xf32>
    %28 = tpu.matmul %27, %2, %cst_25 {dimension_numbers = #tpu.dot_dimension_numbers<[1], [0], [0], [1], [0, 0, 1, 1], [], []>} : vector<14x28xbf16>, vector<28x28xbf16>, vector<14x28xf32> -> vector<14x28xf32>
    %29 = arith.truncf %28 : vector<14x28xf32> to vector<14x28xbf16>
    %c3_26 = arith.constant 3 : index
    %c0_27 = arith.constant 0 : index
    %c0_28 = arith.constant 0 : index
    %30 = vector.load %arg4[%c3_26, %c0_27, %c0_28] : memref<4x28x224xbf16, #tpu.memory_space<vmem>>, vector<1x28x224xbf16>
    %31 = vector.shape_cast %30 : vector<1x28x224xbf16> to vector<28x224xbf16>
    %cst_29 = arith.constant dense<0.000000e+00> : vector<14x224xf32>
    %32 = tpu.matmul %29, %31, %cst_29 {dimension_numbers = #tpu.dot_dimension_numbers<[1], [0], [0], [1], [0, 0, 1, 1], [], []>} : vector<14x28xbf16>, vector<28x224xbf16>, vector<14x224xf32> -> vector<14x224xf32>
    %33 = arith.addf %25, %32 : vector<14x224xf32>
    %c0_30 = arith.constant 0 : index
    %c0_31 = arith.constant 0 : index
    %34 = vector.load %arg5[%c0_30, %c0_31] : memref<1x224xf32, #tpu.memory_space<vmem>>, vector<1x224xf32>
    %35 = vector.broadcast %34 : vector<1x224xf32> to vector<14x224xf32>
    %36 = arith.addf %33, %35 : vector<14x224xf32>
    %cst_32 = arith.constant 0.000000e+00 : f32
    %37 = vector.broadcast %cst_32 : f32 to vector<14x224xf32>
    %38 = arith.maximumf %36, %37 : vector<14x224xf32>
    %39 = arith.truncf %38 : vector<14x224xf32> to vector<14x224xbf16>
    %c0_33 = arith.constant 0 : index
    %c0_34 = arith.constant 0 : index
    %c0_35 = arith.constant 0 : index
    %40 = vector.load %arg6[%c0_33, %c0_34, %c0_35] : memref<4x7x14xbf16, #tpu.memory_space<vmem>>, vector<1x7x14xbf16>
    %41 = vector.shape_cast %40 : vector<1x7x14xbf16> to vector<7x14xbf16>
    %cst_36 = arith.constant dense<0.000000e+00> : vector<7x224xf32>
    %42 = tpu.matmul %41, %39, %cst_36 {dimension_numbers = #tpu.dot_dimension_numbers<[1], [0], [0], [1], [0, 0, 1, 1], [], []>} : vector<7x14xbf16>, vector<14x224xbf16>, vector<7x224xf32> -> vector<7x224xf32>
    %43 = arith.truncf %42 : vector<7x224xf32> to vector<7x224xbf16>
    %c0_37 = arith.constant 0 : index
    %c0_38 = arith.constant 0 : index
    %c0_39 = arith.constant 0 : index
    %44 = vector.load %arg7[%c0_37, %c0_38, %c0_39] : memref<4x224x224xbf16, #tpu.memory_space<vmem>>, vector<1x224x224xbf16>
    %45 = vector.shape_cast %44 : vector<1x224x224xbf16> to vector<224x224xbf16>
    %cst_40 = arith.constant dense<0.000000e+00> : vector<7x224xf32>
    %46 = tpu.matmul %43, %45, %cst_40 {dimension_numbers = #tpu.dot_dimension_numbers<[1], [0], [0], [1], [0, 0, 1, 1], [], []>} : vector<7x224xbf16>, vector<224x224xbf16>, vector<7x224xf32> -> vector<7x224xf32>
    %c1_41 = arith.constant 1 : index
    %c0_42 = arith.constant 0 : index
    %c0_43 = arith.constant 0 : index
    %47 = vector.load %arg6[%c1_41, %c0_42, %c0_43] : memref<4x7x14xbf16, #tpu.memory_space<vmem>>, vector<1x7x14xbf16>
    %48 = vector.shape_cast %47 : vector<1x7x14xbf16> to vector<7x14xbf16>
    %cst_44 = arith.constant dense<0.000000e+00> : vector<7x224xf32>
    %49 = tpu.matmul %48, %39, %cst_44 {dimension_numbers = #tpu.dot_dimension_numbers<[1], [0], [0], [1], [0, 0, 1, 1], [], []>} : vector<7x14xbf16>, vector<14x224xbf16>, vector<7x224xf32> -> vector<7x224xf32>
    %50 = arith.truncf %49 : vector<7x224xf32> to vector<7x224xbf16>
    %c1_45 = arith.constant 1 : index
    %c0_46 = arith.constant 0 : index
    %c0_47 = arith.constant 0 : index
    %51 = vector.load %arg7[%c1_45, %c0_46, %c0_47] : memref<4x224x224xbf16, #tpu.memory_space<vmem>>, vector<1x224x224xbf16>
    %52 = vector.shape_cast %51 : vector<1x224x224xbf16> to vector<224x224xbf16>
    %cst_48 = arith.constant dense<0.000000e+00> : vector<7x224xf32>
    %53 = tpu.matmul %50, %52, %cst_48 {dimension_numbers = #tpu.dot_dimension_numbers<[1], [0], [0], [1], [0, 0, 1, 1], [], []>} : vector<7x224xbf16>, vector<224x224xbf16>, vector<7x224xf32> -> vector<7x224xf32>
    %54 = arith.addf %46, %53 : vector<7x224xf32>
    %c2_49 = arith.constant 2 : index
    %c0_50 = arith.constant 0 : index
    %c0_51 = arith.constant 0 : index
    %55 = vector.load %arg6[%c2_49, %c0_50, %c0_51] : memref<4x7x14xbf16, #tpu.memory_space<vmem>>, vector<1x7x14xbf16>
    %56 = vector.shape_cast %55 : vector<1x7x14xbf16> to vector<7x14xbf16>
    %cst_52 = arith.constant dense<0.000000e+00> : vector<7x224xf32>
    %57 = tpu.matmul %56, %39, %cst_52 {dimension_numbers = #tpu.dot_dimension_numbers<[1], [0], [0], [1], [0, 0, 1, 1], [], []>} : vector<7x14xbf16>, vector<14x224xbf16>, vector<7x224xf32> -> vector<7x224xf32>
    %58 = arith.truncf %57 : vector<7x224xf32> to vector<7x224xbf16>
    %c2_53 = arith.constant 2 : index
    %c0_54 = arith.constant 0 : index
    %c0_55 = arith.constant 0 : index
    %59 = vector.load %arg7[%c2_53, %c0_54, %c0_55] : memref<4x224x224xbf16, #tpu.memory_space<vmem>>, vector<1x224x224xbf16>
    %60 = vector.shape_cast %59 : vector<1x224x224xbf16> to vector<224x224xbf16>
    %cst_56 = arith.constant dense<0.000000e+00> : vector<7x224xf32>
    %61 = tpu.matmul %58, %60, %cst_56 {dimension_numbers = #tpu.dot_dimension_numbers<[1], [0], [0], [1], [0, 0, 1, 1], [], []>} : vector<7x224xbf16>, vector<224x224xbf16>, vector<7x224xf32> -> vector<7x224xf32>
    %62 = arith.addf %54, %61 : vector<7x224xf32>
    %c3_57 = arith.constant 3 : index
    %c0_58 = arith.constant 0 : index
    %c0_59 = arith.constant 0 : index
    %63 = vector.load %arg6[%c3_57, %c0_58, %c0_59] : memref<4x7x14xbf16, #tpu.memory_space<vmem>>, vector<1x7x14xbf16>
    %64 = vector.shape_cast %63 : vector<1x7x14xbf16> to vector<7x14xbf16>
    %cst_60 = arith.constant dense<0.000000e+00> : vector<7x224xf32>
    %65 = tpu.matmul %64, %39, %cst_60 {dimension_numbers = #tpu.dot_dimension_numbers<[1], [0], [0], [1], [0, 0, 1, 1], [], []>} : vector<7x14xbf16>, vector<14x224xbf16>, vector<7x224xf32> -> vector<7x224xf32>
    %66 = arith.truncf %65 : vector<7x224xf32> to vector<7x224xbf16>
    %c3_61 = arith.constant 3 : index
    %c0_62 = arith.constant 0 : index
    %c0_63 = arith.constant 0 : index
    %67 = vector.load %arg7[%c3_61, %c0_62, %c0_63] : memref<4x224x224xbf16, #tpu.memory_space<vmem>>, vector<1x224x224xbf16>
    %68 = vector.shape_cast %67 : vector<1x224x224xbf16> to vector<224x224xbf16>
    %cst_64 = arith.constant dense<0.000000e+00> : vector<7x224xf32>
    %69 = tpu.matmul %66, %68, %cst_64 {dimension_numbers = #tpu.dot_dimension_numbers<[1], [0], [0], [1], [0, 0, 1, 1], [], []>} : vector<7x224xbf16>, vector<224x224xbf16>, vector<7x224xf32> -> vector<7x224xf32>
    %70 = arith.addf %62, %69 : vector<7x224xf32>
    %c0_65 = arith.constant 0 : index
    %c0_66 = arith.constant 0 : index
    %71 = vector.load %arg8[%c0_65, %c0_66] : memref<1x224xf32, #tpu.memory_space<vmem>>, vector<1x224xf32>
    %72 = vector.broadcast %71 : vector<1x224xf32> to vector<7x224xf32>
    %73 = arith.addf %70, %72 : vector<7x224xf32>
    %cst_67 = arith.constant 0.000000e+00 : f32
    %74 = vector.broadcast %cst_67 : f32 to vector<7x224xf32>
    %75 = arith.maximumf %73, %74 : vector<7x224xf32>
    %76 = arith.truncf %75 : vector<7x224xf32> to vector<7x224xbf16>
    %c0_68 = arith.constant 0 : index
    %c0_69 = arith.constant 0 : index
    %77 = vector.load %arg10[%c0_68, %c0_69] : memref<1x32xf32, #tpu.memory_space<vmem>>, vector<1x32xf32>
    %78 = vector.extract_strided_slice %76 {offsets = [0, 0], sizes = [1, 224], strides = [1, 1]} : vector<7x224xbf16> to vector<1x224xbf16>
    %c0_70 = arith.constant 0 : index
    %c0_71 = arith.constant 0 : index
    %c0_72 = arith.constant 0 : index
    %79 = vector.load %arg9[%c0_70, %c0_71, %c0_72] : memref<7x224x32xbf16, #tpu.memory_space<vmem>>, vector<1x224x32xbf16>
    %80 = vector.shape_cast %79 : vector<1x224x32xbf16> to vector<224x32xbf16>
    %cst_73 = arith.constant dense<0.000000e+00> : vector<1x32xf32>
    %81 = tpu.matmul %78, %80, %cst_73 {dimension_numbers = #tpu.dot_dimension_numbers<[1], [0], [0], [1], [0, 0, 1, 1], [], []>} : vector<1x224xbf16>, vector<224x32xbf16>, vector<1x32xf32> -> vector<1x32xf32>
    %82 = arith.addf %77, %81 : vector<1x32xf32>
    %83 = vector.extract_strided_slice %76 {offsets = [1, 0], sizes = [1, 224], strides = [1, 1]} : vector<7x224xbf16> to vector<1x224xbf16>
    %c1_74 = arith.constant 1 : index
    %c0_75 = arith.constant 0 : index
    %c0_76 = arith.constant 0 : index
    %84 = vector.load %arg9[%c1_74, %c0_75, %c0_76] : memref<7x224x32xbf16, #tpu.memory_space<vmem>>, vector<1x224x32xbf16>
    %85 = vector.shape_cast %84 : vector<1x224x32xbf16> to vector<224x32xbf16>
    %cst_77 = arith.constant dense<0.000000e+00> : vector<1x32xf32>
    %86 = tpu.matmul %83, %85, %cst_77 {dimension_numbers = #tpu.dot_dimension_numbers<[1], [0], [0], [1], [0, 0, 1, 1], [], []>} : vector<1x224xbf16>, vector<224x32xbf16>, vector<1x32xf32> -> vector<1x32xf32>
    %87 = arith.addf %82, %86 : vector<1x32xf32>
    %88 = vector.extract_strided_slice %76 {offsets = [2, 0], sizes = [1, 224], strides = [1, 1]} : vector<7x224xbf16> to vector<1x224xbf16>
    %c2_78 = arith.constant 2 : index
    %c0_79 = arith.constant 0 : index
    %c0_80 = arith.constant 0 : index
    %89 = vector.load %arg9[%c2_78, %c0_79, %c0_80] : memref<7x224x32xbf16, #tpu.memory_space<vmem>>, vector<1x224x32xbf16>
    %90 = vector.shape_cast %89 : vector<1x224x32xbf16> to vector<224x32xbf16>
    %cst_81 = arith.constant dense<0.000000e+00> : vector<1x32xf32>
    %91 = tpu.matmul %88, %90, %cst_81 {dimension_numbers = #tpu.dot_dimension_numbers<[1], [0], [0], [1], [0, 0, 1, 1], [], []>} : vector<1x224xbf16>, vector<224x32xbf16>, vector<1x32xf32> -> vector<1x32xf32>
    %92 = arith.addf %87, %91 : vector<1x32xf32>
    %93 = vector.extract_strided_slice %76 {offsets = [3, 0], sizes = [1, 224], strides = [1, 1]} : vector<7x224xbf16> to vector<1x224xbf16>
    %c3_82 = arith.constant 3 : index
    %c0_83 = arith.constant 0 : index
    %c0_84 = arith.constant 0 : index
    %94 = vector.load %arg9[%c3_82, %c0_83, %c0_84] : memref<7x224x32xbf16, #tpu.memory_space<vmem>>, vector<1x224x32xbf16>
    %95 = vector.shape_cast %94 : vector<1x224x32xbf16> to vector<224x32xbf16>
    %cst_85 = arith.constant dense<0.000000e+00> : vector<1x32xf32>
    %96 = tpu.matmul %93, %95, %cst_85 {dimension_numbers = #tpu.dot_dimension_numbers<[1], [0], [0], [1], [0, 0, 1, 1], [], []>} : vector<1x224xbf16>, vector<224x32xbf16>, vector<1x32xf32> -> vector<1x32xf32>
    %97 = arith.addf %92, %96 : vector<1x32xf32>
    %98 = vector.extract_strided_slice %76 {offsets = [4, 0], sizes = [1, 224], strides = [1, 1]} : vector<7x224xbf16> to vector<1x224xbf16>
    %c4 = arith.constant 4 : index
    %c0_86 = arith.constant 0 : index
    %c0_87 = arith.constant 0 : index
    %99 = vector.load %arg9[%c4, %c0_86, %c0_87] : memref<7x224x32xbf16, #tpu.memory_space<vmem>>, vector<1x224x32xbf16>
    %100 = vector.shape_cast %99 : vector<1x224x32xbf16> to vector<224x32xbf16>
    %cst_88 = arith.constant dense<0.000000e+00> : vector<1x32xf32>
    %101 = tpu.matmul %98, %100, %cst_88 {dimension_numbers = #tpu.dot_dimension_numbers<[1], [0], [0], [1], [0, 0, 1, 1], [], []>} : vector<1x224xbf16>, vector<224x32xbf16>, vector<1x32xf32> -> vector<1x32xf32>
    %102 = arith.addf %97, %101 : vector<1x32xf32>
    %103 = vector.extract_strided_slice %76 {offsets = [5, 0], sizes = [1, 224], strides = [1, 1]} : vector<7x224xbf16> to vector<1x224xbf16>
    %c5 = arith.constant 5 : index
    %c0_89 = arith.constant 0 : index
    %c0_90 = arith.constant 0 : index
    %104 = vector.load %arg9[%c5, %c0_89, %c0_90] : memref<7x224x32xbf16, #tpu.memory_space<vmem>>, vector<1x224x32xbf16>
    %105 = vector.shape_cast %104 : vector<1x224x32xbf16> to vector<224x32xbf16>
    %cst_91 = arith.constant dense<0.000000e+00> : vector<1x32xf32>
    %106 = tpu.matmul %103, %105, %cst_91 {dimension_numbers = #tpu.dot_dimension_numbers<[1], [0], [0], [1], [0, 0, 1, 1], [], []>} : vector<1x224xbf16>, vector<224x32xbf16>, vector<1x32xf32> -> vector<1x32xf32>
    %107 = arith.addf %102, %106 : vector<1x32xf32>
    %108 = vector.extract_strided_slice %76 {offsets = [6, 0], sizes = [1, 224], strides = [1, 1]} : vector<7x224xbf16> to vector<1x224xbf16>
    %c6 = arith.constant 6 : index
    %c0_92 = arith.constant 0 : index
    %c0_93 = arith.constant 0 : index
    %109 = vector.load %arg9[%c6, %c0_92, %c0_93] : memref<7x224x32xbf16, #tpu.memory_space<vmem>>, vector<1x224x32xbf16>
    %110 = vector.shape_cast %109 : vector<1x224x32xbf16> to vector<224x32xbf16>
    %cst_94 = arith.constant dense<0.000000e+00> : vector<1x32xf32>
    %111 = tpu.matmul %108, %110, %cst_94 {dimension_numbers = #tpu.dot_dimension_numbers<[1], [0], [0], [1], [0, 0, 1, 1], [], []>} : vector<1x224xbf16>, vector<224x32xbf16>, vector<1x32xf32> -> vector<1x32xf32>
    %112 = arith.addf %107, %111 : vector<1x32xf32>
    %cst_95 = arith.constant 0.000000e+00 : f32
    %113 = vector.broadcast %cst_95 : f32 to vector<1x32xf32>
    %114 = arith.maximumf %112, %113 : vector<1x32xf32>
    %115 = arith.truncf %114 : vector<1x32xf32> to vector<1x32xbf16>
    %c0_96 = arith.constant 0 : index
    %c0_97 = arith.constant 0 : index
    %116 = vector.load %arg11[%c0_96, %c0_97] : memref<32x8xbf16, #tpu.memory_space<vmem>>, vector<32x8xbf16>
    %cst_98 = arith.constant dense<0.000000e+00> : vector<1x8xf32>
    %117 = tpu.matmul %115, %116, %cst_98 {dimension_numbers = #tpu.dot_dimension_numbers<[1], [0], [0], [1], [0, 0, 1, 1], [], []>} : vector<1x32xbf16>, vector<32x8xbf16>, vector<1x8xf32> -> vector<1x8xf32>
    %c0_99 = arith.constant 0 : index
    %c0_100 = arith.constant 0 : index
    %118 = vector.load %arg12[%c0_99, %c0_100] : memref<1x8xf32, #tpu.memory_space<vmem>>, vector<1x8xf32>
    %119 = arith.addf %117, %118 : vector<1x8xf32>
    %c0_101 = arith.constant 0 : index
    %c0_102 = arith.constant 0 : index
    %120 = vector.load %arg13[%c0_101, %c0_102] : memref<32x8xbf16, #tpu.memory_space<vmem>>, vector<32x8xbf16>
    %cst_103 = arith.constant dense<0.000000e+00> : vector<1x8xf32>
    %121 = tpu.matmul %115, %120, %cst_103 {dimension_numbers = #tpu.dot_dimension_numbers<[1], [0], [0], [1], [0, 0, 1, 1], [], []>} : vector<1x32xbf16>, vector<32x8xbf16>, vector<1x8xf32> -> vector<1x8xf32>
    %c0_104 = arith.constant 0 : index
    %c0_105 = arith.constant 0 : index
    %122 = vector.load %arg14[%c0_104, %c0_105] : memref<1x8xf32, #tpu.memory_space<vmem>>, vector<1x8xf32>
    %123 = arith.addf %121, %122 : vector<1x8xf32>
    %124 = math.exp %123 : vector<1x8xf32>
    %c0_106 = arith.constant 0 : index
    %c0_107 = arith.constant 0 : index
    %c0_108 = arith.constant 0 : index
    %125 = vector.load %arg2[%c0_106, %c0_107, %c0_108] : memref<1x1x8xf32, #tpu.memory_space<vmem>>, vector<1x1x8xf32>
    %126 = vector.shape_cast %125 : vector<1x1x8xf32> to vector<1x8xf32>
    %127 = arith.mulf %124, %126 : vector<1x8xf32>
    %128 = arith.addf %119, %127 : vector<1x8xf32>
    %c0_109 = arith.constant 0 : index
    %c0_110 = arith.constant 0 : index
    %c0_111 = arith.constant 0 : index
    %129 = vector.load %arg26[%c0_109, %c0_110, %c0_111] : memref<1x1x8xf32, #tpu.memory_space<vmem>>, vector<1x1x8xf32>
    %130 = vector.shape_cast %129 : vector<1x1x8xf32> to vector<1x8xf32>
    %131 = vector.shape_cast %119 : vector<1x8xf32> to vector<1x1x8xf32>
    tpu.vector_store %arg26[%c0_109, %c0_110, %c0_111], %131 {strides = array<i32>} : memref<1x1x8xf32, #tpu.memory_space<vmem>>, vector<1x1x8xf32>,
    %c0_112 = arith.constant 0 : index
    %c0_113 = arith.constant 0 : index
    %c0_114 = arith.constant 0 : index
    %132 = vector.load %arg27[%c0_112, %c0_113, %c0_114] : memref<1x1x8xf32, #tpu.memory_space<vmem>>, vector<1x1x8xf32>
    %133 = vector.shape_cast %132 : vector<1x1x8xf32> to vector<1x8xf32>
    %134 = vector.shape_cast %123 : vector<1x8xf32> to vector<1x1x8xf32>
    tpu.vector_store %arg27[%c0_112, %c0_113, %c0_114], %134 {strides = array<i32>} : memref<1x1x8xf32, #tpu.memory_space<vmem>>, vector<1x1x8xf32>,
    %135 = arith.truncf %128 : vector<1x8xf32> to vector<1x8xbf16>
    %c0_115 = arith.constant 0 : index
    %c0_116 = arith.constant 0 : index
    %136 = vector.load %arg15[%c0_115, %c0_116] : memref<8x32xbf16, #tpu.memory_space<vmem>>, vector<8x32xbf16>
    %cst_117 = arith.constant dense<0.000000e+00> : vector<1x32xf32>
    %137 = tpu.matmul %135, %136, %cst_117 {dimension_numbers = #tpu.dot_dimension_numbers<[1], [0], [0], [1], [0, 0, 1, 1], [], []>} : vector<1x8xbf16>, vector<8x32xbf16>, vector<1x32xf32> -> vector<1x32xf32>
    %c0_118 = arith.constant 0 : index
    %c0_119 = arith.constant 0 : index
    %138 = vector.load %arg16[%c0_118, %c0_119] : memref<1x32xf32, #tpu.memory_space<vmem>>, vector<1x32xf32>
    %139 = arith.addf %137, %138 : vector<1x32xf32>
    %cst_120 = arith.constant 0.000000e+00 : f32
    %140 = vector.broadcast %cst_120 : f32 to vector<1x32xf32>
    %141 = arith.maximumf %139, %140 : vector<1x32xf32>
    %142 = arith.truncf %141 : vector<1x32xf32> to vector<1x32xbf16>
    %c0_121 = arith.constant 0 : index
    %c0_122 = arith.constant 0 : index
    %c0_123 = arith.constant 0 : index
    %143 = vector.load %arg17[%c0_121, %c0_122, %c0_123] : memref<7x32x224xbf16, #tpu.memory_space<vmem>>, vector<1x32x224xbf16>
    %144 = vector.shape_cast %143 : vector<1x32x224xbf16> to vector<32x224xbf16>
    %cst_124 = arith.constant dense<0.000000e+00> : vector<1x224xf32>
    %145 = tpu.matmul %142, %144, %cst_124 {dimension_numbers = #tpu.dot_dimension_numbers<[1], [0], [0], [1], [0, 0, 1, 1], [], []>} : vector<1x32xbf16>, vector<32x224xbf16>, vector<1x224xf32> -> vector<1x224xf32>
    %c0_125 = arith.constant 0 : index
    %c0_126 = arith.constant 0 : index
    %c0_127 = arith.constant 0 : index
    %146 = vector.load %arg18[%c0_125, %c0_126, %c0_127] : memref<7x1x224xf32, #tpu.memory_space<vmem>>, vector<1x1x224xf32>
    %147 = vector.shape_cast %146 : vector<1x1x224xf32> to vector<1x224xf32>
    %148 = arith.addf %145, %147 : vector<1x224xf32>
    %cst_128 = arith.constant 0.000000e+00 : f32
    %149 = vector.broadcast %cst_128 : f32 to vector<1x224xf32>
    %150 = arith.maximumf %148, %149 : vector<1x224xf32>
    %c0_129 = arith.constant 0 : index
    %c0_130 = arith.constant 0 : index
    %151 = vector.load %arg28[%c0_129, %c0_130] : memref<7x224xf32, #tpu.memory_space<vmem>>, vector<1x224xf32>
    tpu.vector_store %arg28[%c0_129, %c0_130], %150 {strides = array<i32>} : memref<7x224xf32, #tpu.memory_space<vmem>>, vector<1x224xf32>,
    %c1_131 = arith.constant 1 : index
    %c0_132 = arith.constant 0 : index
    %c0_133 = arith.constant 0 : index
    %152 = vector.load %arg17[%c1_131, %c0_132, %c0_133] : memref<7x32x224xbf16, #tpu.memory_space<vmem>>, vector<1x32x224xbf16>
    %153 = vector.shape_cast %152 : vector<1x32x224xbf16> to vector<32x224xbf16>
    %cst_134 = arith.constant dense<0.000000e+00> : vector<1x224xf32>
    %154 = tpu.matmul %142, %153, %cst_134 {dimension_numbers = #tpu.dot_dimension_numbers<[1], [0], [0], [1], [0, 0, 1, 1], [], []>} : vector<1x32xbf16>, vector<32x224xbf16>, vector<1x224xf32> -> vector<1x224xf32>
    %c1_135 = arith.constant 1 : index
    %c0_136 = arith.constant 0 : index
    %c0_137 = arith.constant 0 : index
    %155 = vector.load %arg18[%c1_135, %c0_136, %c0_137] : memref<7x1x224xf32, #tpu.memory_space<vmem>>, vector<1x1x224xf32>
    %156 = vector.shape_cast %155 : vector<1x1x224xf32> to vector<1x224xf32>
    %157 = arith.addf %154, %156 : vector<1x224xf32>
    %cst_138 = arith.constant 0.000000e+00 : f32
    %158 = vector.broadcast %cst_138 : f32 to vector<1x224xf32>
    %159 = arith.maximumf %157, %158 : vector<1x224xf32>
    %c1_139 = arith.constant 1 : index
    %c0_140 = arith.constant 0 : index
    %160 = vector.load %arg28[%c1_139, %c0_140] : memref<7x224xf32, #tpu.memory_space<vmem>>, vector<1x224xf32>
    tpu.vector_store %arg28[%c1_139, %c0_140], %159 {strides = array<i32>} : memref<7x224xf32, #tpu.memory_space<vmem>>, vector<1x224xf32>,
    %c2_141 = arith.constant 2 : index
    %c0_142 = arith.constant 0 : index
    %c0_143 = arith.constant 0 : index
    %161 = vector.load %arg17[%c2_141, %c0_142, %c0_143] : memref<7x32x224xbf16, #tpu.memory_space<vmem>>, vector<1x32x224xbf16>
    %162 = vector.shape_cast %161 : vector<1x32x224xbf16> to vector<32x224xbf16>
    %cst_144 = arith.constant dense<0.000000e+00> : vector<1x224xf32>
    %163 = tpu.matmul %142, %162, %cst_144 {dimension_numbers = #tpu.dot_dimension_numbers<[1], [0], [0], [1], [0, 0, 1, 1], [], []>} : vector<1x32xbf16>, vector<32x224xbf16>, vector<1x224xf32> -> vector<1x224xf32>
    %c2_145 = arith.constant 2 : index
    %c0_146 = arith.constant 0 : index
    %c0_147 = arith.constant 0 : index
    %164 = vector.load %arg18[%c2_145, %c0_146, %c0_147] : memref<7x1x224xf32, #tpu.memory_space<vmem>>, vector<1x1x224xf32>
    %165 = vector.shape_cast %164 : vector<1x1x224xf32> to vector<1x224xf32>
    %166 = arith.addf %163, %165 : vector<1x224xf32>
    %cst_148 = arith.constant 0.000000e+00 : f32
    %167 = vector.broadcast %cst_148 : f32 to vector<1x224xf32>
    %168 = arith.maximumf %166, %167 : vector<1x224xf32>
    %c2_149 = arith.constant 2 : index
    %c0_150 = arith.constant 0 : index
    %169 = vector.load %arg28[%c2_149, %c0_150] : memref<7x224xf32, #tpu.memory_space<vmem>>, vector<1x224xf32>
    tpu.vector_store %arg28[%c2_149, %c0_150], %168 {strides = array<i32>} : memref<7x224xf32, #tpu.memory_space<vmem>>, vector<1x224xf32>,
    %c3_151 = arith.constant 3 : index
    %c0_152 = arith.constant 0 : index
    %c0_153 = arith.constant 0 : index
    %170 = vector.load %arg17[%c3_151, %c0_152, %c0_153] : memref<7x32x224xbf16, #tpu.memory_space<vmem>>, vector<1x32x224xbf16>
    %171 = vector.shape_cast %170 : vector<1x32x224xbf16> to vector<32x224xbf16>
    %cst_154 = arith.constant dense<0.000000e+00> : vector<1x224xf32>
    %172 = tpu.matmul %142, %171, %cst_154 {dimension_numbers = #tpu.dot_dimension_numbers<[1], [0], [0], [1], [0, 0, 1, 1], [], []>} : vector<1x32xbf16>, vector<32x224xbf16>, vector<1x224xf32> -> vector<1x224xf32>
    %c3_155 = arith.constant 3 : index
    %c0_156 = arith.constant 0 : index
    %c0_157 = arith.constant 0 : index
    %173 = vector.load %arg18[%c3_155, %c0_156, %c0_157] : memref<7x1x224xf32, #tpu.memory_space<vmem>>, vector<1x1x224xf32>
    %174 = vector.shape_cast %173 : vector<1x1x224xf32> to vector<1x224xf32>
    %175 = arith.addf %172, %174 : vector<1x224xf32>
    %cst_158 = arith.constant 0.000000e+00 : f32
    %176 = vector.broadcast %cst_158 : f32 to vector<1x224xf32>
    %177 = arith.maximumf %175, %176 : vector<1x224xf32>
    %c3_159 = arith.constant 3 : index
    %c0_160 = arith.constant 0 : index
    %178 = vector.load %arg28[%c3_159, %c0_160] : memref<7x224xf32, #tpu.memory_space<vmem>>, vector<1x224xf32>
    tpu.vector_store %arg28[%c3_159, %c0_160], %177 {strides = array<i32>} : memref<7x224xf32, #tpu.memory_space<vmem>>, vector<1x224xf32>,
    %c4_161 = arith.constant 4 : index
    %c0_162 = arith.constant 0 : index
    %c0_163 = arith.constant 0 : index
    %179 = vector.load %arg17[%c4_161, %c0_162, %c0_163] : memref<7x32x224xbf16, #tpu.memory_space<vmem>>, vector<1x32x224xbf16>
    %180 = vector.shape_cast %179 : vector<1x32x224xbf16> to vector<32x224xbf16>
    %cst_164 = arith.constant dense<0.000000e+00> : vector<1x224xf32>
    %181 = tpu.matmul %142, %180, %cst_164 {dimension_numbers = #tpu.dot_dimension_numbers<[1], [0], [0], [1], [0, 0, 1, 1], [], []>} : vector<1x32xbf16>, vector<32x224xbf16>, vector<1x224xf32> -> vector<1x224xf32>
    %c4_165 = arith.constant 4 : index
    %c0_166 = arith.constant 0 : index
    %c0_167 = arith.constant 0 : index
    %182 = vector.load %arg18[%c4_165, %c0_166, %c0_167] : memref<7x1x224xf32, #tpu.memory_space<vmem>>, vector<1x1x224xf32>
    %183 = vector.shape_cast %182 : vector<1x1x224xf32> to vector<1x224xf32>
    %184 = arith.addf %181, %183 : vector<1x224xf32>
    %cst_168 = arith.constant 0.000000e+00 : f32
    %185 = vector.broadcast %cst_168 : f32 to vector<1x224xf32>
    %186 = arith.maximumf %184, %185 : vector<1x224xf32>
    %c4_169 = arith.constant 4 : index
    %c0_170 = arith.constant 0 : index
    %187 = vector.load %arg28[%c4_169, %c0_170] : memref<7x224xf32, #tpu.memory_space<vmem>>, vector<1x224xf32>
    tpu.vector_store %arg28[%c4_169, %c0_170], %186 {strides = array<i32>} : memref<7x224xf32, #tpu.memory_space<vmem>>, vector<1x224xf32>,
    %c5_171 = arith.constant 5 : index
    %c0_172 = arith.constant 0 : index
    %c0_173 = arith.constant 0 : index
    %188 = vector.load %arg17[%c5_171, %c0_172, %c0_173] : memref<7x32x224xbf16, #tpu.memory_space<vmem>>, vector<1x32x224xbf16>
    %189 = vector.shape_cast %188 : vector<1x32x224xbf16> to vector<32x224xbf16>
    %cst_174 = arith.constant dense<0.000000e+00> : vector<1x224xf32>
    %190 = tpu.matmul %142, %189, %cst_174 {dimension_numbers = #tpu.dot_dimension_numbers<[1], [0], [0], [1], [0, 0, 1, 1], [], []>} : vector<1x32xbf16>, vector<32x224xbf16>, vector<1x224xf32> -> vector<1x224xf32>
    %c5_175 = arith.constant 5 : index
    %c0_176 = arith.constant 0 : index
    %c0_177 = arith.constant 0 : index
    %191 = vector.load %arg18[%c5_175, %c0_176, %c0_177] : memref<7x1x224xf32, #tpu.memory_space<vmem>>, vector<1x1x224xf32>
    %192 = vector.shape_cast %191 : vector<1x1x224xf32> to vector<1x224xf32>
    %193 = arith.addf %190, %192 : vector<1x224xf32>
    %cst_178 = arith.constant 0.000000e+00 : f32
    %194 = vector.broadcast %cst_178 : f32 to vector<1x224xf32>
    %195 = arith.maximumf %193, %194 : vector<1x224xf32>
    %c5_179 = arith.constant 5 : index
    %c0_180 = arith.constant 0 : index
    %196 = vector.load %arg28[%c5_179, %c0_180] : memref<7x224xf32, #tpu.memory_space<vmem>>, vector<1x224xf32>
    tpu.vector_store %arg28[%c5_179, %c0_180], %195 {strides = array<i32>} : memref<7x224xf32, #tpu.memory_space<vmem>>, vector<1x224xf32>,
    %c6_181 = arith.constant 6 : index
    %c0_182 = arith.constant 0 : index
    %c0_183 = arith.constant 0 : index
    %197 = vector.load %arg17[%c6_181, %c0_182, %c0_183] : memref<7x32x224xbf16, #tpu.memory_space<vmem>>, vector<1x32x224xbf16>
    %198 = vector.shape_cast %197 : vector<1x32x224xbf16> to vector<32x224xbf16>
    %cst_184 = arith.constant dense<0.000000e+00> : vector<1x224xf32>
    %199 = tpu.matmul %142, %198, %cst_184 {dimension_numbers = #tpu.dot_dimension_numbers<[1], [0], [0], [1], [0, 0, 1, 1], [], []>} : vector<1x32xbf16>, vector<32x224xbf16>, vector<1x224xf32> -> vector<1x224xf32>
    %c6_185 = arith.constant 6 : index
    %c0_186 = arith.constant 0 : index
    %c0_187 = arith.constant 0 : index
    %200 = vector.load %arg18[%c6_185, %c0_186, %c0_187] : memref<7x1x224xf32, #tpu.memory_space<vmem>>, vector<1x1x224xf32>
    %201 = vector.shape_cast %200 : vector<1x1x224xf32> to vector<1x224xf32>
    %202 = arith.addf %199, %201 : vector<1x224xf32>
    %cst_188 = arith.constant 0.000000e+00 : f32
    %203 = vector.broadcast %cst_188 : f32 to vector<1x224xf32>
    %204 = arith.maximumf %202, %203 : vector<1x224xf32>
    %c6_189 = arith.constant 6 : index
    %c0_190 = arith.constant 0 : index
    %205 = vector.load %arg28[%c6_189, %c0_190] : memref<7x224xf32, #tpu.memory_space<vmem>>, vector<1x224xf32>
    tpu.vector_store %arg28[%c6_189, %c0_190], %204 {strides = array<i32>} : memref<7x224xf32, #tpu.memory_space<vmem>>, vector<1x224xf32>,
    %c0_191 = arith.constant 0 : index
    %c0_192 = arith.constant 0 : index
    %206 = vector.load %arg28[%c0_191, %c0_192] : memref<7x224xf32, #tpu.memory_space<vmem>>, vector<7x224xf32>
    %207 = arith.truncf %206 : vector<7x224xf32> to vector<7x224xbf16>
    %c0_193 = arith.constant 0 : index
    %c0_194 = arith.constant 0 : index
    %c0_195 = arith.constant 0 : index
    %208 = vector.load %arg20[%c0_193, %c0_194, %c0_195] : memref<4x224x224xbf16, #tpu.memory_space<vmem>>, vector<1x224x224xbf16>
    %209 = vector.shape_cast %208 : vector<1x224x224xbf16> to vector<224x224xbf16>
    %cst_196 = arith.constant dense<0.000000e+00> : vector<7x224xf32>
    %210 = tpu.matmul %207, %209, %cst_196 {dimension_numbers = #tpu.dot_dimension_numbers<[1], [0], [0], [1], [0, 0, 1, 1], [], []>} : vector<7x224xbf16>, vector<224x224xbf16>, vector<7x224xf32> -> vector<7x224xf32>
    %c0_197 = arith.constant 0 : index
    %c0_198 = arith.constant 0 : index
    %c0_199 = arith.constant 0 : index
    %211 = vector.load %arg19[%c0_197, %c0_198, %c0_199] : memref<4x14x7xbf16, #tpu.memory_space<vmem>>, vector<1x14x7xbf16>
    %212 = vector.shape_cast %211 : vector<1x14x7xbf16> to vector<14x7xbf16>
    %213 = arith.truncf %210 : vector<7x224xf32> to vector<7x224xbf16>
    %cst_200 = arith.constant dense<0.000000e+00> : vector<14x224xf32>
    %214 = tpu.matmul %212, %213, %cst_200 {dimension_numbers = #tpu.dot_dimension_numbers<[1], [0], [0], [1], [0, 0, 1, 1], [], []>} : vector<14x7xbf16>, vector<7x224xbf16>, vector<14x224xf32> -> vector<14x224xf32>
    %c1_201 = arith.constant 1 : index
    %c0_202 = arith.constant 0 : index
    %c0_203 = arith.constant 0 : index
    %215 = vector.load %arg20[%c1_201, %c0_202, %c0_203] : memref<4x224x224xbf16, #tpu.memory_space<vmem>>, vector<1x224x224xbf16>
    %216 = vector.shape_cast %215 : vector<1x224x224xbf16> to vector<224x224xbf16>
    %cst_204 = arith.constant dense<0.000000e+00> : vector<7x224xf32>
    %217 = tpu.matmul %207, %216, %cst_204 {dimension_numbers = #tpu.dot_dimension_numbers<[1], [0], [0], [1], [0, 0, 1, 1], [], []>} : vector<7x224xbf16>, vector<224x224xbf16>, vector<7x224xf32> -> vector<7x224xf32>
    %c1_205 = arith.constant 1 : index
    %c0_206 = arith.constant 0 : index
    %c0_207 = arith.constant 0 : index
    %218 = vector.load %arg19[%c1_205, %c0_206, %c0_207] : memref<4x14x7xbf16, #tpu.memory_space<vmem>>, vector<1x14x7xbf16>
    %219 = vector.shape_cast %218 : vector<1x14x7xbf16> to vector<14x7xbf16>
    %220 = arith.truncf %217 : vector<7x224xf32> to vector<7x224xbf16>
    %cst_208 = arith.constant dense<0.000000e+00> : vector<14x224xf32>
    %221 = tpu.matmul %219, %220, %cst_208 {dimension_numbers = #tpu.dot_dimension_numbers<[1], [0], [0], [1], [0, 0, 1, 1], [], []>} : vector<14x7xbf16>, vector<7x224xbf16>, vector<14x224xf32> -> vector<14x224xf32>
    %222 = arith.addf %214, %221 : vector<14x224xf32>
    %c2_209 = arith.constant 2 : index
    %c0_210 = arith.constant 0 : index
    %c0_211 = arith.constant 0 : index
    %223 = vector.load %arg20[%c2_209, %c0_210, %c0_211] : memref<4x224x224xbf16, #tpu.memory_space<vmem>>, vector<1x224x224xbf16>
    %224 = vector.shape_cast %223 : vector<1x224x224xbf16> to vector<224x224xbf16>
    %cst_212 = arith.constant dense<0.000000e+00> : vector<7x224xf32>
    %225 = tpu.matmul %207, %224, %cst_212 {dimension_numbers = #tpu.dot_dimension_numbers<[1], [0], [0], [1], [0, 0, 1, 1], [], []>} : vector<7x224xbf16>, vector<224x224xbf16>, vector<7x224xf32> -> vector<7x224xf32>
    %c2_213 = arith.constant 2 : index
    %c0_214 = arith.constant 0 : index
    %c0_215 = arith.constant 0 : index
    %226 = vector.load %arg19[%c2_213, %c0_214, %c0_215] : memref<4x14x7xbf16, #tpu.memory_space<vmem>>, vector<1x14x7xbf16>
    %227 = vector.shape_cast %226 : vector<1x14x7xbf16> to vector<14x7xbf16>
    %228 = arith.truncf %225 : vector<7x224xf32> to vector<7x224xbf16>
    %cst_216 = arith.constant dense<0.000000e+00> : vector<14x224xf32>
    %229 = tpu.matmul %227, %228, %cst_216 {dimension_numbers = #tpu.dot_dimension_numbers<[1], [0], [0], [1], [0, 0, 1, 1], [], []>} : vector<14x7xbf16>, vector<7x224xbf16>, vector<14x224xf32> -> vector<14x224xf32>
    %230 = arith.addf %222, %229 : vector<14x224xf32>
    %c3_217 = arith.constant 3 : index
    %c0_218 = arith.constant 0 : index
    %c0_219 = arith.constant 0 : index
    %231 = vector.load %arg20[%c3_217, %c0_218, %c0_219] : memref<4x224x224xbf16, #tpu.memory_space<vmem>>, vector<1x224x224xbf16>
    %232 = vector.shape_cast %231 : vector<1x224x224xbf16> to vector<224x224xbf16>
    %cst_220 = arith.constant dense<0.000000e+00> : vector<7x224xf32>
    %233 = tpu.matmul %207, %232, %cst_220 {dimension_numbers = #tpu.dot_dimension_numbers<[1], [0], [0], [1], [0, 0, 1, 1], [], []>} : vector<7x224xbf16>, vector<224x224xbf16>, vector<7x224xf32> -> vector<7x224xf32>
    %c3_221 = arith.constant 3 : index
    %c0_222 = arith.constant 0 : index
    %c0_223 = arith.constant 0 : index
    %234 = vector.load %arg19[%c3_221, %c0_222, %c0_223] : memref<4x14x7xbf16, #tpu.memory_space<vmem>>, vector<1x14x7xbf16>
    %235 = vector.shape_cast %234 : vector<1x14x7xbf16> to vector<14x7xbf16>
    %236 = arith.truncf %233 : vector<7x224xf32> to vector<7x224xbf16>
    %cst_224 = arith.constant dense<0.000000e+00> : vector<14x224xf32>
    %237 = tpu.matmul %235, %236, %cst_224 {dimension_numbers = #tpu.dot_dimension_numbers<[1], [0], [0], [1], [0, 0, 1, 1], [], []>} : vector<14x7xbf16>, vector<7x224xbf16>, vector<14x224xf32> -> vector<14x224xf32>
    %238 = arith.addf %230, %237 : vector<14x224xf32>
    %c0_225 = arith.constant 0 : index
    %c0_226 = arith.constant 0 : index
    %239 = vector.load %arg21[%c0_225, %c0_226] : memref<1x224xf32, #tpu.memory_space<vmem>>, vector<1x224xf32>
    %240 = vector.broadcast %239 : vector<1x224xf32> to vector<14x224xf32>
    %241 = arith.addf %238, %240 : vector<14x224xf32>
    %cst_227 = arith.constant 0.000000e+00 : f32
    %242 = vector.broadcast %cst_227 : f32 to vector<14x224xf32>
    %243 = arith.maximumf %241, %242 : vector<14x224xf32>
    %244 = arith.truncf %243 : vector<14x224xf32> to vector<14x224xbf16>
    %c0_228 = arith.constant 0 : index
    %c0_229 = arith.constant 0 : index
    %c0_230 = arith.constant 0 : index
    %245 = vector.load %arg23[%c0_228, %c0_229, %c0_230] : memref<4x224x28xbf16, #tpu.memory_space<vmem>>, vector<1x224x28xbf16>
    %246 = vector.shape_cast %245 : vector<1x224x28xbf16> to vector<224x28xbf16>
    %cst_231 = arith.constant dense<0.000000e+00> : vector<14x28xf32>
    %247 = tpu.matmul %244, %246, %cst_231 {dimension_numbers = #tpu.dot_dimension_numbers<[1], [0], [0], [1], [0, 0, 1, 1], [], []>} : vector<14x224xbf16>, vector<224x28xbf16>, vector<14x28xf32> -> vector<14x28xf32>
    %c0_232 = arith.constant 0 : index
    %c0_233 = arith.constant 0 : index
    %c0_234 = arith.constant 0 : index
    %248 = vector.load %arg22[%c0_232, %c0_233, %c0_234] : memref<4x28x14xbf16, #tpu.memory_space<vmem>>, vector<1x28x14xbf16>
    %249 = vector.shape_cast %248 : vector<1x28x14xbf16> to vector<28x14xbf16>
    %250 = arith.truncf %247 : vector<14x28xf32> to vector<14x28xbf16>
    %cst_235 = arith.constant dense<0.000000e+00> : vector<28x28xf32>
    %251 = tpu.matmul %249, %250, %cst_235 {dimension_numbers = #tpu.dot_dimension_numbers<[1], [0], [0], [1], [0, 0, 1, 1], [], []>} : vector<28x14xbf16>, vector<14x28xbf16>, vector<28x28xf32> -> vector<28x28xf32>
    %c1_236 = arith.constant 1 : index
    %c0_237 = arith.constant 0 : index
    %c0_238 = arith.constant 0 : index
    %252 = vector.load %arg23[%c1_236, %c0_237, %c0_238] : memref<4x224x28xbf16, #tpu.memory_space<vmem>>, vector<1x224x28xbf16>
    %253 = vector.shape_cast %252 : vector<1x224x28xbf16> to vector<224x28xbf16>
    %cst_239 = arith.constant dense<0.000000e+00> : vector<14x28xf32>
    %254 = tpu.matmul %244, %253, %cst_239 {dimension_numbers = #tpu.dot_dimension_numbers<[1], [0], [0], [1], [0, 0, 1, 1], [], []>} : vector<14x224xbf16>, vector<224x28xbf16>, vector<14x28xf32> -> vector<14x28xf32>
    %c1_240 = arith.constant 1 : index
    %c0_241 = arith.constant 0 : index
    %c0_242 = arith.constant 0 : index
    %255 = vector.load %arg22[%c1_240, %c0_241, %c0_242] : memref<4x28x14xbf16, #tpu.memory_space<vmem>>, vector<1x28x14xbf16>
    %256 = vector.shape_cast %255 : vector<1x28x14xbf16> to vector<28x14xbf16>
    %257 = arith.truncf %254 : vector<14x28xf32> to vector<14x28xbf16>
    %cst_243 = arith.constant dense<0.000000e+00> : vector<28x28xf32>
    %258 = tpu.matmul %256, %257, %cst_243 {dimension_numbers = #tpu.dot_dimension_numbers<[1], [0], [0], [1], [0, 0, 1, 1], [], []>} : vector<28x14xbf16>, vector<14x28xbf16>, vector<28x28xf32> -> vector<28x28xf32>
    %259 = arith.addf %251, %258 : vector<28x28xf32>
    %c2_244 = arith.constant 2 : index
    %c0_245 = arith.constant 0 : index
    %c0_246 = arith.constant 0 : index
    %260 = vector.load %arg23[%c2_244, %c0_245, %c0_246] : memref<4x224x28xbf16, #tpu.memory_space<vmem>>, vector<1x224x28xbf16>
    %261 = vector.shape_cast %260 : vector<1x224x28xbf16> to vector<224x28xbf16>
    %cst_247 = arith.constant dense<0.000000e+00> : vector<14x28xf32>
    %262 = tpu.matmul %244, %261, %cst_247 {dimension_numbers = #tpu.dot_dimension_numbers<[1], [0], [0], [1], [0, 0, 1, 1], [], []>} : vector<14x224xbf16>, vector<224x28xbf16>, vector<14x28xf32> -> vector<14x28xf32>
    %c2_248 = arith.constant 2 : index
    %c0_249 = arith.constant 0 : index
    %c0_250 = arith.constant 0 : index
    %263 = vector.load %arg22[%c2_248, %c0_249, %c0_250] : memref<4x28x14xbf16, #tpu.memory_space<vmem>>, vector<1x28x14xbf16>
    %264 = vector.shape_cast %263 : vector<1x28x14xbf16> to vector<28x14xbf16>
    %265 = arith.truncf %262 : vector<14x28xf32> to vector<14x28xbf16>
    %cst_251 = arith.constant dense<0.000000e+00> : vector<28x28xf32>
    %266 = tpu.matmul %264, %265, %cst_251 {dimension_numbers = #tpu.dot_dimension_numbers<[1], [0], [0], [1], [0, 0, 1, 1], [], []>} : vector<28x14xbf16>, vector<14x28xbf16>, vector<28x28xf32> -> vector<28x28xf32>
    %267 = arith.addf %259, %266 : vector<28x28xf32>
    %c3_252 = arith.constant 3 : index
    %c0_253 = arith.constant 0 : index
    %c0_254 = arith.constant 0 : index
    %268 = vector.load %arg23[%c3_252, %c0_253, %c0_254] : memref<4x224x28xbf16, #tpu.memory_space<vmem>>, vector<1x224x28xbf16>
    %269 = vector.shape_cast %268 : vector<1x224x28xbf16> to vector<224x28xbf16>
    %cst_255 = arith.constant dense<0.000000e+00> : vector<14x28xf32>
    %270 = tpu.matmul %244, %269, %cst_255 {dimension_numbers = #tpu.dot_dimension_numbers<[1], [0], [0], [1], [0, 0, 1, 1], [], []>} : vector<14x224xbf16>, vector<224x28xbf16>, vector<14x28xf32> -> vector<14x28xf32>
    %c3_256 = arith.constant 3 : index
    %c0_257 = arith.constant 0 : index
    %c0_258 = arith.constant 0 : index
    %271 = vector.load %arg22[%c3_256, %c0_257, %c0_258] : memref<4x28x14xbf16, #tpu.memory_space<vmem>>, vector<1x28x14xbf16>
    %272 = vector.shape_cast %271 : vector<1x28x14xbf16> to vector<28x14xbf16>
    %273 = arith.truncf %270 : vector<14x28xf32> to vector<14x28xbf16>
    %cst_259 = arith.constant dense<0.000000e+00> : vector<28x28xf32>
    %274 = tpu.matmul %272, %273, %cst_259 {dimension_numbers = #tpu.dot_dimension_numbers<[1], [0], [0], [1], [0, 0, 1, 1], [], []>} : vector<28x14xbf16>, vector<14x28xbf16>, vector<28x28xf32> -> vector<28x28xf32>
    %275 = arith.addf %267, %274 : vector<28x28xf32>
    %c0_260 = arith.constant 0 : index
    %c0_261 = arith.constant 0 : index
    %276 = vector.load %arg24[%c0_260, %c0_261] : memref<1x28xf32, #tpu.memory_space<vmem>>, vector<1x28xf32>
    %277 = vector.broadcast %276 : vector<1x28xf32> to vector<28x28xf32>
    %278 = arith.addf %275, %277 : vector<28x28xf32>
    %c0_262 = arith.constant 0 : index
    %c0_263 = arith.constant 0 : index
    %c0_264 = arith.constant 0 : index
    %279 = vector.load %arg25[%c0_262, %c0_263, %c0_264] : memref<1x28x28xf32, #tpu.memory_space<vmem>>, vector<1x28x28xf32>
    %280 = vector.shape_cast %279 : vector<1x28x28xf32> to vector<28x28xf32>
    %281 = vector.shape_cast %278 : vector<28x28xf32> to vector<1x28x28xf32>
    tpu.vector_store %arg25[%c0_262, %c0_263, %c0_264], %281 {strides = array<i32>} : memref<1x28x28xf32, #tpu.memory_space<vmem>>, vector<1x28x28xf32>,
    return
  }
  func.func @transform_0(%arg0: i32) -> (i32, i32, i32) {
    %c0_i32 = arith.constant 0 : i32
    %c0_i32_0 = arith.constant 0 : i32
    %c0_i32_1 = arith.constant 0 : i32
    return %arg0, %c0_i32, %c0_i32_0 : i32, i32, i32
  }
  func.func @transform_1(%arg0: i32) -> (i32, i32, i32) {
    %c0_i32 = arith.constant 0 : i32
    %c0_i32_0 = arith.constant 0 : i32
    %c0_i32_1 = arith.constant 0 : i32
    return %arg0, %c0_i32, %c0_i32_0 : i32, i32, i32
  }
  func.func @transform_2(%arg0: i32) -> (i32, i32, i32) {
    %c0_i32 = arith.constant 0 : i32
    %c0_i32_0 = arith.constant 0 : i32
    %c0_i32_1 = arith.constant 0 : i32
    %c0_i32_2 = arith.constant 0 : i32
    return %c0_i32, %c0_i32_0, %c0_i32_1 : i32, i32, i32
  }
  func.func @transform_3(%arg0: i32) -> (i32, i32, i32) {
    %c0_i32 = arith.constant 0 : i32
    %c0_i32_0 = arith.constant 0 : i32
    %c0_i32_1 = arith.constant 0 : i32
    %c0_i32_2 = arith.constant 0 : i32
    return %c0_i32, %c0_i32_0, %c0_i32_1 : i32, i32, i32
  }
  func.func @transform_4(%arg0: i32) -> (i32, i32) {
    %c0_i32 = arith.constant 0 : i32
    %c0_i32_0 = arith.constant 0 : i32
    %c0_i32_1 = arith.constant 0 : i32
    return %c0_i32, %c0_i32_0 : i32, i32
  }
  func.func @transform_5(%arg0: i32) -> (i32, i32, i32) {
    %c0_i32 = arith.constant 0 : i32
    %c0_i32_0 = arith.constant 0 : i32
    %c0_i32_1 = arith.constant 0 : i32
    %c0_i32_2 = arith.constant 0 : i32
    return %c0_i32, %c0_i32_0, %c0_i32_1 : i32, i32, i32
  }
  func.func @transform_6(%arg0: i32) -> (i32, i32, i32) {
    %c0_i32 = arith.constant 0 : i32
    %c0_i32_0 = arith.constant 0 : i32
    %c0_i32_1 = arith.constant 0 : i32
    %c0_i32_2 = arith.constant 0 : i32
    return %c0_i32, %c0_i32_0, %c0_i32_1 : i32, i32, i32
  }
  func.func @transform_7(%arg0: i32) -> (i32, i32) {
    %c0_i32 = arith.constant 0 : i32
    %c0_i32_0 = arith.constant 0 : i32
    %c0_i32_1 = arith.constant 0 : i32
    return %c0_i32, %c0_i32_0 : i32, i32
  }
  func.func @transform_8(%arg0: i32) -> (i32, i32, i32) {
    %c0_i32 = arith.constant 0 : i32
    %c0_i32_0 = arith.constant 0 : i32
    %c0_i32_1 = arith.constant 0 : i32
    %c0_i32_2 = arith.constant 0 : i32
    return %c0_i32, %c0_i32_0, %c0_i32_1 : i32, i32, i32
  }
  func.func @transform_9(%arg0: i32) -> (i32, i32) {
    %c0_i32 = arith.constant 0 : i32
    %c0_i32_0 = arith.constant 0 : i32
    %c0_i32_1 = arith.constant 0 : i32
    return %c0_i32, %c0_i32_0 : i32, i32
  }
  func.func @transform_10(%arg0: i32) -> (i32, i32) {
    %c0_i32 = arith.constant 0 : i32
    %c0_i32_0 = arith.constant 0 : i32
    %c0_i32_1 = arith.constant 0 : i32
    return %c0_i32, %c0_i32_0 : i32, i32
  }
  func.func @transform_11(%arg0: i32) -> (i32, i32) {
    %c0_i32 = arith.constant 0 : i32
    %c0_i32_0 = arith.constant 0 : i32
    %c0_i32_1 = arith.constant 0 : i32
    return %c0_i32, %c0_i32_0 : i32, i32
  }
  func.func @transform_12(%arg0: i32) -> (i32, i32) {
    %c0_i32 = arith.constant 0 : i32
    %c0_i32_0 = arith.constant 0 : i32
    %c0_i32_1 = arith.constant 0 : i32
    return %c0_i32, %c0_i32_0 : i32, i32
  }
  func.func @transform_13(%arg0: i32) -> (i32, i32) {
    %c0_i32 = arith.constant 0 : i32
    %c0_i32_0 = arith.constant 0 : i32
    %c0_i32_1 = arith.constant 0 : i32
    return %c0_i32, %c0_i32_0 : i32, i32
  }
  func.func @transform_14(%arg0: i32) -> (i32, i32) {
    %c0_i32 = arith.constant 0 : i32
    %c0_i32_0 = arith.constant 0 : i32
    %c0_i32_1 = arith.constant 0 : i32
    return %c0_i32, %c0_i32_0 : i32, i32
  }
  func.func @transform_15(%arg0: i32) -> (i32, i32) {
    %c0_i32 = arith.constant 0 : i32
    %c0_i32_0 = arith.constant 0 : i32
    %c0_i32_1 = arith.constant 0 : i32
    return %c0_i32, %c0_i32_0 : i32, i32
  }
  func.func @transform_16(%arg0: i32) -> (i32, i32, i32) {
    %c0_i32 = arith.constant 0 : i32
    %c0_i32_0 = arith.constant 0 : i32
    %c0_i32_1 = arith.constant 0 : i32
    %c0_i32_2 = arith.constant 0 : i32
    return %c0_i32, %c0_i32_0, %c0_i32_1 : i32, i32, i32
  }
  func.func @transform_17(%arg0: i32) -> (i32, i32, i32) {
    %c0_i32 = arith.constant 0 : i32
    %c0_i32_0 = arith.constant 0 : i32
    %c0_i32_1 = arith.constant 0 : i32
    %c0_i32_2 = arith.constant 0 : i32
    return %c0_i32, %c0_i32_0, %c0_i32_1 : i32, i32, i32
  }
  func.func @transform_18(%arg0: i32) -> (i32, i32, i32) {
    %c0_i32 = arith.constant 0 : i32
    %c0_i32_0 = arith.constant 0 : i32
    %c0_i32_1 = arith.constant 0 : i32
    %c0_i32_2 = arith.constant 0 : i32
    return %c0_i32, %c0_i32_0, %c0_i32_1 : i32, i32, i32
  }
  func.func @transform_19(%arg0: i32) -> (i32, i32, i32) {
    %c0_i32 = arith.constant 0 : i32
    %c0_i32_0 = arith.constant 0 : i32
    %c0_i32_1 = arith.constant 0 : i32
    %c0_i32_2 = arith.constant 0 : i32
    return %c0_i32, %c0_i32_0, %c0_i32_1 : i32, i32, i32
  }
  func.func @transform_20(%arg0: i32) -> (i32, i32) {
    %c0_i32 = arith.constant 0 : i32
    %c0_i32_0 = arith.constant 0 : i32
    %c0_i32_1 = arith.constant 0 : i32
    return %c0_i32, %c0_i32_0 : i32, i32
  }
  func.func @transform_21(%arg0: i32) -> (i32, i32, i32) {
    %c0_i32 = arith.constant 0 : i32
    %c0_i32_0 = arith.constant 0 : i32
    %c0_i32_1 = arith.constant 0 : i32
    %c0_i32_2 = arith.constant 0 : i32
    return %c0_i32, %c0_i32_0, %c0_i32_1 : i32, i32, i32
  }
  func.func @transform_22(%arg0: i32) -> (i32, i32, i32) {
    %c0_i32 = arith.constant 0 : i32
    %c0_i32_0 = arith.constant 0 : i32
    %c0_i32_1 = arith.constant 0 : i32
    %c0_i32_2 = arith.constant 0 : i32
    return %c0_i32, %c0_i32_0, %c0_i32_1 : i32, i32, i32
  }
  func.func @transform_23(%arg0: i32) -> (i32, i32) {
    %c0_i32 = arith.constant 0 : i32
    %c0_i32_0 = arith.constant 0 : i32
    %c0_i32_1 = arith.constant 0 : i32
    return %c0_i32, %c0_i32_0 : i32, i32
  }
  func.func @transform_24(%arg0: i32) -> (i32, i32, i32) {
    %c0_i32 = arith.constant 0 : i32
    %c0_i32_0 = arith.constant 0 : i32
    %c0_i32_1 = arith.constant 0 : i32
    return %arg0, %c0_i32, %c0_i32_0 : i32, i32, i32
  }
  func.func @transform_25(%arg0: i32) -> (i32, i32, i32) {
    %c0_i32 = arith.constant 0 : i32
    %c0_i32_0 = arith.constant 0 : i32
    %c0_i32_1 = arith.constant 0 : i32
    return %arg0, %c0_i32, %c0_i32_0 : i32, i32, i32
  }
  func.func @transform_26(%arg0: i32) -> (i32, i32, i32) {
    %c0_i32 = arith.constant 0 : i32
    %c0_i32_0 = arith.constant 0 : i32
    %c0_i32_1 = arith.constant 0 : i32
    return %arg0, %c0_i32, %c0_i32_0 : i32, i32, i32
  }
}

</mosaic_0001>

<bundles_post_ra>
// kernel: vae_forward_pallas.1
= control target key start
LH: loop header
LB: loop body
LE: loop exit
PB: predicated region body
PF: predicated region fallthrough
CT: control target
= control target key end

     0   :  { %s11412_s0 = inlined_call_operand.vmem [shape: f32[2,28,28], index: 0, kind: input, shape index: {}]   ;;  %s11413_s1 = inlined_call_operand.hbm [shape: f32[2,1,8], index: 1, kind: input, shape index: {}]   ;;  %s11414_s2 = inlined_call_operand.vmem [shape: bf16[4,14,28], index: 2, kind: input, shape index: {}]   ;;  %s11415_s3 = inlined_call_operand.vmem [shape: bf16[4,28,224], index: 3, kind: input, shape index: {}]   ;;  %s11416_s4 = inlined_call_operand.hbm [shape: f32[1,224], index: 4, kind: input, shape index: {}]   ;;  %s11417_s5 = inlined_call_operand.vmem [shape: bf16[4,7,14], index: 5, kind: input, shape index: {}]   ;;  %s11418_s6 = inlined_call_operand.vmem [shape: bf16[4,224,224], index: 6, kind: input, shape index: {}]   ;;  %s11419_s7 = inlined_call_operand.hbm [shape: f32[1,224], index: 7, kind: input, shape index: {}]   ;;  %s11420_s8 = inlined_call_operand.vmem [shape: bf16[7,224,32], index: 8, kind: input, shape index: {}]   ;;  %s11421_s9 = inlined_call_operand.hbm [shape: f32[1,32], index: 9, kind: input, shape index: {}]   ;;  %s11422_s10 = inlined_call_operand.vmem [shape: bf16[32,8], index: 10, kind: input, shape index: {}]   ;;  %s11423_s11 = inlined_call_operand.hbm [shape: f32[1,8], index: 11, kind: input, shape index: {}]   ;;  %s11424_s12 = inlined_call_operand.vmem [shape: bf16[32,8], index: 12, kind: input, shape index: {}]   ;;  %s11425_s13 = inlined_call_operand.hbm [shape: f32[1,8], index: 13, kind: input, shape index: {}]   ;;  %s11426_s14 = inlined_call_operand.hbm [shape: bf16[8,32], index: 14, kind: input, shape index: {}]   ;;  %s11427_s15 = inlined_call_operand.vmem [shape: f32[1,32], index: 15, kind: input, shape index: {}]   ;;  %s11428_s16 = inlined_call_operand.vmem [shape: bf16[7,32,224], index: 16, kind: input, shape index: {}]   ;;  %s11429_s17 = inlined_call_operand.hbm [shape: f32[7,1,224], index: 17, kind: input, shape index: {}]   ;;  %s11430_s18 = inlined_call_operand.vmem [shape: bf16[4,14,7], index: 18, kind: input, shape index: {}]   ;;  %s11431_s19 = inlined_call_operand.vmem [shape: bf16[4,224,224], index: 19, kind: input, shape index: {}]   ;;  %s11432_s20 = inlined_call_operand.hbm [shape: f32[1,224], index: 20, kind: input, shape index: {}]   ;;  %s11433_s21 = inlined_call_operand.vmem [shape: bf16[4,28,14], index: 21, kind: input, shape index: {}]   ;;  %s11434_s22 = inlined_call_operand.vmem [shape: bf16[4,224,28], index: 22, kind: input, shape index: {}]   ;;  %s11435_s23 = inlined_call_operand.hbm [shape: f32[1,28], index: 23, kind: input, shape index: {}]   ;;  %s11436_s24 = inlined_call_operand.vmem [shape: f32[2,28,28], index: 24, kind: output, shape index: {0}]   ;;  %s11437_s25 = inlined_call_operand.hbm [shape: f32[2,1,8], index: 25, kind: output, shape index: {1}]   ;;  %s11438_s26 = inlined_call_operand.hbm [shape: f32[2,1,8], index: 26, kind: output, shape index: {2}]  }
   0x1   :  { %11465 = sst [smem:[#allocation31_spill]] %s11412_s0 }
   0x2   :  { %11466 = sst [smem:[#allocation32_spill]] %s11413_s1 }
   0x3   :  { %11467 = sst [smem:[#allocation33_spill]] %s11414_s2 }
   0x4   :  { %11468 = sst [smem:[#allocation34_spill]] %s11415_s3 }
   0x5   :  { %11469 = sst [smem:[#allocation35_spill]] %s11416_s4 }
   0x6   :  { %11470 = sst [smem:[#allocation36_spill]] %s11417_s5 }
   0x7   :  { %11471 = sst [smem:[#allocation37_spill]] %s11418_s6 }
   0x8   :  { %11472 = sst [smem:[#allocation38_spill]] %s11419_s7 }
   0x9   :  { %11473 = sst [smem:[#allocation39_spill]] %s11420_s8 }
   0xa   :  { %11474 = sst [smem:[#allocation40_spill]] %s11421_s9 }
   0xb   :  { %11475 = sst [smem:[#allocation41_spill]] %s11422_s10 }
   0xc   :  { %11476 = sst [smem:[#allocation42_spill]] %s11423_s11 }
   0xd   :  { %11477 = sst [smem:[#allocation43_spill]] %s11424_s12 }
   0xe   :  { %11478 = sst [smem:[#allocation44_spill]] %s11425_s13 }
   0xf   :  { %11479 = sst [smem:[#allocation45_spill]] %s11426_s14 }
  0x10   :  { %11480 = sst [smem:[#allocation46_spill]] %s11427_s15 }
  0x11   :  { %11481 = sst [smem:[#allocation47_spill]] %s11428_s16 }
  0x12   :  { %11482 = sst [smem:[#allocation48_spill]] %s11429_s17 }
  0x13   :  { %11483 = sst [smem:[#allocation49_spill]] %s11432_s20 }
  0x14   :  { %11484 = sst [smem:[#allocation50_spill]] %s11433_s21 }
  0x15   :  { %11485 = sst [smem:[#allocation51_spill]] %s11434_s22 }
  0x16   :  { %11486 = sst [smem:[#allocation52_spill]] %s11435_s23 }
  0x17   :  { %11487 = sst [smem:[#allocation53_spill]] %s11436_s24 }
  0x18   :  { %11488 = sst [smem:[#allocation54_spill]] %s11437_s25 }
  0x19   :  { %11489 = sst [smem:[#allocation55_spill]] %s11438_s26 }
  0x1a   :  { %32 = vsyncpa [#allocation4], 0 }
  0x1b   :  { %34 = vsyncpa [#allocation4 + $0x1], 0 }
  0x1c   :  { %35 = vsyncpa [#allocation7], 0 }
  0x1d   :  { %36 = vsyncpa [#allocation10], 0 }
  0x1e   :  { %37 = vsyncpa [#allocation13], 0 }
  0x1f   :  { %38 = vsyncpa [#allocation16], 0 }
  0x20   :  { %39 = vsyncpa [#allocation19], 0 }
  0x21   :  { %40 = vsyncpa [#allocation5], 0 }
  0x22   :  { %42 = vsyncpa [#allocation5 + $0x1], 0 }
  0x23   :  { %43 = vsyncpa [#allocation22], 0 }
  0x24   :  { %45 = vsyncpa [#allocation22 + $0x1], 0  ;;  %s9315_s27 = smov 0   ;;  %s9317_s3 = smov 0  }
  0x25   :  { %s9319_s7 = smov 0   ;;  %s9321_s28 = smov 0  }
  0x26 LB: > { %s9161_s8 = smov [#allocation6]   ;;  %s9336_s29 = sadd.s32 4294967295, %s9159_s28   ;;  %s9159_s28 = sphi %s9321_s28, %s11548_s28   ;;  %s9155_s7 = sphi %s9319_s7, %s11547_s7   ;;  %s9151_s3 = sphi %s9317_s3, %s11546_s3   ;;  %s9147_s27 = sphi %s9315_s27, %s11545_s27  }
  0x27   : > { %s667_s4 = sshll.u32 %s9161_s8, 4  ;;  %p6923_p0 = scmp.ge.s32.totalorder %s9159_s28, 1  ;;  %s668_s4 = int_to_ptr.vmem [resolvable:$true] %s667_s4 }
  0x28   : > { %p11448_p1 = scmp.eq.s32.totalorder %s9336_s29, 0  ;;  %p648_p2 = scmp.lt.s32.totalorder %s9159_s28, 3 }
  0x29   : > { %s9162_s9 = smov [#allocation9]   ;;  %s9163_s2 = smov [#allocation12]  }
  0x2a   : > { %p9341_p3 = pnand %p6923_p0, %p648_p2  ;;  %s698_s30 = sshll.u32 %s9162_s9, 4  ;;  %s699_s30 = int_to_ptr.vmem [resolvable:$true] %s698_s30 }
  0x2b   : > { %s726_s5 = sshll.u32 %s9163_s2, 4  ;;  %s9164_s6 = smov [#allocation15]   ;;  %s9354_s5 = int_to_ptr.vmem [resolvable:$true] %s726_s5 }
  0x2c   : > { %s11490_s0 = scalar_select %p9341_p3, 1, 0 }
  0x2d   : > { %p8098_p5 = pneg %p9341_p3  ;;  %s9356_s1 = sshll.u32 %s9164_s6, 4  ;;  %s754_s1 = int_to_ptr.vmem [resolvable:$true] %s9356_s1 }
  0x2e   : > { %s8794_s9 = scalar_lea.vmem %s668_s4, 32  ;;  %p8802_p11 = scmp.lt.s32.totalorder %s668_s4, %s668_s4 }
  0x2f   : > { %p9350_p6 = pnand %p8098_p5, %p11448_p1  ;;  %p8795_p8 = scmp.ne.s32.totalorder %s668_s4, %s8794_s9 }
  0x30   : > { %p8803_p12 = scmp.lt.s32.totalorder %s8794_s9, %s8794_s9 }
  0x31   : > { %p9360_p7 = pneg %p9350_p6 }
  0x32   : > { %p8804_p13 = por %p8803_p12, %p8802_p11 }
  0x33   : > { %p8797_p9 = pnand %p8795_p8, %p9360_p7 }
  0x35   : > { %p8798_p10 = pneg %p8797_p9 }
  0x37   : > { %p8805_p0 = pnand %p8804_p13, %p8798_p10 }
  0x39   : > { %8808 = shalt.err (!%p8805_p0)
}
  0x3a   : > { %s11493_s24 = sld [smem:[#allocation35_spill]]  ;;  %s8820_s26 = scalar_lea.vmem %s699_s30, 16 }
  0x3b   : > { %p8821_p2 = scmp.ne.s32.totalorder %s699_s30, %s8820_s26  ;;  %s8827_s25 = scalar_lea.vmem %s699_s30, 32 }
  0x3c   : > { %p8828_p8 = scmp.lt.s32.totalorder %s699_s30, %s699_s30  ;;  %p8829_p9 = scmp.lt.s32.totalorder %s8827_s25, %s8820_s26 }
  0x3d   : > { %p8823_p5 = pnand %p8821_p2, %p9360_p7 }
  0x3e   : > { %p8830_p1 = por %p8829_p9, %p8828_p8 }
  0x3f   : > { %p8824_p4 = pneg %p8823_p5 }
  0x40   : > { %8101 = dma.hbm_to_vmem [thread:$0]  (!%p9350_p6), %s11493_s24, 32, %s668_s4, [#allocation7]  }
  0x41   : > { %p8831_p3 = pnand %p8830_p1, %p8824_p4 }
  0x43   : > { %8834 = shalt.err (!%p8831_p3)
}
  0x44   : > { %s11494_s22 = sld [smem:[#allocation40_spill]]  ;;  %s8846_s24 = scalar_lea.vmem %s9354_s5, 16 }
  0x45   : > { %p8847_p10 = scmp.ne.s32.totalorder %s9354_s5, %s8846_s24  ;;  %s8853_s25 = scalar_lea.vmem %s9354_s5, 32 }
  0x46   : > { %p8854_p1 = scmp.lt.s32.totalorder %s9354_s5, %s9354_s5  ;;  %p8855_p3 = scmp.lt.s32.totalorder %s8853_s25, %s8846_s24 }
  0x47   : > { %p8849_p11 = pnand %p8847_p10, %p9360_p7 }
  0x48   : > { %p8856_p4 = por %p8855_p3, %p8854_p1 }
  0x49   : > { %p8850_p12 = pneg %p8849_p11 }
  0x4a   : > { %8107 = dma.hbm_to_vmem [thread:$0]  (!%p9350_p6), %s11494_s22, 16, %s699_s30, [#allocation10]  }
  0x4b   : > { %p8857_p13 = pnand %p8856_p4, %p8850_p12 }
  0x4d   : > { %8860 = shalt.err (!%p8857_p13)
}
  0x4e   : > { %s11495_s13 = sld [smem:[#allocation44_spill]]  ;;  %s8872_s22 = scalar_lea.vmem %s754_s1, 224 }
  0x4f   : > { %p8873_p0 = scmp.ne.s32.totalorder %s754_s1, %s8872_s22  ;;  %p8880_p8 = scmp.lt.s32.totalorder %s754_s1, %s754_s1 }
  0x50   : > { %p8881_p9 = scmp.lt.s32.totalorder %s8872_s22, %s8872_s22 }
  0x51   : > { %p8875_p2 = pnand %p8873_p0, %p9360_p7 }
  0x52   : > { %p8882_p10 = por %p8881_p9, %p8880_p8 }
  0x53   : > { %p8876_p5 = pneg %p8875_p2 }
  0x54   : > { %8113 = dma.hbm_to_vmem [thread:$0]  (!%p9350_p6), %s11495_s13, 16, %s9354_s5, [#allocation13]  }
  0x55   : > { %p8883_p11 = pnand %p8882_p10, %p8876_p5 }
  0x57   : > { %8886 = shalt.err (!%p8883_p11)
}
  0x58   : > { %s9165_s4 = smov 32   ;;  %s9166_s30 = smov 2  }
  0x59   : > { %s11496_s17 = sld [smem:[#allocation48_spill]]  ;;  %s9167_s5 = smov [#allocation8]  }
  0x5a   : > { %s684_s9 = sshll.u32 %s9167_s5, 4  ;;  %s9168_s24 = smov [#allocation11]   ;;  %s685_s9 = int_to_ptr.vmem [resolvable:$true] %s684_s9 }
  0x5b   : > { %s712_s25 = sshll.u32 %s9168_s24, 4  ;;  %s8898_s21 = scalar_lea.vmem %s685_s9, 32  ;;  %s713_s25 = int_to_ptr.vmem [resolvable:$true] %s712_s25 }
  0x5c   : > { %p8899_p12 = scmp.ne.s32.totalorder %s685_s9, %s8898_s21  ;;  %p8906_p4 = scmp.lt.s32.totalorder %s685_s9, %s685_s9 }
  0x5d   : > { %p8907_p13 = scmp.lt.s32.totalorder %s8898_s21, %s8898_s21 }
  0x5e   : > { %p8901_p1 = pnand %p8899_p12, %p9360_p7 }
  0x5f   : > { %8119 = dma.hbm_to_vmem [thread:$0]  (!%p9350_p6), %s11496_s17, 224, %s754_s1, [#allocation16], %s9165_s4, %s9165_s4, %s9166_s30  }
  0x60   : > { %p8902_p3 = pneg %p8901_p1  ;;  %p8908_p0 = por %p8907_p13, %p8906_p4 }
  0x62   : > { %p8909_p2 = pnand %p8908_p0, %p8902_p3 }
  0x64   : > { %8912 = shalt.err (!%p8909_p2)
}
  0x65   : > { %s11497_s22 = sld [smem:[#allocation38_spill]]  ;;  %s8924_s4 = scalar_lea.vmem %s713_s25, 16 }
  0x66   : > { %p8925_p5 = scmp.ne.s32.totalorder %s713_s25, %s8924_s4  ;;  %s8931_s30 = scalar_lea.vmem %s713_s25, 32 }
  0x67   : > { %p8932_p10 = scmp.lt.s32.totalorder %s713_s25, %s713_s25  ;;  %p8933_p11 = scmp.lt.s32.totalorder %s8931_s30, %s8924_s4 }
  0x68   : > { %p8927_p8 = pnand %p8925_p5, %p9360_p7 }
  0x69   : > { %p8934_p12 = por %p8933_p11, %p8932_p10 }
  0x6a   : > { %p8928_p9 = pneg %p8927_p8 }
  0x6b   : > { %8104 = dma.hbm_to_vmem [thread:$0]  (!%p9350_p6), %s11497_s22, 32, %s685_s9, [#allocation7]  }
  0x6c   : > { %p8935_p1 = pnand %p8934_p12, %p8928_p9 }
  0x6e   : > { %8938 = shalt.err (!%p8935_p1)
}
  0x6f   : > { %s11498_s11 = sld [smem:[#allocation42_spill]]  ;;  %s9169_s5 = smov [#allocation14]  }
  0x70   : > { %s737_s9 = sshll.u32 %s9169_s5, 4  ;;  %s9170_s24 = smov [#allocation17]   ;;  %s738_s9 = int_to_ptr.vmem [resolvable:$true] %s737_s9 }
  0x71   : > { %s773_s21 = sshll.u32 %s9170_s24, 4  ;;  %s8950_s26 = scalar_lea.vmem %s738_s9, 64  ;;  %s774_s21 = int_to_ptr.vmem [resolvable:$true] %s773_s21 }
  0x72   : > { %p8951_p3 = scmp.ne.s32.totalorder %s738_s9, %s8950_s26  ;;  %p8958_p0 = scmp.lt.s32.totalorder %s738_s9, %s738_s9 }
  0x73   : > { %p8959_p2 = scmp.lt.s32.totalorder %s8950_s26, %s8950_s26 }
  0x74   : > { %p8953_p4 = pnand %p8951_p3, %p9360_p7 }
  0x75   : > { %8110 = dma.hbm_to_vmem [thread:$0]  (!%p9350_p6), %s11498_s11, 16, %s713_s25, [#allocation10]  }
  0x76   : > { %p8954_p13 = pneg %p8953_p4  ;;  %p8960_p5 = por %p8959_p2, %p8958_p0 }
  0x78   : > { %p8961_p8 = pnand %p8960_p5, %p8954_p13 }
  0x7a   : > { %8964 = shalt.err (!%p8961_p8)
}
  0x7b   : > { %s11499_s14 = sld [smem:[#allocation45_spill]]  ;;  %s8976_s22 = scalar_lea.vmem %s774_s21, 32 }
  0x7c   : > { %p8977_p9 = scmp.ne.s32.totalorder %s774_s21, %s8976_s22  ;;  %p8984_p12 = scmp.lt.s32.totalorder %s774_s21, %s774_s21 }
  0x7d   : > { %p8985_p1 = scmp.lt.s32.totalorder %s8976_s22, %s8976_s22 }
  0x7e   : > { %p8979_p10 = pnand %p8977_p9, %p9360_p7 }
  0x7f   : > { %p8986_p3 = por %p8985_p1, %p8984_p12 }
  0x80   : > { %p8980_p11 = pneg %p8979_p10 }
  0x81   : > { %8116 = dma.hbm_to_vmem [thread:$0]  (!%p9350_p6), %s11499_s14, 64, %s738_s9, [#allocation13]  }
  0x82   : > { %p8987_p4 = pnand %p8986_p3, %p8980_p11 }
  0x84   : > { %8990 = shalt.err (!%p8987_p4)
}
  0x85   : > { %s11500_s20 = sld [smem:[#allocation49_spill]]  ;;  %s9171_s2 = smov [#allocation18]  }
  0x86   : > { %s790_s6 = sshll.u32 %s9171_s2, 4  ;;  %s791_s6 = int_to_ptr.vmem [resolvable:$true] %s790_s6 }
  0x87   : > { %s9002_s5 = scalar_lea.vmem %s791_s6, 16  ;;  %s9009_s9 = scalar_lea.vmem %s791_s6, 32 }
  0x88   : > { %p9003_p13 = scmp.ne.s32.totalorder %s791_s6, %s9002_s5  ;;  %p9010_p5 = scmp.lt.s32.totalorder %s791_s6, %s791_s6 }
  0x89   : > { %p9011_p8 = scmp.lt.s32.totalorder %s9009_s9, %s9002_s5 }
  0x8a   : > { %p9005_p0 = pnand %p9003_p13, %p9360_p7 }
  0x8b   : > { %8122 = dma.hbm_to_vmem [thread:$0]  (!%p9350_p6), %s11500_s20, 32, %s774_s21, [#allocation16]  }
  0x8c   : > { %p9006_p2 = pneg %p9005_p0  ;;  %p9012_p9 = por %p9011_p8, %p9010_p5 }
  0x8e   : > { %p9013_p10 = pnand %p9012_p9, %p9006_p2 }
  0x90   : > { %9016 = shalt.err (!%p9013_p10)
}
  0x91   : > { %s11501_s23 = sld [smem:[#allocation52_spill]]  ;;  %s6922_s8 = sadd.s32 4294967294, %s9159_s28  }
  0x92   : > { %s9436_s10 = sadd.s32 1, %s9159_s28   ;;  %s84_s21 = sadd.s32 1, %s9155_s7 }
  0x93   : > { %s81_s1 = ssub.s32 %s9159_s28, %s9436_s10  ;;  %p91_p7 = scmp.ne.s32.totalorder %s9155_s7, %s9151_s3 }
  0x94   : > { %p82_p11 = scmp.eq.s32.totalorder %s81_s1, 0  ;;  %p92_p12 = scmp.eq.s32.totalorder %s9159_s28, 0 }
  0x95   : > { %p97_p1 = scmp.ne.s32.totalorder %s9151_s3, %s9147_s27  ;;  %p609_p3 = scmp.eq.s32.totalorder %s9336_s29, 1 }
  0x96   : > { %s9448_s25 = scalar_select %p82_p11, %s9155_s7, %s84_s21  }
  0x97   : > { %8125 = dma.hbm_to_vmem [thread:$0]  (!%p9350_p6), %s11501_s23, 16, %s791_s6, [#allocation19]  }
  0x98   : > { %p93_p4 = por %p92_p12, %p91_p7  ;;  %p11502_p13 = scmp.eq.s32.totalorder %s9336_s29, 0 }
  0x99   : > { %p9456_p6 = por %p609_p3, %p91_p7  ;;  %p615_p2 = scmp.eq.s32.totalorder %s6922_s8, 1 }
  0x9a   : > { %p9452_p0 = por %p11502_p13, %p97_p1  ;;  %p8146_p5 = scmp.lt.s32.totalorder %s9159_s28, 2 }
  0x9b   : > { %s11504_s4 = scalar_select %p9456_p6, 1, 0 }
  0x9c   : > { %s11503_s22 = scalar_select %p9452_p0, 1, 0 }
  0x9d   : > { %s809_s30 = sand.u32 1, %s9155_s7   ;;  %p9462_p8 = por %p615_p2, %p97_p1 }
  0x9e   : > { %s6934_s6 = sshll.u32 %s9159_s28, 4  ;;  %s11506_s24 = sld [smem:[#allocation32_spill]] }
  0x9f   : > { %s11505_s2 = scalar_select %p9462_p8, 1, 0 }
  0xa0   : > { %s812_s21 = scalar_lea.vmem [#allocation3], %s809_s30  ;;  %p9472_p9 = pnand %p8146_p5, %p93_p4 }
  0xa1   : > { %s819_s1 = sshll.u32 %s812_s21, 4  ;;  %s810_s11 = scalar_lea.sflag [#allocation4], %s809_s30  ;;  %s820_s1 = int_to_ptr.vmem [resolvable:$true] %s819_s1 }
  0xa2   : > { %p9019_p7 = pneg %p9472_p9 }
  0xa4   : > { %s9470_s26 = scalar_lea.hbm %s11506_s24, %s6934_s6  ;;  %s9022_s9 = scalar_lea.hbm %s11506_s24, 32 }
  0xa5   : > { %s9017_s13 = scalar_lea.hbm %s9470_s26, 16  ;;  %p9023_p1 = scmp.lt.s32.totalorder %s9470_s26, %s11506_s24 }
  0xa6   : > { %p9018_p10 = scmp.ne.s32.totalorder %s9470_s26, %s9017_s13  ;;  %p9024_p3 = scmp.lt.s32.totalorder %s9022_s9, %s9017_s13 }
  0xa8   : > { %p9020_p11 = pnand %p9019_p7, %p9018_p10  ;;  %p9025_p4 = por %p9024_p3, %p9023_p1 }
  0xaa   : > { %p9021_p12 = pneg %p9020_p11 }
  0xac   : > { %p9026_p13 = pnand %p9025_p4, %p9021_p12 }
  0xae   : > { %9029 = shalt.err (!%p9026_p13)
}
  0xaf   : > { %s9030_s21 = scalar_lea.vmem %s820_s1, 16  ;;  %s9172_s30 = smov [#allocation3]  }
  0xb0   : > { %p9031_p2 = scmp.ne.s32.totalorder %s820_s1, %s9030_s21  ;;  %s9035_s20 = sshll.u32 %s9172_s30, 4  ;;  %s9036_s20 = int_to_ptr.vmem [resolvable:$false] %s9035_s20 }
  0xb1   : > { %s9037_s23 = scalar_lea.vmem %s9036_s20, 32  ;;  %p9038_p10 = scmp.lt.s32.totalorder %s820_s1, %s9036_s20 }
  0xb2   : > { %p9033_p5 = pnand %p9031_p2, %p9019_p7  ;;  %p9039_p11 = scmp.lt.s32.totalorder %s9037_s23, %s9030_s21 }
  0xb4   : > { %p9034_p8 = pneg %p9033_p5  ;;  %p9040_p6 = por %p9039_p11, %p9038_p10 }
  0xb6   : > { %p9041_p0 = pnand %p9040_p6, %p9034_p8 }
  0xb8   : > { %9044 = shalt.err (!%p9041_p0)
}
  0xb9   : > { %8129 = dma.hbm_to_vmem [thread:$0]  (!%p9472_p9), %s9470_s26, 16, %s820_s1, %s810_s11  }
  0xba   : > { %p11508_p12 = scmp.ne.s32.totalorder %s11490_s0, 0 }
  0xbb   : > { %s9493_s13 = sand.u32 (!%p11508_p12), 1, %s9151_s3   ;;  %p11509_p7 = scmp.ne.s32.totalorder (!%p11508_p12), %s11503_s22, 0 }
  0xbc   : > { %828 = sbr.rel (%p11508_p12) target bundleno = 4361 (0x1109), region = 116  ;;  %s831_s14 = scalar_lea.sflag (!%p11508_p12), [#allocation4], %s9493_s13 }
  0xc1   : > { %9114 = dma.done.wait (%p11509_p7), %s831_s14, 16  }
  0xc2   : > { %9116 = vsyncadd (%p11509_p7), %s831_s14, 4294967280  ;;  %p11510_p0 = scmp.eq.s32.totalorder %s9336_s29, 0 }
  0xc4   : > { %9118 = dma.done.wait (%p11510_p0), [#allocation7], 64   ;;  %p11511_p6 = pmov %p11510_p0 }
  0xc5   : > { %p11512_p8 = pmov %p11510_p0 }
  0xc6   : > { %9120 = vsyncadd (%p11511_p6), [#allocation7], 4294967232 }
  0xc7   : > { %9122 = dma.done.wait (%p11512_p8), [#allocation10], 32   ;;  %p11513_p9 = pmov %p11510_p0 }
  0xc8   : > { %p11514_p1 = pmov %p11510_p0 }
  0xc9   : > { %9124 = vsyncadd (%p11513_p9), [#allocation10], 4294967264 }
  0xca   : > { %9126 = dma.done.wait (%p11514_p1), [#allocation13], 80   ;;  %p11515_p3 = pmov %p11510_p0 }
  0xcb   : > { %p11516_p4 = pmov %p11510_p0 }
  0xcc   : > { %9128 = vsyncadd (%p11515_p3), [#allocation13], 4294967216 }
  0xcd   : > { %9130 = dma.done.wait (%p11516_p4), [#allocation16], 256   ;;  %p11517_p13 = pmov %p11510_p0 }
  0xce   : > { %p11518_p2 = pmov %p11510_p0 }
  0xcf   : > { %9132 = vsyncadd (%p11517_p13), [#allocation16], 4294967040 }
  0xd0   : > { %9134 = dma.done.wait (%p11518_p2), [#allocation19], 16   ;;  %p11519_p5 = pmov %p11510_p0 }
  0xd1   : > { %p950_p10 = scmp.lt.s32.totalorder %s9336_s29, 1  ;;  %v9173_v0 = vmov 0.0   ;;  %vm9174_vm0 = vmmov 0   ;;  %s11520_s22 = sld [smem:[#allocation31_spill]]  ;;  %vm978_vm1 = vcmask 1045504   ;;  %vm974_vm2 = vcmask 228352  }
  0xd2   : > { %9136 = vsyncadd (%p11519_p5), [#allocation19], 4294967280  ;;  %7974 = vmatprep.subr.bf16.mxu0 %v9173_v0  ;;  %7982 = vmatprep.subr.bf16.mxu1 %v9173_v0  ;;  %s11521_s6 = sld [smem:[#allocation34_spill]]  ;;  %v9175_v20 = vmov 0   ;;  %v1492_v60 = vlaneseq  ;;  %vm1517_vm3 = vcmask 1046528   ;;  %vm1513_vm4 = vcmask 113664  }
  0xd3   : > { %s9525_s11 = scalar_select %p950_p10, %s9336_s29, 1  ;;  %7978 = vmatprep.mubr.msk.bf16.mxu0 %vm9174_vm0, %v9173_v0  ;;  %7986 = vmatprep.mubr.msk.bf16.mxu1 %vm9174_vm0, %v9173_v0  ;;  %vm1812_vm5 = vcmask 785408   ;;  %vm3726_vm6 = vcmask 261120   ;;  %vm3842_vm7 = vcmask 1043456   ;;  %vm3832_vm8 = vcmask 57344  }
  0xd4   : > { %s11522_s21 = sld [smem:[#allocation33_spill]]  ;;  %v9631_v63 = vshrl.u32 %v1492_v60, 7  ;;  %s11456_s1 = scalar_lea.vmem [#allocation20], %s9493_s13  ;;  %vm3838_vm9 = vcmask 64512   ;;  %vm10764_vm10 = vcmp.lt.s32.totalorder %v1492_v60, 224  ;;  %vm5050_vm11 = vcmask 1042432  }
  0xd5   : > { %s11454_s20 = sshll.u32 %s9525_s11, 5  ;;  %s11523_s5 = sld [smem:[#allocation37_spill]]  ;;  %vm5046_vm12 = vcmask 56320  }
  0xd6   : > { %s11524_s0 = sld [smem:[#allocation36_spill]]  ;;  %s11455_s8 = scalar_lea.vmem [#allocation21], %s9493_s13 }
  0xd7   : > { %s954_s26 = scalar_lea.vmem %s11520_s22, %s11454_s20  ;;  %s11525_s14 = sld [smem:[#allocation39_spill]] }
  0xd8   : > { %v963_v1 = vld [vmem:[%s954_s26 + $0x10] sm:$0xff]  ;;  %v964_v2 = vld [vmem:[%s954_s26 + $0x18] sm:$0xf]  ;;  %v961_v3 = vld [vmem:[%s954_s26] sm:$0xff]  ;;  %s11526_s17 = sld [smem:[#allocation41_spill]]  ;;  %s11529_s9 = scalar_lea.vmem [#allocation3], %s9493_s13 }
  0xd9   : > { %v966_v4 = vpack.c.bf16 %v964_v2, %v963_v1  ;;  %v962_v5 = vld [vmem:[%s954_s26 + $0x8] sm:$0xff]  ;;  %v8207_v8 = vld [vmem:[%s11521_s6 + $0x34] ss:$8 sps:$4 sm:$0x3f]   ;;  %s11527_s12 = sld [smem:[#allocation43_spill]]  ;;  %s11462_s26 = sshll.u32 %s9336_s29, 4 }
  0xda   : > { %v965_v7 = vpack.c.bf16 %v962_v5, %v961_v3  ;;  %v8205_v9 = vld [vmem:[%s11522_s21] sm:$0x7f]   ;;  %v8206_v10 = vld [vmem:[%s11522_s21 + $0x8] sm:$0x7f]   ;;  %v8219_v31 = vld [vmem:[%s11522_s21 + $0x10] sm:$0x7f]  }
  0xdb   : > { %v980_v6 = vsel %vm978_vm1, %v966_v4, 0  ;;  %v8209_v11 = vld [vmem:[%s11521_s6 + $0x14] ss:$8 sps:$4 sm:$0x3f]   ;;  %v8215_v16 = vld [vmem:[%s11521_s6 + $0x24] ss:$8 sps:$4 sm:$0xff]  }
  0xdc   : > { %7975 = vmatpush3.bf16.msra.mxu0 %v980_v6  ;;  %7983 = vmatpush3.bf16.msra.mxu1 %v980_v6  ;;  %v8211_v12 = vld [vmem:[%s11521_s6 + $0x30] ss:$8 sps:$4 sm:$0x3f]   ;;  %v8218_v17 = vld [vmem:[%s11521_s6 + $0x4] ss:$8 sps:$4 sm:$0xff]   ;;  %v9634_v4 = vsub.s32 0, %v9631_v63 }
  0xdd   : > { %7976 = vmatprep.subr.bf16.mxu0 %v9173_v0  ;;  %7984 = vmatprep.subr.bf16.mxu1 %v9173_v0  ;;  %v8212_v13 = vld [vmem:[%s11521_s6 + $0x10] ss:$8 sps:$4 sm:$0x3f]   ;;  %v1108_v14 = vsel %vm978_vm1, %v8211_v12, 0  ;;  %v8213_v18 = vld [vmem:[%s11521_s6 + $0x20] ss:$8 sps:$4 sm:$0xff]  }
  0xde   : > { %v1178_v15 = vsel %vm978_vm1, %v8212_v13, 0  ;;  %v8216_v19 = vld [vmem:[%s11521_s6] ss:$8 sps:$4 sm:$0xff]   ;;  %v8220_v32 = vld [vmem:[%s11522_s21 + $0x18] sm:$0x7f]   ;;  %s11528_s16 = sld [smem:[#allocation47_spill]] }
  0xdf   : > { %v8221_v33 = vld [vmem:[%s11521_s6 + $0x54] ss:$8 sps:$4 sm:$0x3f]   ;;  %v8223_v34 = vld [vmem:[%s11521_s6 + $0x50] ss:$8 sps:$4 sm:$0x3f]  }
  0xe0   : > { %7977 = vmatpush3.bf16.msra.mxu0 %v965_v7  ;;  %7985 = vmatpush3.bf16.msra.mxu1 %v965_v7  ;;  %v1306_v35 = vsel %vm978_vm1, %v8223_v34, 0  ;;  %v8226_v36 = vld [vmem:[%s11521_s6 + $0x44] ss:$8 sps:$4 sm:$0xff]   ;;  %v8224_v37 = vld [vmem:[%s11521_s6 + $0x40] ss:$8 sps:$4 sm:$0xff]   ;;  %s11530_s15 = sld [smem:[#allocation46_spill]] }
  0xe1   : > { %6963 = vmatprep.subr.msk.bf16.mxu0 %vm978_vm1, %v8207_v8  ;;  %6969 = vmatprep.subr.msk.bf16.mxu1 %vm978_vm1, %v8209_v11  ;;  %v8227_v38 = vld [vmem:[%s11521_s6 + $0x74] ss:$8 sps:$4 sm:$0x3f]   ;;  %v8229_v44 = vld [vmem:[%s11521_s6 + $0x70] ss:$8 sps:$4 sm:$0x3f]  }
  0xe2   : > { %v1438_v48 = vsel %vm978_vm1, %v8229_v44, 0  ;;  %v8232_v49 = vld [vmem:[%s11521_s6 + $0x64] ss:$8 sps:$4 sm:$0xff]   ;;  %v8230_v52 = vld [vmem:[%s11521_s6 + $0x60] ss:$8 sps:$4 sm:$0xff]   ;;  %s11536_s22 = sld [smem:[#allocation54_spill]] }
  0xe3   : > { %7979 = vmatmul.mubr.msk.bf16.vlgmr.msra.gmra.mxu0 %vm974_vm2, %v8205_v9  ;;  %7987 = vmatmul.mubr.msk.bf16.vlgmr.msra.gmra.mxu1 %vm974_vm2, %v8206_v10  ;;  %v9637_v9 = vsub.s32 1, %v9631_v63  ;;  %v8280_v44 = vld [vmem:[%s11523_s5 + $0x64] ss:$8 sps:$4 sm:$0xff]   ;;  %s6676_s6 = scalar_lea.sflag [#allocation5], %s9493_s13  ;;  %p11537_p12 = scmp.ne.s32.totalorder %s11504_s4, 0 }
  0xe4   : > { %1126 = vmatpush1.bf16.msra.mxu0 %v1108_v14  ;;  %1196 = vmatpush1.bf16.msra.mxu1 %v1178_v15 }
  0xe5   : > { %1127 = vmatprep.subr.bf16.mxu0 %v8215_v16  ;;  %1197 = vmatprep.subr.bf16.mxu1 %v8218_v17 }
  0xe6   : > { %1145 = vmatprep.mubr.bf16.mxu0 %v9175_v20  ;;  %1215 = vmatprep.mubr.bf16.mxu1 %v9175_v20 }
  0xe8   : > { %1128 = vmatpush1.bf16.msra.mxu0 %v8213_v18  ;;  %1198 = vmatpush1.bf16.msra.mxu1 %v8216_v19 }
  0xe9   : > { %7990 = vmatprep.subr.bf16.mxu0 %v9173_v0  ;;  %6983 = vmatprep.subr.msk.bf16.mxu1 %vm978_vm1, %v8221_v33 }
 0x1a3   : > { %v1016_v21 = vpop.f32.mrf.mxu0  ;;  %v1073_v22 = vpop.f32.mrf.mxu1 }
 0x1a5   : > { %v7980_v23 = vpop.f32.mrf.mxu0  ;;  %v7988_v24 = vpop.f32.mrf.mxu1 }
 0x1a7   : > { %v1019_v25 = vpop.f32.mrf.mxu0  ;;  %v1076_v26 = vpop.f32.mrf.mxu1 }
 0x1a8   : > { %v1023_v27 = vpack.c.bf16 %v1019_v25, %v1016_v21  ;;  %v1080_v28 = vpack.c.bf16 %v1076_v26, %v1073_v22 }
 0x1a9   : > { %v7989_v29 = vpop.f32.mrf.mxu1  ;;  %v7981_v30 = vpop.f32.mrf.mxu0 }
 0x1aa   : > { %6964 = vmatmul.mubr.msk.bf16.vlgmr.msra.gmra.mxu0 %vm974_vm2, %v1080_v28  ;;  %6970 = vmatmul.mubr.msk.bf16.vlgmr.msra.gmra.mxu1 %vm974_vm2, %v1023_v27 }
 0x1ab   : > { %7991 = vmatpush3.bf16.msra.mxu0 %v980_v6  ;;  %7994 = vmatprep.mubr.msk.bf16.mxu0 %vm9174_vm0, %v9173_v0 }
 0x1ac   : > { %7992 = vmatprep.subr.bf16.mxu0 %v9173_v0  ;;  %1343 = vmatprep.mubr.bf16.mxu1 %v9175_v20 }
 0x1ad   : > { %1324 = vmatpush1.bf16.msra.mxu1 %v1306_v35 }
 0x1ae   : > { %1325 = vmatprep.subr.bf16.mxu1 %v8226_v36  ;;  %v8235_v36 = vld [vmem:[%s11523_s5 + $0x154] ss:$8 sps:$4 sm:$0xff]  }
 0x1af   : > { %7993 = vmatpush3.bf16.msra.mxu0 %v965_v7 }
 0x1b0   : > { %7998 = vmatprep.subr.bf16.mxu0 %v9173_v0 }
 0x1b1   : > { %1326 = vmatpush1.bf16.msra.mxu1 %v8224_v37  ;;  %v8277_v37 = vld [vmem:[%s11523_s5 + $0x74] ss:$8 sps:$4 sm:$0xff]  }
 0x1b2   : > { %7995 = vmatmul.mubr.msk.bf16.vlgmr.msra.gmra.mxu0 %vm974_vm2, %v8219_v31  ;;  %6997 = vmatprep.subr.msk.bf16.mxu1 %vm978_vm1, %v8227_v38 }
 0x1b3   : > { %7999 = vmatpush3.bf16.msra.mxu0 %v980_v6  ;;  %8002 = vmatprep.mubr.msk.bf16.mxu0 %vm9174_vm0, %v9173_v0  ;;  %v1490_v6 = vld [vmem:[#allocation6] sm:$0x3] }
 0x1b4   : > { %8000 = vmatprep.subr.bf16.mxu0 %v9173_v0  ;;  %v1495_v14 = vrot.slane %v1490_v6, %v9634_v4  ;;  %v1499_v19 = vrot.slane %v1490_v6, %v9637_v9  ;;  %v8293_v6 = vld [vmem:[%s11523_s5 + $0x10] ss:$8 sps:$4 sm:$0xff]  }
 0x1b7   : > { %8001 = vmatpush3.bf16.msra.mxu0 %v965_v7 }
 0x1ba   : > { %8003 = vmatmul.mubr.msk.bf16.vlgmr.msra.gmra.mxu0 %vm974_vm2, %v8220_v32 }
 0x1bb   : > { %1556 = vmatprep.mubr.bf16.mxu0 %v9175_v20 }
 0x26a   : > { %v1147_v39 = vpop.f32.mrf.mxu0  ;;  %v1217_v57 = vpop.f32.mrf.mxu1 }
 0x26b   : > { %v1218_v3 = vadd.f32 %v1217_v57, %v1147_v39  ;;  %v1512_v39 = vld [vmem:[%s11524_s0] sm:$0xf]  ;;  %v8245_v57 = vld [vmem:[%s11523_s5 + $0x110] ss:$8 sps:$4 sm:$0xff]  }
 0x26c   : > { %v1149_v40 = vpop.f32.mrf.mxu0  ;;  %v1219_v58 = vpop.f32.mrf.mxu1 }
 0x26d   : > { %v1220_v7 = vadd.f32 %v1219_v58, %v1149_v40  ;;  %v7001_v40 = vld [vmem:[%s11524_s0 + $0x4] sm:$0xf]  ;;  %v8287_v58 = vld [vmem:[%s11523_s5 + $0x30] ss:$8 sps:$4 sm:$0xff]  }
 0x26e   : > { %v1151_v41 = vpop.f32.mrf.mxu0  ;;  %v1221_v59 = vpop.f32.mrf.mxu1 }
 0x26f   : > { %v1222_v11 = vadd.f32 %v1221_v59, %v1151_v41  ;;  %v8233_v41 = vld [vmem:[%s11523_s5 + $0x150] ss:$8 sps:$4 sm:$0xff]   ;;  %v8250_v59 = vld [vmem:[%s11523_s5 + $0x104] ss:$8 sps:$4 sm:$0xff]  }
 0x270   : > { %v1153_v42 = vpop.f32.mrf.mxu0  ;;  %v1223_v61 = vpop.f32.mrf.mxu1 }
 0x271   : > { %v1224_v16 = vadd.f32 %v1223_v61, %v1153_v42  ;;  %v8275_v42 = vld [vmem:[%s11523_s5 + $0x70] ss:$8 sps:$4 sm:$0xff]   ;;  %v8292_v61 = vld [vmem:[%s11523_s5 + $0x24] ss:$8 sps:$4 sm:$0xff]  }
 0x272   : > { %v1271_v43 = vpop.f32.mrf.mxu0 }
 0x274   : > { %v7996_v45 = vpop.f32.mrf.mxu0 }
 0x275   : > { %v8236_v45 = vld [vmem:[%s11523_s5 + $0x140] ss:$8 sps:$4 sm:$0xff]  }
 0x276   : > { %v1274_v46 = vpop.f32.mrf.mxu0 }
 0x277   : > { %v1278_v47 = vpack.c.bf16 %v1274_v46, %v1271_v43  ;;  %v8238_v43 = vld [vmem:[%s11523_s5 + $0x144] ss:$8 sps:$4 sm:$0xff]   ;;  %v8278_v46 = vld [vmem:[%s11523_s5 + $0x60] ss:$8 sps:$4 sm:$0xff]  }
 0x278   : > { %v7997_v50 = vpop.f32.mrf.mxu0 }
 0x279   : > { %6984 = vmatmul.mubr.msk.bf16.vlgmr.msra.gmra.mxu1 %vm974_vm2, %v1278_v47  ;;  %v8241_v47 = vld [vmem:[%s11523_s5 + $0x134] ss:$8 sps:$4 sm:$0xff]   ;;  %v8281_v50 = vld [vmem:[%s11523_s5 + $0x50] ss:$8 sps:$4 sm:$0xff]  }
 0x27a   : > { %v1403_v51 = vpop.f32.mrf.mxu0  ;;  %1456 = vmatpush1.bf16.msra.mxu1 %v1438_v48  ;;  %1475 = vmatprep.mubr.bf16.mxu1 %v9175_v20  ;;  %v8283_v48 = vld [vmem:[%s11523_s5 + $0x54] ss:$8 sps:$4 sm:$0xff]  }
 0x27b   : > { %1457 = vmatprep.subr.bf16.mxu1 %v8232_v49  ;;  %v8239_v49 = vld [vmem:[%s11523_s5 + $0x130] ss:$8 sps:$4 sm:$0xff]  }
 0x27c   : > { %v8004_v53 = vpop.f32.mrf.mxu0 }
 0x27d   : > { %v8242_v53 = vld [vmem:[%s11523_s5 + $0x120] ss:$8 sps:$4 sm:$0xff]  }
 0x27e   : > { %v1406_v54 = vpop.f32.mrf.mxu0  ;;  %1458 = vmatpush1.bf16.msra.mxu1 %v8230_v52  ;;  %v8286_v52 = vld [vmem:[%s11523_s5 + $0x44] ss:$8 sps:$4 sm:$0xff]  }
 0x27f   : > { %v1410_v55 = vpack.c.bf16 %v1406_v54, %v1403_v51  ;;  %v8244_v51 = vld [vmem:[%s11523_s5 + $0x124] ss:$8 sps:$4 sm:$0xff]   ;;  %v8284_v54 = vld [vmem:[%s11523_s5 + $0x40] ss:$8 sps:$4 sm:$0xff]  }
 0x280   : > { %v8005_v56 = vpop.f32.mrf.mxu0 }
 0x281   : > { %6998 = vmatmul.mubr.msk.bf16.vlgmr.msra.gmra.mxu1 %vm974_vm2, %v1410_v55  ;;  %v8247_v55 = vld [vmem:[%s11523_s5 + $0x114] ss:$8 sps:$4 sm:$0xff]  }
 0x282   : > { %1632 = vmatprep.mubr.bf16.mxu1 %v9175_v20  ;;  %v8289_v56 = vld [vmem:[%s11523_s5 + $0x34] ss:$8 sps:$4 sm:$0xff]  }
 0x339   : > { %v1345_v62 = vpop.f32.mrf.mxu1 }
 0x33a   : > { %v1354_v8 = vadd.f32 %v1345_v62, %v1218_v3  ;;  %v8248_v62 = vld [vmem:[%s11523_s5 + $0x100] ss:$8 sps:$4 sm:$0xff]   ;;  %v8295_v3 = vld [vmem:[%s11523_s5 + $0x14] ss:$8 sps:$4 sm:$0xff]  }
 0x33b   : > { %v1347_v1 = vpop.f32.mrf.mxu1 }
 0x33c   : > { %v1355_v12 = vadd.f32 %v1347_v1, %v1220_v7  ;;  %v8290_v1 = vld [vmem:[%s11523_s5 + $0x20] ss:$8 sps:$4 sm:$0xff]   ;;  %v8256_v7 = vld [vmem:[%s11523_s5 + $0xe4] ss:$8 sps:$4 sm:$0xff]  }
 0x33d   : > { %v1349_v2 = vpop.f32.mrf.mxu1 }
 0x33e   : > { %v1356_v17 = vadd.f32 %v1349_v2, %v1222_v11  ;;  %v8253_v2 = vld [vmem:[%s11523_s5 + $0xf4] ss:$8 sps:$4 sm:$0xff]   ;;  %v8296_v11 = vld [vmem:[%s11523_s5] ss:$8 sps:$4 sm:$0xff]  }
 0x33f   : > { %v1351_v5 = vpop.f32.mrf.mxu1 }
 0x340   : > { %v1357_v22 = vadd.f32 %v1351_v5, %v1224_v16  ;;  %v8251_v5 = vld [vmem:[%s11523_s5 + $0xf0] ss:$8 sps:$4 sm:$0xff]   ;;  %v8262_v16 = vld [vmem:[%s11523_s5 + $0x1a4] ss:$8 sps:$4 sm:$0xff]  }
 0x341   : > { %v1477_v10 = vpop.f32.mrf.mxu1 }
 0x342   : > { %v1486_v13 = vadd.f32 %v1477_v10, %v1354_v8  ;;  %v8298_v8 = vld [vmem:[%s11523_s5 + $0x4] ss:$8 sps:$4 sm:$0xff]   ;;  %v8254_v10 = vld [vmem:[%s11523_s5 + $0xe0] ss:$8 sps:$4 sm:$0xff]  }
 0x343   : > { %v1479_v15 = vpop.f32.mrf.mxu1 }
 0x344   : > { %v1487_v18 = vadd.f32 %v1479_v15, %v1355_v12  ;;  %v1502_v23 = vadd.f32 %v1495_v14, %v1486_v13  ;;  %v8259_v12 = vld [vmem:[%s11523_s5 + $0x1b4] ss:$8 sps:$4 sm:$0xff]   ;;  %v8299_v15 = vld [vmem:[%s11523_s5 + $0xd0] ss:$8 sps:$4 sm:$0xff]  }
 0x345   : > { %v1481_v21 = vpop.f32.mrf.mxu1  ;;  %v8301_v13 = vld [vmem:[%s11523_s5 + $0xd4] ss:$8 sps:$4 sm:$0xff]  }
 0x346   : > { %v1488_v24 = vadd.f32 %v1481_v21, %v1356_v17  ;;  %v1503_v26 = vadd.f32 %v1499_v19, %v1487_v18  ;;  %v1506_v29 = vmax.f32 %v1502_v23, 0.0  ;;  %v8304_v17 = vld [vmem:[%s11523_s5 + $0xc4] ss:$8 sps:$4 sm:$0xff]   ;;  %v8260_v18 = vld [vmem:[%s11523_s5 + $0x1a0] ss:$8 sps:$4 sm:$0xff]  }
 0x347   : > { %v1483_v25 = vpop.f32.mrf.mxu1  ;;  %v8265_v21 = vld [vmem:[%s11523_s5 + $0x194] ss:$8 sps:$4 sm:$0xff]   ;;  %v8263_v23 = vld [vmem:[%s11523_s5 + $0x190] ss:$8 sps:$4 sm:$0xff]  }
 0x348   : > { %v1504_v27 = vadd.f32 %v1495_v14, %v1488_v24  ;;  %v1489_v28 = vadd.f32 %v1483_v25, %v1357_v22  ;;  %v1507_v32 = vmax.f32 %v1503_v26, 0.0  ;;  %v8257_v14 = vld [vmem:[%s11523_s5 + $0x1b0] ss:$8 sps:$4 sm:$0xff]   ;;  %v8307_v22 = vld [vmem:[%s11523_s5 + $0xb4] ss:$8 sps:$4 sm:$0xff]  }
 0x349   : > { %v8305_v24 = vld [vmem:[%s11523_s5 + $0xb0] ss:$8 sps:$4 sm:$0xff]   ;;  %v8268_v25 = vld [vmem:[%s11523_s5 + $0x184] ss:$8 sps:$4 sm:$0xff]  }
 0x34a   : > { %v1508_v30 = vmax.f32 %v1504_v27, 0.0  ;;  %v1505_v31 = vadd.f32 %v1499_v19, %v1489_v28  ;;  %v8302_v19 = vld [vmem:[%s11523_s5 + $0xc0] ss:$8 sps:$4 sm:$0xff]   ;;  %v8310_v26 = vld [vmem:[%s11523_s5 + $0xa4] ss:$8 sps:$4 sm:$0xff]  }
 0x34b   : > { %v8266_v27 = vld [vmem:[%s11523_s5 + $0x180] ss:$8 sps:$4 sm:$0xff]  }
 0x34c   : > { %v1510_v33 = vpack.c.bf16 %v1508_v30, %v1506_v29  ;;  %v1509_v34 = vmax.f32 %v1505_v31, 0.0  ;;  %v8308_v28 = vld [vmem:[%s11523_s5 + $0xa0] ss:$8 sps:$4 sm:$0xff]   ;;  %v8271_v29 = vld [vmem:[%s11523_s5 + $0x174] ss:$8 sps:$4 sm:$0xff]  }
 0x34d   : > { %v8313_v30 = vld [vmem:[%s11523_s5 + $0x94] ss:$8 sps:$4 sm:$0xff]   ;;  %v8269_v31 = vld [vmem:[%s11523_s5 + $0x170] ss:$8 sps:$4 sm:$0xff]  }
 0x34e   : > { %v9641_v35 = vpack.c.bf16 %v1509_v34, %v1507_v32  ;;  %v9654_v38 = vsel %vm1517_vm3, %v1510_v33, 0  ;;  %v8311_v32 = vld [vmem:[%s11523_s5 + $0x90] ss:$8 sps:$4 sm:$0xff]   ;;  %v8274_v33 = vld [vmem:[%s11523_s5 + $0x164] ss:$8 sps:$4 sm:$0xff]  }
 0x34f   : > { %v8272_v34 = vld [vmem:[%s11523_s5 + $0x160] ss:$8 sps:$4 sm:$0xff]  }
 0x350   : > { %6999 = vmatprep.subr.msk.bf16.mxu0 %vm1517_vm3, %v9641_v35  ;;  %7002 = vmatprep.subr.msk.bf16.mxu1 %vm1517_vm3, %v9641_v35 }
 0x351   : > { %1539 = vmatpush1.bf16.msra.mxu0 %v9654_v38  ;;  %1615 = vmatpush1.bf16.msra.mxu1 %v9654_v38 }
 0x352   : > { %1816 = vmatprep.subr.bf16.mxu0 %v8235_v36  ;;  %2000 = vmatprep.subr.bf16.mxu1 %v8277_v37  ;;  %v8316_v36 = vld [vmem:[%s11523_s5 + $0x84] ss:$8 sps:$4 sm:$0xff]   ;;  %v8314_v37 = vld [vmem:[%s11523_s5 + $0x80] ss:$8 sps:$4 sm:$0xff]  }
 0x354   : > { %7000 = vmatmul.mubr.msk.bf16.vlgmr.msra.gmra.mxu0 %vm1513_vm4, %v1512_v39  ;;  %7003 = vmatmul.mubr.msk.bf16.vlgmr.msra.gmra.mxu1 %vm1513_vm4, %v7001_v40  ;;  %v8319_v39 = vld [vmem:[%s11523_s5 + $0x234] ss:$8 sps:$4 sm:$0xff]  }
 0x355   : > { %1817 = vmatpush1.bf16.msra.mxu0 %v8233_v41  ;;  %2001 = vmatpush1.bf16.msra.mxu1 %v8275_v42 }
 0x356   : > { %1818 = vmatprep.subr.bf16.mxu0 %v8238_v43  ;;  %2002 = vmatprep.subr.bf16.mxu1 %v8280_v44 }
 0x359   : > { %1819 = vmatpush1.bf16.msra.mxu0 %v8236_v45  ;;  %2003 = vmatpush1.bf16.msra.mxu1 %v8278_v46 }
 0x35a   : > { %1820 = vmatprep.subr.bf16.mxu0 %v8241_v47  ;;  %2004 = vmatprep.subr.bf16.mxu1 %v8283_v48 }
 0x35d   : > { %1821 = vmatpush1.bf16.msra.mxu0 %v8239_v49  ;;  %2005 = vmatpush1.bf16.msra.mxu1 %v8281_v50  ;;  %v8317_v50 = vld [vmem:[%s11523_s5 + $0x230] ss:$8 sps:$4 sm:$0xff]  }
 0x35e   : > { %1822 = vmatprep.subr.bf16.mxu0 %v8244_v51  ;;  %2006 = vmatprep.subr.bf16.mxu1 %v8286_v52  ;;  %v8322_v51 = vld [vmem:[%s11523_s5 + $0x224] ss:$8 sps:$4 sm:$0xff]  }
 0x361   : > { %1823 = vmatpush1.bf16.msra.mxu0 %v8242_v53  ;;  %2007 = vmatpush1.bf16.msra.mxu1 %v8284_v54  ;;  %v8320_v54 = vld [vmem:[%s11523_s5 + $0x220] ss:$8 sps:$4 sm:$0xff]  }
 0x362   : > { %1824 = vmatprep.subr.bf16.mxu0 %v8247_v55  ;;  %2008 = vmatprep.subr.bf16.mxu1 %v8289_v56  ;;  %v8325_v55 = vld [vmem:[%s11523_s5 + $0x214] ss:$8 sps:$4 sm:$0xff]   ;;  %v7090_v56 = vld [vmem:[%s11524_s0 + $0x8] sm:$0xf] }
 0x365   : > { %1825 = vmatpush1.bf16.msra.mxu0 %v8245_v57  ;;  %2009 = vmatpush1.bf16.msra.mxu1 %v8287_v58  ;;  %v8323_v57 = vld [vmem:[%s11523_s5 + $0x210] ss:$8 sps:$4 sm:$0xff]   ;;  %v8331_v58 = vld [vmem:[%s11523_s5 + $0x204] ss:$8 sps:$4 sm:$0xff]  }
 0x366   : > { %1826 = vmatprep.subr.bf16.mxu0 %v8250_v59  ;;  %2010 = vmatprep.subr.bf16.mxu1 %v8292_v61  ;;  %v8329_v59 = vld [vmem:[%s11523_s5 + $0x200] ss:$8 sps:$4 sm:$0xff]   ;;  %v8337_v61 = vld [vmem:[%s11523_s5 + $0x1f4] ss:$8 sps:$4 sm:$0xff]  }
 0x369   : > { %1827 = vmatpush1.bf16.msra.mxu0 %v8248_v62  ;;  %2011 = vmatpush1.bf16.msra.mxu1 %v8290_v1  ;;  %v7150_v62 = vld [vmem:[%s11524_s0 + $0xc] sm:$0xf] }
 0x36a   : > { %1828 = vmatprep.subr.bf16.mxu0 %v8253_v2  ;;  %2012 = vmatprep.subr.bf16.mxu1 %v8295_v3  ;;  %v8334_v1 = vld [vmem:[%s11523_s5 + $0x304] ss:$8 sps:$4 sm:$0xff]   ;;  %v8335_v2 = vld [vmem:[%s11523_s5 + $0x1f0] ss:$8 sps:$4 sm:$0xff]  }
 0x36b   : > { %v8343_v3 = vld [vmem:[%s11523_s5 + $0x1e4] ss:$8 sps:$4 sm:$0xff]  }
 0x36d   : > { %1829 = vmatpush1.bf16.msra.mxu0 %v8251_v5  ;;  %2013 = vmatpush1.bf16.msra.mxu1 %v8293_v6  ;;  %v8332_v5 = vld [vmem:[%s11523_s5 + $0x300] ss:$8 sps:$4 sm:$0xff]   ;;  %v8340_v6 = vld [vmem:[%s11523_s5 + $0x2f4] ss:$8 sps:$4 sm:$0xff]  }
 0x36e   : > { %1830 = vmatprep.subr.bf16.mxu0 %v8256_v7  ;;  %2014 = vmatprep.subr.bf16.mxu1 %v8298_v8  ;;  %v8341_v7 = vld [vmem:[%s11523_s5 + $0x1e0] ss:$8 sps:$4 sm:$0xff]   ;;  %v8349_v8 = vld [vmem:[%s11523_s5 + $0x1d4] ss:$8 sps:$4 sm:$0xff]  }
 0x371   : > { %1831 = vmatpush1.bf16.msra.mxu0 %v8254_v10  ;;  %2015 = vmatpush1.bf16.msra.mxu1 %v8296_v11  ;;  %v8338_v10 = vld [vmem:[%s11523_s5 + $0x2f0] ss:$8 sps:$4 sm:$0xff]   ;;  %v8346_v11 = vld [vmem:[%s11523_s5 + $0x2e4] ss:$8 sps:$4 sm:$0xff]  }
 0x372   : > { %1836 = vmatprep.subr.bf16.mxu0 %v8259_v12  ;;  %2020 = vmatprep.subr.bf16.mxu1 %v8301_v13  ;;  %v8347_v12 = vld [vmem:[%s11523_s5 + $0x1d0] ss:$8 sps:$4 sm:$0xff]   ;;  %v8355_v13 = vld [vmem:[%s11523_s5 + $0x1c4] ss:$8 sps:$4 sm:$0xff]  }
 0x375   : > { %1837 = vmatpush2.bf16.msra.mxu0 %v8257_v14  ;;  %2021 = vmatpush2.bf16.msra.mxu1 %v8299_v15  ;;  %v8344_v14 = vld [vmem:[%s11523_s5 + $0x2e0] ss:$8 sps:$4 sm:$0xff]   ;;  %v8352_v15 = vld [vmem:[%s11523_s5 + $0x2d4] ss:$8 sps:$4 sm:$0xff]  }
 0x376   : > { %1838 = vmatprep.subr.bf16.mxu0 %v8262_v16  ;;  %2022 = vmatprep.subr.bf16.mxu1 %v8304_v17  ;;  %v8353_v16 = vld [vmem:[%s11523_s5 + $0x1c0] ss:$8 sps:$4 sm:$0xff]   ;;  %v8361_v17 = vld [vmem:[%s11523_s5 + $0x294] ss:$8 sps:$4 sm:$0xff]  }
 0x379   : > { %1839 = vmatpush2.bf16.msra.mxu0 %v8260_v18  ;;  %2023 = vmatpush2.bf16.msra.mxu1 %v8302_v19  ;;  %v8350_v18 = vld [vmem:[%s11523_s5 + $0x2d0] ss:$8 sps:$4 sm:$0xff]   ;;  %v8358_v19 = vld [vmem:[%s11523_s5 + $0x2c4] ss:$8 sps:$4 sm:$0xff]  }
 0x37a   : > { %1840 = vmatprep.subr.bf16.mxu0 %v8265_v21  ;;  %2024 = vmatprep.subr.bf16.mxu1 %v8307_v22  ;;  %v8359_v21 = vld [vmem:[%s11523_s5 + $0x290] ss:$8 sps:$4 sm:$0xff]   ;;  %v8367_v22 = vld [vmem:[%s11523_s5 + $0x284] ss:$8 sps:$4 sm:$0xff]  }
 0x37d   : > { %1841 = vmatpush2.bf16.msra.mxu0 %v8263_v23  ;;  %2025 = vmatpush2.bf16.msra.mxu1 %v8305_v24  ;;  %v8356_v23 = vld [vmem:[%s11523_s5 + $0x2c0] ss:$8 sps:$4 sm:$0xff]   ;;  %v8364_v24 = vld [vmem:[%s11523_s5 + $0x2b4] ss:$8 sps:$4 sm:$0xff]  }
 0x37e   : > { %1842 = vmatprep.subr.bf16.mxu0 %v8268_v25  ;;  %2026 = vmatprep.subr.bf16.mxu1 %v8310_v26  ;;  %v8365_v25 = vld [vmem:[%s11523_s5 + $0x280] ss:$8 sps:$4 sm:$0xff]   ;;  %v8373_v26 = vld [vmem:[%s11523_s5 + $0x274] ss:$8 sps:$4 sm:$0xff]  }
 0x381   : > { %1843 = vmatpush2.bf16.msra.mxu0 %v8266_v27  ;;  %2027 = vmatpush2.bf16.msra.mxu1 %v8308_v28  ;;  %v8362_v27 = vld [vmem:[%s11523_s5 + $0x2b0] ss:$8 sps:$4 sm:$0xff]   ;;  %v8370_v28 = vld [vmem:[%s11523_s5 + $0x2a4] ss:$8 sps:$4 sm:$0xff]  }
 0x382   : > { %1844 = vmatprep.subr.bf16.mxu0 %v8271_v29  ;;  %2028 = vmatprep.subr.bf16.mxu1 %v8313_v30  ;;  %v8371_v29 = vld [vmem:[%s11523_s5 + $0x270] ss:$8 sps:$4 sm:$0xff]   ;;  %v8368_v30 = vld [vmem:[%s11523_s5 + $0x2a0] ss:$8 sps:$4 sm:$0xff]  }
 0x385   : > { %1845 = vmatpush2.bf16.msra.mxu0 %v8269_v31  ;;  %2029 = vmatpush2.bf16.msra.mxu1 %v8311_v32  ;;  %v8376_v31 = vld [vmem:[%s11523_s5 + $0x374] ss:$8 sps:$4 sm:$0xff]   ;;  %v8374_v32 = vld [vmem:[%s11523_s5 + $0x370] ss:$8 sps:$4 sm:$0xff]  }
 0x386   : > { %1846 = vmatprep.subr.bf16.mxu0 %v8274_v33  ;;  %2030 = vmatprep.subr.bf16.mxu1 %v8316_v36  ;;  %v8379_v33 = vld [vmem:[%s11523_s5 + $0x264] ss:$8 sps:$4 sm:$0xff]   ;;  %v8377_v36 = vld [vmem:[%s11523_s5 + $0x260] ss:$8 sps:$4 sm:$0xff]  }
 0x389   : > { %1847 = vmatpush2.bf16.msra.mxu0 %v8272_v34  ;;  %2031 = vmatpush2.bf16.msra.mxu1 %v8314_v37  ;;  %v8382_v34 = vld [vmem:[%s11523_s5 + $0x364] ss:$8 sps:$4 sm:$0xff]   ;;  %v8380_v37 = vld [vmem:[%s11523_s5 + $0x360] ss:$8 sps:$4 sm:$0xff]  }
 0x38a   : > { %7091 = vmatprep.subr.msk.bf16.mxu0 %vm1517_vm3, %v9641_v35  ;;  %2261 = vmatprep.subr.bf16.mxu1 %v8319_v39  ;;  %v8385_v39 = vld [vmem:[%s11523_s5 + $0x254] ss:$8 sps:$4 sm:$0xff]  }
 0x414   : > { %v1558_v40 = vpop.f32.mrf.mxu0  ;;  %v1634_v41 = vpop.f32.mrf.mxu1 }
 0x415   : > { %v1565_v42 = vpack.c.bf16 %v1558_v40, %v1558_v40  ;;  %v1641_v47 = vpack.c.bf16 %v1634_v41, %v1634_v41  ;;  %v8388_v40 = vld [vmem:[%s11523_s5 + $0x354] ss:$8 sps:$4 sm:$0xff]   ;;  %v8383_v41 = vld [vmem:[%s11523_s5 + $0x250] ss:$8 sps:$4 sm:$0xff]  }
 0x416   : > { %v1560_v43 = vpop.f32.mrf.mxu0  ;;  %v1636_v44 = vpop.f32.mrf.mxu1 }
 0x417   : > { %v1566_v45 = vpack.c.bf16 %v1560_v43, %v1560_v43  ;;  %v1642_v46 = vpack.c.bf16 %v1636_v44, %v1636_v44  ;;  %v8391_v43 = vld [vmem:[%s11523_s5 + $0x244] ss:$8 sps:$4 sm:$0xff]  }
 0x418   : > { %v1638_v48 = vpop.f32.mrf.mxu1  ;;  %v1562_v49 = vpop.f32.mrf.mxu0  ;;  %v8394_v44 = vld [vmem:[%s11523_s5 + $0x344] ss:$8 sps:$4 sm:$0xff]  }
 0x419   : > { %7060 = vmatprep.mubr.msk.bf16.mxu0 %vm1812_vm5, %v1642_v46  ;;  %7089 = vmatprep.mubr.msk.bf16.mxu1 %vm1812_vm5, %v1566_v45  ;;  %v8389_v45 = vld [vmem:[%s11523_s5 + $0x240] ss:$8 sps:$4 sm:$0xff]   ;;  %v8395_v48 = vld [vmem:[%s11523_s5 + $0x330] ss:$8 sps:$4 sm:$0xff]   ;;  %v8400_v49 = vld [vmem:[%s11523_s5 + $0x324] ss:$8 sps:$4 sm:$0xff]  }
 0x41a   : > { %v1639_v52 = vpop.f32.mrf.mxu1  ;;  %1849 = vmatmul.mubr.bf16.vlgmr.msra.gmra.mxu0 %v1641_v47  ;;  %2033 = vmatmul.mubr.bf16.vlgmr.msra.gmra.mxu1 %v1565_v42  ;;  %v1563_v53 = vpop.f32.mrf.mxu0  ;;  %v8386_v42 = vld [vmem:[%s11523_s5 + $0x350] ss:$8 sps:$4 sm:$0xff]   ;;  %v8392_v46 = vld [vmem:[%s11523_s5 + $0x340] ss:$8 sps:$4 sm:$0xff]   ;;  %v8397_v47 = vld [vmem:[%s11523_s5 + $0x334] ss:$8 sps:$4 sm:$0xff]  }
 0x41b   : > { %2061 = vmatpush1.bf16.msra.mxu0 %v9654_v38  ;;  %2078 = vmatprep.mubr.bf16.mxu0 %v9175_v20 }
 0x41c   : > { %7151 = vmatprep.subr.msk.bf16.mxu0 %vm1517_vm3, %v9641_v35  ;;  %2262 = vmatpush1.bf16.msra.mxu1 %v8317_v50  ;;  %v8328_v35 = vld [vmem:[%s11523_s5 + $0x314] ss:$8 sps:$4 sm:$0xff]   ;;  %v8398_v50 = vld [vmem:[%s11523_s5 + $0x320] ss:$8 sps:$4 sm:$0xff]  }
 0x41d   : > { %2263 = vmatprep.subr.bf16.mxu1 %v8322_v51 }
 0x420   : > { %2264 = vmatpush1.bf16.msra.mxu1 %v8320_v54 }
 0x421   : > { %2265 = vmatprep.subr.bf16.mxu1 %v8325_v55 }
 0x422   : > { %7092 = vmatmul.mubr.msk.bf16.vlgmr.msra.gmra.mxu0 %vm1513_vm4, %v7090_v56 }
 0x423   : > { %2324 = vmatpush1.bf16.msra.mxu0 %v9654_v38  ;;  %2341 = vmatprep.mubr.bf16.mxu0 %v9175_v20  ;;  %v8326_v38 = vld [vmem:[%s11523_s5 + $0x310] ss:$8 sps:$4 sm:$0xff]   ;;  %s11535_s5 = scalar_lea.vmem [#allocation20], %s9493_s13 }
 0x424   : > { %2524 = vmatprep.subr.bf16.mxu0 %v8328_v35  ;;  %2266 = vmatpush1.bf16.msra.mxu1 %v8323_v57  ;;  %s6695_s30 = sshll.u32 %s11535_s5, 4  ;;  %s6696_s30 = int_to_ptr.vmem [resolvable:$true] %s6695_s30 }
 0x425   : > { %2267 = vmatprep.subr.bf16.mxu1 %v8331_v58 }
 0x428   : > { %2268 = vmatpush1.bf16.msra.mxu1 %v8329_v59 }
 0x429   : > { %2269 = vmatprep.subr.bf16.mxu1 %v8337_v61 }
 0x42a   : > { %7152 = vmatmul.mubr.msk.bf16.vlgmr.msra.gmra.mxu0 %vm1513_vm4, %v7150_v62 }
 0x42b   : > { %2525 = vmatpush1.bf16.msra.mxu0 %v8326_v38 }
 0x42c   : > { %2526 = vmatprep.subr.bf16.mxu0 %v8334_v1  ;;  %2270 = vmatpush1.bf16.msra.mxu1 %v8335_v2  ;;  %v8401_v1 = vld [vmem:[%s11525_s14 + $0x38] sm:$0xff]  }
 0x42d   : > { %2271 = vmatprep.subr.bf16.mxu1 %v8343_v3 }
 0x42f   : > { %2527 = vmatpush1.bf16.msra.mxu0 %v8332_v5 }
 0x430   : > { %2528 = vmatprep.subr.bf16.mxu0 %v8340_v6  ;;  %2272 = vmatpush1.bf16.msra.mxu1 %v8341_v7  ;;  %v8403_v6 = vld [vmem:[%s11525_s14 + $0x30] sm:$0xff]  }
 0x431   : > { %2273 = vmatprep.subr.bf16.mxu1 %v8349_v8 }
 0x433   : > { %2529 = vmatpush1.bf16.msra.mxu0 %v8338_v10 }
 0x434   : > { %2530 = vmatprep.subr.bf16.mxu0 %v8346_v11  ;;  %2274 = vmatpush1.bf16.msra.mxu1 %v8347_v12  ;;  %v8402_v11 = vld [vmem:[%s11525_s14 + $0xa8] sm:$0xff]  }
 0x435   : > { %2275 = vmatprep.subr.bf16.mxu1 %v8355_v13  ;;  %v8405_v12 = vld [vmem:[%s11525_s14 + $0x28] sm:$0xff]  }
 0x437   : > { %2531 = vmatpush1.bf16.msra.mxu0 %v8344_v14 }
 0x438   : > { %2532 = vmatprep.subr.bf16.mxu0 %v8352_v15  ;;  %2276 = vmatpush1.bf16.msra.mxu1 %v8353_v16  ;;  %v8404_v16 = vld [vmem:[%s11525_s14 + $0xa0] sm:$0xff]  }
 0x439   : > { %2281 = vmatprep.subr.bf16.mxu1 %v8361_v17  ;;  %v8407_v17 = vld [vmem:[%s11525_s14 + $0x20] sm:$0xff]  }
 0x43b   : > { %2533 = vmatpush1.bf16.msra.mxu0 %v8350_v18  ;;  %v8406_v18 = vld [vmem:[%s11525_s14 + $0x98] sm:$0xff]  }
 0x43c   : > { %2534 = vmatprep.subr.bf16.mxu0 %v8358_v19  ;;  %2282 = vmatpush2.bf16.msra.mxu1 %v8359_v21  ;;  %v8409_v19 = vld [vmem:[%s11525_s14 + $0x18] sm:$0xff]   ;;  %v8408_v21 = vld [vmem:[%s11525_s14 + $0x90] sm:$0xff]  }
 0x43d   : > { %2283 = vmatprep.subr.bf16.mxu1 %v8367_v22  ;;  %v8411_v22 = vld [vmem:[%s11525_s14 + $0x10] sm:$0xff]  }
 0x43f   : > { %2535 = vmatpush1.bf16.msra.mxu0 %v8356_v23  ;;  %v8410_v23 = vld [vmem:[%s11525_s14 + $0x88] sm:$0xff]  }
 0x440   : > { %2536 = vmatprep.subr.bf16.mxu0 %v8364_v24  ;;  %2284 = vmatpush2.bf16.msra.mxu1 %v8365_v25  ;;  %v8413_v24 = vld [vmem:[%s11525_s14 + $0x8] sm:$0xff]   ;;  %v8412_v25 = vld [vmem:[%s11525_s14 + $0x80] sm:$0xff]  }
 0x441   : > { %2285 = vmatprep.subr.bf16.mxu1 %v8373_v26  ;;  %v8415_v26 = vld [vmem:[%s11525_s14] sm:$0xff]  }
 0x443   : > { %2537 = vmatpush1.bf16.msra.mxu0 %v8362_v27  ;;  %v8414_v27 = vld [vmem:[%s11525_s14 + $0x78] sm:$0xff]  }
 0x444   : > { %2538 = vmatprep.subr.bf16.mxu0 %v8370_v28  ;;  %2286 = vmatpush2.bf16.msra.mxu1 %v8371_v29  ;;  %v8417_v28 = vld [vmem:[%s11525_s14 + $0x68] sm:$0xff]   ;;  %v8416_v29 = vld [vmem:[%s11525_s14 + $0x70] sm:$0xff]  }
 0x445   : > { %2287 = vmatprep.subr.bf16.mxu1 %v8379_v33  ;;  %v8421_v33 = vld [vmem:[%s11525_s14 + $0x58] sm:$0xff]  }
 0x447   : > { %2539 = vmatpush1.bf16.msra.mxu0 %v8368_v30  ;;  %v8418_v30 = vld [vmem:[%s11525_s14 + $0xd8] sm:$0xff]  }
 0x448   : > { %2544 = vmatprep.subr.bf16.mxu0 %v8376_v31  ;;  %2288 = vmatpush2.bf16.msra.mxu1 %v8377_v36  ;;  %v8419_v31 = vld [vmem:[%s11525_s14 + $0x60] sm:$0xff]   ;;  %v8423_v36 = vld [vmem:[%s11525_s14 + $0x50] sm:$0xff]  }
 0x449   : > { %2289 = vmatprep.subr.bf16.mxu1 %v8385_v39  ;;  %v8425_v39 = vld [vmem:[%s11525_s14 + $0x48] sm:$0xff]  }
 0x44b   : > { %2545 = vmatpush2.bf16.msra.mxu0 %v8374_v32  ;;  %v8420_v32 = vld [vmem:[%s11525_s14 + $0xd0] sm:$0xff]  }
 0x44c   : > { %2546 = vmatprep.subr.bf16.mxu0 %v8382_v34  ;;  %2290 = vmatpush2.bf16.msra.mxu1 %v8383_v41  ;;  %v8422_v34 = vld [vmem:[%s11525_s14 + $0xc8] sm:$0xff]   ;;  %v8427_v41 = vld [vmem:[%s11525_s14 + $0x40] sm:$0xff]  }
 0x44d   : > { %2291 = vmatprep.subr.bf16.mxu1 %v8391_v43 }
 0x44f   : > { %2547 = vmatpush2.bf16.msra.mxu0 %v8380_v37  ;;  %v8424_v37 = vld [vmem:[%s11525_s14 + $0xc0] sm:$0xff]  }
 0x450   : > { %2548 = vmatprep.subr.bf16.mxu0 %v8388_v40  ;;  %2292 = vmatpush2.bf16.msra.mxu1 %v8389_v45  ;;  %v8426_v40 = vld [vmem:[%s11525_s14 + $0xb8] sm:$0xff]  }
 0x451   : > { %2701 = vmatprep.subr.bf16.mxu1 %v9175_v20 }
 0x453   : > { %2549 = vmatpush2.bf16.msra.mxu0 %v8386_v42  ;;  %v8428_v42 = vld [vmem:[%s11525_s14 + $0xb0] sm:$0xff]  }
 0x454   : > { %2550 = vmatprep.subr.bf16.mxu0 %v8394_v44 }
 0x457   : > { %2551 = vmatpush2.bf16.msra.mxu0 %v8392_v46  ;;  %v2567_v46 = vld [vmem:[#allocation8] sm:$0x3] }
 0x458   : > { %2552 = vmatprep.subr.bf16.mxu0 %v8397_v47 }
 0x45b   : > { %2553 = vmatpush2.bf16.msra.mxu0 %v8395_v48 }
 0x45c   : > { %2554 = vmatprep.subr.bf16.mxu0 %v8400_v49  ;;  %v2572_v49 = vrot.slane %v2567_v46, %v9634_v4 }
 0x45f   : > { %2555 = vmatpush2.bf16.msra.mxu0 %v8398_v50 }
 0x460   : > { %2864 = vmatprep.subr.bf16.mxu0 %v9175_v20 }
 0x4da   : > { %v1850_v51 = vpop.f32.mrf.mxu0  ;;  %v2034_v52 = vpop.f32.mrf.mxu1 }
 0x4db   : > { %v10016_v53 = vadd.f32 %v2034_v52, %v1850_v51 }
 0x4dc   : > { %v1852_v54 = vpop.f32.mrf.mxu0  ;;  %v2036_v55 = vpop.f32.mrf.mxu1 }
 0x4dd   : > { %v10018_v56 = vadd.f32 %v2036_v55, %v1852_v54  ;;  %v2576_v54 = vrot.slane %v2567_v46, %v9637_v9  ;;  %v8461_v46 = vld [vmem:[%s11525_s14 + $0x1e8] sm:$0xff]  }
 0x4de   : > { %v1854_v57 = vpop.f32.mrf.mxu0  ;;  %v2038_v35 = vpop.f32.mrf.mxu1 }
 0x4e0   : > { %v1855_v58 = vpop.f32.mrf.mxu0  ;;  %v2039_v59 = vpop.f32.mrf.mxu1 }
 0x4e2   : > { %v2080_v61 = vpop.f32.mrf.mxu0 }
 0x4e3   : > { %v2087_v2 = vpack.c.bf16 %v2080_v61, %v2080_v61 }
 0x4e4   : > { %v2082_v62 = vpop.f32.mrf.mxu0 }
 0x4e5   : > { %v2088_v38 = vpack.c.bf16 %v2082_v62, %v2082_v62 }
 0x4e6   : > { %v2084_v3 = vpop.f32.mrf.mxu0 }
 0x4e7   : > { %7149 = vmatprep.mubr.msk.bf16.mxu1 %vm1812_vm5, %v2088_v38 }
 0x4e8   : > { %v2085_v5 = vpop.f32.mrf.mxu0  ;;  %2294 = vmatmul.mubr.bf16.vlgmr.msra.gmra.mxu1 %v2087_v2 }
 0x4e9   : > { %2702 = vmatpush1.bf16.msra.mxu1 %v8401_v1  ;;  %v8430_v5 = vld [vmem:[%s11525_s14 + $0x188] sm:$0xff]  }
 0x4ea   : > { %v2343_v7 = vpop.f32.mrf.mxu0  ;;  %2703 = vmatprep.subr.bf16.mxu1 %v9175_v20 }
 0x4eb   : > { %v2350_v13 = vpack.c.bf16 %v2343_v7, %v2343_v7 }
 0x4ec   : > { %v2345_v8 = vpop.f32.mrf.mxu0 }
 0x4ed   : > { %v2351_v10 = vpack.c.bf16 %v2345_v8, %v2345_v8  ;;  %2704 = vmatpush1.bf16.msra.mxu1 %v8403_v6  ;;  %v8431_v8 = vld [vmem:[%s11525_s14 + $0x110] sm:$0xff]  }
 0x4ee   : > { %v2347_v14 = vpop.f32.mrf.mxu0  ;;  %2705 = vmatprep.subr.bf16.mxu1 %v9175_v20 }
 0x4ef   : > { %7209 = vmatprep.mubr.msk.bf16.mxu0 %vm1812_vm5, %v2351_v10  ;;  %v8432_v10 = vld [vmem:[%s11525_s14 + $0x180] sm:$0xff]   ;;  %v8436_v14 = vld [vmem:[%s11525_s14 + $0x170] sm:$0xff]  }
 0x4f0   : > { %v2348_v15 = vpop.f32.mrf.mxu0  ;;  %2557 = vmatmul.mubr.bf16.vlgmr.msra.gmra.mxu0 %v2350_v13  ;;  %v8435_v13 = vld [vmem:[%s11525_s14 + $0x100] sm:$0xff]  }
 0x4f1   : > { %2865 = vmatpush1.bf16.msra.mxu0 %v8402_v11  ;;  %2706 = vmatpush1.bf16.msra.mxu1 %v8405_v12  ;;  %v8433_v11 = vld [vmem:[%s11525_s14 + $0x108] sm:$0xff]   ;;  %v8434_v12 = vld [vmem:[%s11525_s14 + $0x178] sm:$0xff]  }
 0x4f2   : > { %2866 = vmatprep.subr.bf16.mxu0 %v9175_v20  ;;  %2707 = vmatprep.subr.bf16.mxu1 %v9175_v20  ;;  %v8437_v15 = vld [vmem:[%s11525_s14 + $0xf8] sm:$0xff]  }
 0x4f5   : > { %2867 = vmatpush1.bf16.msra.mxu0 %v8404_v16  ;;  %2708 = vmatpush1.bf16.msra.mxu1 %v8407_v17  ;;  %v8438_v16 = vld [vmem:[%s11525_s14 + $0x168] sm:$0xff]   ;;  %v8439_v17 = vld [vmem:[%s11525_s14 + $0xf0] sm:$0xff]  }
 0x4f6   : > { %2868 = vmatprep.subr.bf16.mxu0 %v9175_v20  ;;  %2709 = vmatprep.subr.bf16.mxu1 %v9175_v20 }
 0x4f9   : > { %2869 = vmatpush1.bf16.msra.mxu0 %v8406_v18  ;;  %2710 = vmatpush1.bf16.msra.mxu1 %v8409_v19  ;;  %v8440_v18 = vld [vmem:[%s11525_s14 + $0x160] sm:$0xff]   ;;  %v8441_v19 = vld [vmem:[%s11525_s14 + $0xe8] sm:$0xff]  }
 0x4fa   : > { %2870 = vmatprep.subr.bf16.mxu0 %v9175_v20  ;;  %2711 = vmatprep.subr.bf16.mxu1 %v9175_v20 }
 0x4fd   : > { %2871 = vmatpush1.bf16.msra.mxu0 %v8408_v21  ;;  %2712 = vmatpush1.bf16.msra.mxu1 %v8411_v22  ;;  %v8442_v21 = vld [vmem:[%s11525_s14 + $0x158] sm:$0xff]   ;;  %v8443_v22 = vld [vmem:[%s11525_s14 + $0xe0] sm:$0xff]  }
 0x4fe   : > { %2872 = vmatprep.subr.bf16.mxu0 %v9175_v20  ;;  %2713 = vmatprep.subr.bf16.mxu1 %v9175_v20 }
 0x501   : > { %2873 = vmatpush1.bf16.msra.mxu0 %v8410_v23  ;;  %2714 = vmatpush1.bf16.msra.mxu1 %v8413_v24  ;;  %v8444_v23 = vld [vmem:[%s11525_s14 + $0x150] sm:$0xff]   ;;  %v8445_v24 = vld [vmem:[%s11525_s14 + $0x148] sm:$0xff]  }
 0x502   : > { %2874 = vmatprep.subr.bf16.mxu0 %v9175_v20  ;;  %2715 = vmatprep.subr.bf16.mxu1 %v9175_v20 }
 0x505   : > { %2875 = vmatpush1.bf16.msra.mxu0 %v8412_v25  ;;  %2716 = vmatpush1.bf16.msra.mxu1 %v8415_v26  ;;  %v8446_v25 = vld [vmem:[%s11525_s14 + $0x1b8] sm:$0xff]   ;;  %v8447_v26 = vld [vmem:[%s11525_s14 + $0x140] sm:$0xff]  }
 0x506   : > { %2876 = vmatprep.subr.bf16.mxu0 %v9175_v20  ;;  %2721 = vmatprep.subr.bf16.mxu1 %v9175_v20 }
 0x509   : > { %2877 = vmatpush1.bf16.msra.mxu0 %v8414_v27  ;;  %2722 = vmatpush2.bf16.msra.mxu1 %v8417_v28  ;;  %v8448_v27 = vld [vmem:[%s11525_s14 + $0x1b0] sm:$0xff]   ;;  %v8449_v28 = vld [vmem:[%s11525_s14 + $0x138] sm:$0xff]  }
 0x50a   : > { %2878 = vmatprep.subr.bf16.mxu0 %v9175_v20  ;;  %2723 = vmatprep.subr.bf16.mxu1 %v9175_v20 }
 0x50d   : > { %2879 = vmatpush1.bf16.msra.mxu0 %v8416_v29  ;;  %2724 = vmatpush2.bf16.msra.mxu1 %v8419_v31  ;;  %v8450_v29 = vld [vmem:[%s11525_s14 + $0x1a8] sm:$0xff]   ;;  %v8452_v31 = vld [vmem:[%s11525_s14 + $0x1a0] sm:$0xff]  }
 0x50e   : > { %2884 = vmatprep.subr.bf16.mxu0 %v9175_v20  ;;  %2725 = vmatprep.subr.bf16.mxu1 %v9175_v20 }
 0x511   : > { %2885 = vmatpush2.bf16.msra.mxu0 %v8418_v30  ;;  %2726 = vmatpush2.bf16.msra.mxu1 %v8421_v33  ;;  %v8451_v30 = vld [vmem:[%s11525_s14 + $0x130] sm:$0xff]   ;;  %v8454_v33 = vld [vmem:[%s11525_s14 + $0x198] sm:$0xff]  }
 0x512   : > { %2886 = vmatprep.subr.bf16.mxu0 %v9175_v20  ;;  %2727 = vmatprep.subr.bf16.mxu1 %v9175_v20 }
 0x515   : > { %2887 = vmatpush2.bf16.msra.mxu0 %v8420_v32  ;;  %2728 = vmatpush2.bf16.msra.mxu1 %v8423_v36  ;;  %v8453_v32 = vld [vmem:[%s11525_s14 + $0x128] sm:$0xff]   ;;  %v8456_v36 = vld [vmem:[%s11525_s14 + $0x190] sm:$0xff]  }
 0x516   : > { %2888 = vmatprep.subr.bf16.mxu0 %v9175_v20  ;;  %2729 = vmatprep.subr.bf16.mxu1 %v9175_v20 }
 0x519   : > { %2889 = vmatpush2.bf16.msra.mxu0 %v8422_v34  ;;  %2730 = vmatpush2.bf16.msra.mxu1 %v8425_v39  ;;  %v8455_v34 = vld [vmem:[%s11525_s14 + $0x120] sm:$0xff]  }
 0x51a   : > { %2890 = vmatprep.subr.bf16.mxu0 %v9175_v20  ;;  %2731 = vmatprep.subr.bf16.mxu1 %v9175_v20 }
 0x51d   : > { %2891 = vmatpush2.bf16.msra.mxu0 %v8424_v37  ;;  %2732 = vmatpush2.bf16.msra.mxu1 %v8427_v41  ;;  %v8457_v37 = vld [vmem:[%s11525_s14 + $0x1f8] sm:$0xff]   ;;  %v8458_v41 = vld [vmem:[%s11525_s14 + $0x268] sm:$0xff]  }
 0x51e   : > { %2892 = vmatprep.subr.bf16.mxu0 %v9175_v20  ;;  %3026 = vmatprep.subr.bf16.mxu1 %v9175_v20 }
 0x521   : > { %2893 = vmatpush2.bf16.msra.mxu0 %v8426_v40 }
 0x522   : > { %2894 = vmatprep.subr.bf16.mxu0 %v9175_v20 }
 0x525   : > { %2895 = vmatpush2.bf16.msra.mxu0 %v8428_v42 }
 0x526   : > { %3186 = vmatprep.subr.bf16.mxu0 %v9175_v20 }
 0x5a8   : > { %v2295_v43 = vpop.f32.mrf.mxu1 }
 0x5a9   : > { %v2302_v48 = vadd.f32 %v2295_v43, %v10016_v53  ;;  %v8429_v53 = vld [vmem:[%s11525_s14 + $0x118] sm:$0xff]  }
 0x5aa   : > { %v2297_v44 = vpop.f32.mrf.mxu1 }
 0x5ab   : > { %v2303_v51 = vadd.f32 %v2297_v44, %v10018_v56  ;;  %v8459_v44 = vld [vmem:[%s11525_s14 + $0x1f0] sm:$0xff]  }
 0x5ac   : > { %v2299_v45 = vpop.f32.mrf.mxu1 }
 0x5ad   : > { %v8460_v45 = vld [vmem:[%s11525_s14 + $0x260] sm:$0xff]  }
 0x5ae   : > { %v2300_v47 = vpop.f32.mrf.mxu1 }
 0x5af   : > { %v8462_v47 = vld [vmem:[%s11525_s14 + $0x258] sm:$0xff]  }
 0x5b0   : > { %v2558_v50 = vpop.f32.mrf.mxu0 }
 0x5b1   : > { %v2565_v52 = vadd.f32 %v2558_v50, %v2302_v48  ;;  %v8463_v48 = vld [vmem:[%s11525_s14 + $0x1e0] sm:$0xff]   ;;  %v8465_v50 = vld [vmem:[%s11525_s14 + $0x1d8] sm:$0xff]  }
 0x5b2   : > { %v2560_v55 = vpop.f32.mrf.mxu0 }
 0x5b3   : > { %v2579_v57 = vadd.f32 %v2572_v49, %v2565_v52  ;;  %v2566_v35 = vadd.f32 %v2560_v55, %v2303_v51  ;;  %v8464_v49 = vld [vmem:[%s11525_s14 + $0x250] sm:$0xff]   ;;  %v8466_v51 = vld [vmem:[%s11525_s14 + $0x248] sm:$0xff]  }
 0x5b4   : > { %v2562_v58 = vpop.f32.mrf.mxu0  ;;  %v8467_v52 = vld [vmem:[%s11525_s14 + $0x1d0] sm:$0xff]   ;;  %v8469_v55 = vld [vmem:[%s11525_s14 + $0x1c8] sm:$0xff]  }
 0x5b5   : > { %v2581_v59 = vmax.f32 %v2579_v57, 0.0  ;;  %v2580_v61 = vadd.f32 %v2576_v54, %v2566_v35  ;;  %v8468_v54 = vld [vmem:[%s11525_s14 + $0x240] sm:$0xff]   ;;  %v8470_v57 = vld [vmem:[%s11525_s14 + $0x238] sm:$0xff]   ;;  %v8472_v58 = vld [vmem:[%s11525_s14 + $0x230] sm:$0xff]  }
 0x5b6   : > { %v2563_v62 = vpop.f32.mrf.mxu0  ;;  %v8471_v35 = vld [vmem:[%s11525_s14 + $0x1c0] sm:$0xff]  }
 0x5b7   : > { %v2582_v38 = vmax.f32 %v2580_v61, 0.0  ;;  %v10138_v1 = vpack.c.bf16 %v2581_v59, %v2581_v59  ;;  %v8473_v59 = vld [vmem:[%s11525_s14 + $0x228] sm:$0xff]   ;;  %v8474_v61 = vld [vmem:[%s11525_s14 + $0x298] sm:$0xff]   ;;  %v8475_v62 = vld [vmem:[%s11525_s14 + $0x220] sm:$0xff]  }
 0x5b9   : > { %v10140_v2 = vpack.c.bf16 %v2582_v38, %v2582_v38  ;;  %v10156_v6 = vshrl.u32 %v10138_v1, 16  ;;  %v2936_v39 = vrot.slane %v10138_v1, 1  ;;  %v8476_v38 = vld [vmem:[%s11525_s14 + $0x290] sm:$0xff]  }
 0x5bb   : > { %7224 = vmatprep.mubr.msk.bf16.mxu1 %vm1812_vm5, %v10140_v2  ;;  %v10148_v56 = vshrl.u32 %v10140_v2, 16  ;;  %v2937_v3 = vrot.slane %v10140_v2, 1  ;;  %v3257_v40 = vrot.slane %v10140_v2, 2  ;;  %v3096_v42 = vrot.slane %v10156_v6, 1 }
 0x5bc   : > { %2734 = vmatmul.mubr.bf16.vlgmr.msra.gmra.mxu1 %v10138_v1 }
 0x5bd   : > { %3027 = vmatpush1.bf16.msra.mxu1 %v8429_v53  ;;  %7267 = vmatprep.mubr.msk.bf16.mxu0 %vm1812_vm5, %v10148_v56  ;;  %v3097_v7 = vrot.slane %v10148_v56, 1  ;;  %v3417_v43 = vrot.slane %v10148_v56, 2  ;;  %v8477_v53 = vld [vmem:[%s11525_s14 + $0x218] sm:$0xff]   ;;  %v8478_v56 = vld [vmem:[%s11525_s14 + $0x288] sm:$0xff]  }
 0x5be   : > { %7310 = vmatprep.mubr.msk.bf16.mxu1 %vm1812_vm5, %v2937_v3  ;;  %2897 = vmatmul.mubr.bf16.vlgmr.msra.gmra.mxu0 %v10156_v6  ;;  %v8479_v3 = vld [vmem:[%s11525_s14 + $0x210] sm:$0xff]  }
 0x5bf   : > { %3187 = vmatpush1.bf16.msra.mxu0 %v8430_v5  ;;  %3028 = vmatprep.subr.bf16.mxu1 %v9175_v20  ;;  %v8480_v5 = vld [vmem:[%s11525_s14 + $0x280] sm:$0xff]  }
 0x5c0   : > { %7353 = vmatprep.mubr.msk.bf16.mxu0 %vm1812_vm5, %v3097_v7  ;;  %3188 = vmatprep.subr.bf16.mxu0 %v9175_v20  ;;  %v8481_v7 = vld [vmem:[%s11525_s14 + $0x208] sm:$0xff]  }
 0x5c1   : > { %3029 = vmatpush1.bf16.msra.mxu1 %v8431_v8  ;;  %v8482_v8 = vld [vmem:[%s11525_s14 + $0x278] sm:$0xff]  }
 0x5c2   : > { %3030 = vmatprep.subr.bf16.mxu1 %v9175_v20 }
 0x5c3   : > { %3189 = vmatpush1.bf16.msra.mxu0 %v8432_v10  ;;  %v8483_v10 = vld [vmem:[%s11525_s14 + $0x200] sm:$0xff]  }
 0x5c4   : > { %3190 = vmatprep.subr.bf16.mxu0 %v9175_v20 }
 0x5c5   : > { %3031 = vmatpush1.bf16.msra.mxu1 %v8433_v11  ;;  %v8484_v11 = vld [vmem:[%s11525_s14 + $0x270] sm:$0xff]  }
 0x5c6   : > { %3032 = vmatprep.subr.bf16.mxu1 %v9175_v20 }
 0x5c7   : > { %3191 = vmatpush1.bf16.msra.mxu0 %v8434_v12  ;;  %v8485_v12 = vld [vmem:[%s11525_s14 + $0x2d8] sm:$0xff]  }
 0x5c8   : > { %3192 = vmatprep.subr.bf16.mxu0 %v9175_v20 }
 0x5c9   : > { %3033 = vmatpush1.bf16.msra.mxu1 %v8435_v13  ;;  %v3256_v13 = vrot.slane %v10138_v1, 2 }
 0x5ca   : > { %3034 = vmatprep.subr.bf16.mxu1 %v9175_v20 }
 0x5cb   : > { %3193 = vmatpush1.bf16.msra.mxu0 %v8436_v14  ;;  %v3577_v14 = vrot.slane %v10140_v2, 3  ;;  %v8487_v2 = vld [vmem:[%s11525_s14 + $0x2c8] sm:$0xff]  }
 0x5cc   : > { %3194 = vmatprep.subr.bf16.mxu0 %v9175_v20 }
 0x5cd   : > { %3035 = vmatpush1.bf16.msra.mxu1 %v8437_v15  ;;  %v3416_v15 = vrot.slane %v10156_v6, 2  ;;  %v8488_v6 = vld [vmem:[%s11525_s14 + $0x2c0] sm:$0xff]  }
 0x5ce   : > { %3036 = vmatprep.subr.bf16.mxu1 %v9175_v20 }
 0x5cf   : > { %3195 = vmatpush1.bf16.msra.mxu0 %v8438_v16  ;;  %v8486_v16 = vld [vmem:[%s11525_s14 + $0x2d0] sm:$0xff]  }
 0x5d0   : > { %3196 = vmatprep.subr.bf16.mxu0 %v9175_v20 }
 0x5d1   : > { %3037 = vmatpush1.bf16.msra.mxu1 %v8439_v17  ;;  %v8489_v17 = vld [vmem:[%s11525_s14 + $0x2b8] sm:$0xff]  }
 0x5d2   : > { %3038 = vmatprep.subr.bf16.mxu1 %v9175_v20 }
 0x5d3   : > { %3197 = vmatpush1.bf16.msra.mxu0 %v8440_v18  ;;  %v8490_v18 = vld [vmem:[%s11525_s14 + $0x2b0] sm:$0xff]  }
 0x5d4   : > { %3198 = vmatprep.subr.bf16.mxu0 %v9175_v20 }
 0x5d5   : > { %3039 = vmatpush1.bf16.msra.mxu1 %v8441_v19  ;;  %v8491_v19 = vld [vmem:[%s11525_s14 + $0x2a8] sm:$0xff]  }
 0x5d6   : > { %3040 = vmatprep.subr.bf16.mxu1 %v9175_v20 }
 0x5d7   : > { %3199 = vmatpush1.bf16.msra.mxu0 %v8442_v21  ;;  %v8492_v21 = vld [vmem:[%s11525_s14 + $0x2a0] sm:$0xff]  }
 0x5d8   : > { %3200 = vmatprep.subr.bf16.mxu0 %v9175_v20 }
 0x5d9   : > { %3041 = vmatpush1.bf16.msra.mxu1 %v8443_v22  ;;  %v8493_v22 = vld [vmem:[%s11525_s14 + $0x308] sm:$0xff]  }
 0x5da   : > { %3046 = vmatprep.subr.bf16.mxu1 %v9175_v20 }
 0x5db   : > { %3201 = vmatpush1.bf16.msra.mxu0 %v8444_v23  ;;  %v8494_v23 = vld [vmem:[%s11525_s14 + $0x300] sm:$0xff]  }
 0x5dc   : > { %3206 = vmatprep.subr.bf16.mxu0 %v9175_v20 }
 0x5dd   : > { %3047 = vmatpush2.bf16.msra.mxu1 %v8445_v24  ;;  %v8495_v24 = vld [vmem:[%s11525_s14 + $0x2f8] sm:$0xff]  }
 0x5de   : > { %3048 = vmatprep.subr.bf16.mxu1 %v9175_v20 }
 0x5df   : > { %3207 = vmatpush2.bf16.msra.mxu0 %v8446_v25  ;;  %v8496_v25 = vld [vmem:[%s11525_s14 + $0x2f0] sm:$0xff]  }
 0x5e0   : > { %3208 = vmatprep.subr.bf16.mxu0 %v9175_v20 }
 0x5e1   : > { %3049 = vmatpush2.bf16.msra.mxu1 %v8447_v26  ;;  %v8497_v26 = vld [vmem:[%s11525_s14 + $0x2e8] sm:$0xff]  }
 0x5e2   : > { %3050 = vmatprep.subr.bf16.mxu1 %v9175_v20 }
 0x5e3   : > { %3209 = vmatpush2.bf16.msra.mxu0 %v8448_v27  ;;  %v8498_v27 = vld [vmem:[%s11525_s14 + $0x2e0] sm:$0xff]  }
 0x5e4   : > { %3210 = vmatprep.subr.bf16.mxu0 %v9175_v20 }
 0x5e5   : > { %3051 = vmatpush2.bf16.msra.mxu1 %v8449_v28  ;;  %v3576_v28 = vrot.slane %v10138_v1, 3  ;;  %v8500_v1 = vld [vmem:[%s11526_s17] sm:$0xff]  }
 0x5e6   : > { %3052 = vmatprep.subr.bf16.mxu1 %v9175_v20 }
 0x5e7   : > { %3211 = vmatpush2.bf16.msra.mxu0 %v8450_v29  ;;  %v2585_v29 = vld [vmem:[#allocation9] sm:$0x1] }
 0x5e8   : > { %3212 = vmatprep.subr.bf16.mxu0 %v9175_v20 }
 0x5e9   : > { %3053 = vmatpush2.bf16.msra.mxu1 %v8451_v30 }
 0x5ea   : > { %3054 = vmatprep.subr.bf16.mxu1 %v9175_v20 }
 0x5eb   : > { %3213 = vmatpush2.bf16.msra.mxu0 %v8452_v31 }
 0x5ec   : > { %3214 = vmatprep.subr.bf16.mxu0 %v9175_v20 }
 0x5ed   : > { %3055 = vmatpush2.bf16.msra.mxu1 %v8453_v32 }
 0x5ee   : > { %3056 = vmatprep.subr.bf16.mxu1 %v9175_v20 }
 0x5ef   : > { %3215 = vmatpush2.bf16.msra.mxu0 %v8454_v33 }
 0x5f0   : > { %3216 = vmatprep.subr.bf16.mxu0 %v9175_v20 }
 0x5f1   : > { %3057 = vmatpush2.bf16.msra.mxu1 %v8455_v34 }
 0x5f2   : > { %3346 = vmatprep.subr.bf16.mxu1 %v9175_v20 }
 0x5f3   : > { %3217 = vmatpush2.bf16.msra.mxu0 %v8456_v36 }
 0x5f4   : > { %3059 = vmatmul.mubr.bf16.vlgmr.msra.gmra.mxu1 %v2936_v39  ;;  %3506 = vmatprep.subr.bf16.mxu0 %v9175_v20 }
 0x5f5   : > { %3347 = vmatpush1.bf16.msra.mxu1 %v8457_v37  ;;  %7396 = vmatprep.mubr.msk.bf16.mxu1 %vm1812_vm5, %v3257_v40 }
 0x5f6   : > { %3219 = vmatmul.mubr.bf16.vlgmr.msra.gmra.mxu0 %v3096_v42  ;;  %3348 = vmatprep.subr.bf16.mxu1 %v9175_v20  ;;  %v8499_v42 = vld [vmem:[%s11526_s17 + $0x8] sm:$0xff]  }
 0x5f7   : > { %3507 = vmatpush1.bf16.msra.mxu0 %v8458_v41  ;;  %7439 = vmatprep.mubr.msk.bf16.mxu0 %vm1812_vm5, %v3417_v43 }
 0x5f8   : > { %3508 = vmatprep.subr.bf16.mxu0 %v9175_v20 }
 0x5f9   : > { %3349 = vmatpush1.bf16.msra.mxu1 %v8459_v44 }
 0x5fa   : > { %3350 = vmatprep.subr.bf16.mxu1 %v9175_v20 }
 0x5fb   : > { %3509 = vmatpush1.bf16.msra.mxu0 %v8460_v45 }
 0x5fc   : > { %3510 = vmatprep.subr.bf16.mxu0 %v9175_v20 }
 0x5fd   : > { %3351 = vmatpush1.bf16.msra.mxu1 %v8461_v46 }
 0x5fe   : > { %3352 = vmatprep.subr.bf16.mxu1 %v9175_v20 }
 0x5ff   : > { %3511 = vmatpush1.bf16.msra.mxu0 %v8462_v47 }
 0x600   : > { %3512 = vmatprep.subr.bf16.mxu0 %v9175_v20 }
 0x601   : > { %3353 = vmatpush1.bf16.msra.mxu1 %v8463_v48 }
 0x602   : > { %3354 = vmatprep.subr.bf16.mxu1 %v9175_v20 }
 0x603   : > { %3513 = vmatpush1.bf16.msra.mxu0 %v8464_v49 }
 0x604   : > { %3514 = vmatprep.subr.bf16.mxu0 %v9175_v20 }
 0x605   : > { %3355 = vmatpush1.bf16.msra.mxu1 %v8465_v50 }
 0x606   : > { %3356 = vmatprep.subr.bf16.mxu1 %v9175_v20 }
 0x607   : > { %3515 = vmatpush1.bf16.msra.mxu0 %v8466_v51 }
 0x608   : > { %3516 = vmatprep.subr.bf16.mxu0 %v9175_v20 }
 0x609   : > { %3357 = vmatpush1.bf16.msra.mxu1 %v8467_v52 }
 0x60a   : > { %3358 = vmatprep.subr.bf16.mxu1 %v9175_v20 }
 0x60b   : > { %3517 = vmatpush1.bf16.msra.mxu0 %v8468_v54 }
 0x60c   : > { %3518 = vmatprep.subr.bf16.mxu0 %v9175_v20 }
 0x60d   : > { %3359 = vmatpush1.bf16.msra.mxu1 %v8469_v55 }
 0x60e   : > { %3360 = vmatprep.subr.bf16.mxu1 %v9175_v20 }
 0x60f   : > { %3519 = vmatpush1.bf16.msra.mxu0 %v8470_v57 }
 0x610   : > { %3520 = vmatprep.subr.bf16.mxu0 %v9175_v20 }
 0x611   : > { %3361 = vmatpush1.bf16.msra.mxu1 %v8471_v35 }
 0x612   : > { %3366 = vmatprep.subr.bf16.mxu1 %v9175_v20 }
 0x613   : > { %3521 = vmatpush1.bf16.msra.mxu0 %v8472_v58 }
 0x614   : > { %3526 = vmatprep.subr.bf16.mxu0 %v9175_v20 }
 0x615   : > { %3367 = vmatpush2.bf16.msra.mxu1 %v8473_v59 }
 0x616   : > { %3368 = vmatprep.subr.bf16.mxu1 %v9175_v20 }
 0x617   : > { %3527 = vmatpush2.bf16.msra.mxu0 %v8474_v61 }
 0x618   : > { %3528 = vmatprep.subr.bf16.mxu0 %v9175_v20 }
 0x619   : > { %3369 = vmatpush2.bf16.msra.mxu1 %v8475_v62 }
 0x61a   : > { %3370 = vmatprep.subr.bf16.mxu1 %v9175_v20 }
 0x61b   : > { %3529 = vmatpush2.bf16.msra.mxu0 %v8476_v38 }
 0x61c   : > { %3530 = vmatprep.subr.bf16.mxu0 %v9175_v20 }
 0x61d   : > { %3371 = vmatpush2.bf16.msra.mxu1 %v8477_v53 }
 0x61e   : > { %3372 = vmatprep.subr.bf16.mxu1 %v9175_v20 }
 0x61f   : > { %3531 = vmatpush2.bf16.msra.mxu0 %v8478_v56 }
 0x620   : > { %3532 = vmatprep.subr.bf16.mxu0 %v9175_v20 }
 0x621   : > { %3373 = vmatpush2.bf16.msra.mxu1 %v8479_v3 }
 0x622   : > { %3374 = vmatprep.subr.bf16.mxu1 %v9175_v20 }
 0x623   : > { %3533 = vmatpush2.bf16.msra.mxu0 %v8480_v5 }
 0x624   : > { %3534 = vmatprep.subr.bf16.mxu0 %v9175_v20 }
 0x625   : > { %3375 = vmatpush2.bf16.msra.mxu1 %v8481_v7 }
 0x626   : > { %3376 = vmatprep.subr.bf16.mxu1 %v9175_v20 }
 0x627   : > { %3535 = vmatpush2.bf16.msra.mxu0 %v8482_v8 }
 0x628   : > { %3536 = vmatprep.subr.bf16.mxu0 %v9175_v20 }
 0x629   : > { %3377 = vmatpush2.bf16.msra.mxu1 %v8483_v10  ;;  %v8501_v10 = vld [vmem:[%s11527_s12 + $0x8] sm:$0xff]  }
 0x62a   : > { %3666 = vmatprep.subr.bf16.mxu1 %v9175_v20 }
 0x62b   : > { %3537 = vmatpush2.bf16.msra.mxu0 %v8484_v11 }
 0x62c   : > { %3379 = vmatmul.mubr.bf16.vlgmr.msra.gmra.mxu1 %v3256_v13  ;;  %8006 = vmatprep.subr.bf16.mxu0 %v9173_v0  ;;  %v8502_v13 = vld [vmem:[%s11527_s12] sm:$0xff]   ;;  %s9045_s12 = scalar_lea.vmem %s6696_s30, 16 }
 0x62d   : > { %3667 = vmatpush1.bf16.msra.mxu1 %v8485_v12  ;;  %7482 = vmatprep.mubr.msk.bf16.mxu1 %vm1812_vm5, %v3577_v14  ;;  %v3836_v14 = vld [vmem:[#allocation14] sm:$0xf]  ;;  %p9046_p11 = scmp.ne.s32.totalorder %s6696_s30, %s9045_s12 }
 0x62e   : > { %3539 = vmatmul.mubr.bf16.vlgmr.msra.gmra.mxu0 %v3416_v15  ;;  %3668 = vmatprep.subr.bf16.mxu1 %v9175_v20  ;;  %v3844_v15 = vsel %vm3842_vm7, %v3836_v14, 0  ;;  %v8548_v14 = vld [vmem:[%s11431_s19 + $0x150] ss:$8 sps:$4 sm:$0xff]  }
 0x62f   : > { %8010 = vmatprep.mubr.msk.bf16.mxu0 %vm9174_vm0, %v9173_v0  ;;  %8007 = vmatpush3.bf16.msra.mxu0 %v8499_v42  ;;  %v8517_v42 = vld [vmem:[%s11528_s16 + $0x34] ss:$8 sps:$4 sm:$0xff]   ;;  %p9047_p7 = pnand %p9046_p11, %p11537_p12 }
 0x630   : > { %8008 = vmatprep.subr.bf16.mxu0 %v9173_v0 }
 0x631   : > { %3669 = vmatpush1.bf16.msra.mxu1 %v8486_v16  ;;  %v8505_v16 = vld [vmem:[%s11528_s16 + $0x14] ss:$8 sps:$4 sm:$0xff]   ;;  %p9048_p0 = pneg %p9047_p7 }
 0x632   : > { %3670 = vmatprep.subr.bf16.mxu1 %v9175_v20 }
 0x633   : > { %8009 = vmatpush3.bf16.msra.mxu0 %v8500_v1  ;;  %v8520_v1 = vld [vmem:[%s11528_s16 + $0xb4] ss:$8 sps:$4 sm:$0xff]  }
 0x634   : > { %8014 = vmatprep.subr.bf16.mxu0 %v9173_v0 }
 0x635   : > { %3671 = vmatpush1.bf16.msra.mxu1 %v8487_v2  ;;  %v8506_v2 = vld [vmem:[%s11528_s16 + $0x70] ss:$8 sps:$4 sm:$0xff]  }
 0x636   : > { %3672 = vmatprep.subr.bf16.mxu1 %v9175_v20 }
 0x639   : > { %3673 = vmatpush1.bf16.msra.mxu1 %v8488_v6  ;;  %v8508_v6 = vld [vmem:[%s11528_s16 + $0x74] ss:$8 sps:$4 sm:$0xff]  }
 0x63a   : > { %3674 = vmatprep.subr.bf16.mxu1 %v9175_v20 }
 0x63d   : > { %3675 = vmatpush1.bf16.msra.mxu1 %v8489_v17 }
 0x63e   : > { %3676 = vmatprep.subr.bf16.mxu1 %v9175_v20 }
 0x641   : > { %3677 = vmatpush1.bf16.msra.mxu1 %v8490_v18 }
 0x642   : > { %3678 = vmatprep.subr.bf16.mxu1 %v9175_v20 }
 0x645   : > { %3679 = vmatpush1.bf16.msra.mxu1 %v8491_v19 }
 0x646   : > { %3680 = vmatprep.subr.bf16.mxu1 %v9175_v20 }
 0x649   : > { %3681 = vmatpush1.bf16.msra.mxu1 %v8492_v21 }
 0x64a   : > { %3686 = vmatprep.subr.bf16.mxu1 %v9175_v20 }
 0x64d   : > { %3687 = vmatpush2.bf16.msra.mxu1 %v8493_v22 }
 0x64e   : > { %3688 = vmatprep.subr.bf16.mxu1 %v9175_v20 }
 0x651   : > { %3689 = vmatpush2.bf16.msra.mxu1 %v8494_v23  ;;  %v3774_v23 = vld [vmem:[#allocation12] sm:$0x1] }
 0x652   : > { %3690 = vmatprep.subr.bf16.mxu1 %v9175_v20 }
 0x655   : > { %3691 = vmatpush2.bf16.msra.mxu1 %v8495_v24 }
 0x656   : > { %3692 = vmatprep.subr.bf16.mxu1 %v9175_v20 }
 0x659   : > { %3693 = vmatpush2.bf16.msra.mxu1 %v8496_v25 }
 0x65a   : > { %3694 = vmatprep.subr.bf16.mxu1 %v9175_v20 }
 0x65d   : > { %3695 = vmatpush2.bf16.msra.mxu1 %v8497_v26 }
 0x65e   : > { %3696 = vmatprep.subr.bf16.mxu1 %v9175_v20 }
 0x661   : > { %3697 = vmatpush2.bf16.msra.mxu1 %v8498_v27 }
 0x662   : > { %4248 = vmatprep.subr.bf16.mxu1 %v8508_v6  ;;  %v8554_v6 = vld [vmem:[%s11431_s19 + $0x140] ss:$8 sps:$4 sm:$0xff]  }
 0x664   : > { %3699 = vmatmul.mubr.bf16.vlgmr.msra.gmra.mxu1 %v3576_v28 }
 0x665   : > { %4268 = vmatprep.mubr.bf16.mxu1 %v9175_v20  ;;  %4249 = vmatpush1.bf16.msra.mxu1 %v8506_v2  ;;  %v8551_v2 = vld [vmem:[%s11431_s19 + $0x60] ss:$8 sps:$4 sm:$0xff]  }
 0x67c   : > { %v2735_v30 = vpop.f32.mrf.mxu1 }
 0x67d   : > { %v2741_v31 = vadd.f32 %v2735_v30, %v2585_v29  ;;  %v3829_v30 = vld [vmem:[%s11529_s9] sm:$0x1]  ;;  %s11534_s9 = sld [smem:[#allocation50_spill]] }
 0x67e   : > { %v2737_v32 = vpop.f32.mrf.mxu1  ;;  %v2898_v33 = vpop.f32.mrf.mxu0 }
 0x67f   : > { %v2904_v34 = vadd.f32 %v2898_v33, %v2741_v31 }
 0x680   : > { %v2738_v36 = vpop.f32.mrf.mxu1  ;;  %v2900_v37 = vpop.f32.mrf.mxu0 }
 0x681   : > { %v8511_v37 = vld [vmem:[%s11528_s16 + $0x4] ss:$8 sps:$4 sm:$0xff]  }
 0x682   : > { %v2739_v39 = vpop.f32.mrf.mxu1  ;;  %v2901_v40 = vpop.f32.mrf.mxu0 }
 0x683   : > { %v8514_v39 = vld [vmem:[%s11528_s16 + $0x64] ss:$8 sps:$4 sm:$0xff]   ;;  %v8509_v40 = vld [vmem:[%s11528_s16] ss:$8 sps:$4 sm:$0xff]  }
 0x684   : > { %v2902_v41 = vpop.f32.mrf.mxu0  ;;  %4250 = vmatprep.subr.bf16.mxu1 %v8514_v39  ;;  %v8589_v39 = vld [vmem:[%s11431_s19 + $0x4] ss:$8 sps:$4 sm:$0xff]  }
 0x685   : > { %v8512_v41 = vld [vmem:[%s11528_s16 + $0x60] ss:$8 sps:$4 sm:$0xff]  }
 0x686   : > { %4251 = vmatpush1.bf16.msra.mxu1 %v8512_v41  ;;  %v8587_v41 = vld [vmem:[%s11431_s19] ss:$8 sps:$4 sm:$0xff]  }
 0x687   : > { %4452 = vmatprep.subr.bf16.mxu1 %v8520_v1  ;;  %v8595_v1 = vld [vmem:[%s11431_s19 + $0xd4] ss:$8 sps:$4 sm:$0xff]  }
 0x6b4   : > { %v3060_v43 = vpop.f32.mrf.mxu1 }
 0x6b5   : > { %v3066_v44 = vadd.f32 %v3060_v43, %v2904_v34  ;;  %v8503_v34 = vld [vmem:[%s11528_s16 + $0x10] ss:$8 sps:$4 sm:$0xff]   ;;  %v3837_v43 = vld [vmem:[%s11530_s15] sm:$0x1] }
 0x6b6   : > { %v3062_v45 = vpop.f32.mrf.mxu1  ;;  %v3220_v46 = vpop.f32.mrf.mxu0 }
 0x6b7   : > { %v3226_v47 = vadd.f32 %v3220_v46, %v3066_v44 }
 0x6b8   : > { %v3063_v48 = vpop.f32.mrf.mxu1  ;;  %v3222_v49 = vpop.f32.mrf.mxu0 }
 0x6b9   : > { %v8515_v49 = vld [vmem:[%s11528_s16 + $0x30] ss:$8 sps:$4 sm:$0xff]  }
 0x6ba   : > { %v3064_v50 = vpop.f32.mrf.mxu1  ;;  %v3223_v51 = vpop.f32.mrf.mxu0 }
 0x6bb   : > { %v8518_v50 = vld [vmem:[%s11528_s16 + $0xb0] ss:$8 sps:$4 sm:$0xff]  }
 0x6bc   : > { %v3224_v52 = vpop.f32.mrf.mxu0 }
 0x6bd   : > { %v8523_v52 = vld [vmem:[%s11528_s16 + $0x24] ss:$8 sps:$4 sm:$0xff]  }
 0x6ec   : > { %v3380_v54 = vpop.f32.mrf.mxu1 }
 0x6ed   : > { %v3386_v38 = vadd.f32 %v3380_v54, %v3226_v47  ;;  %v8526_v54 = vld [vmem:[%s11528_s16 + $0xa4] ss:$8 sps:$4 sm:$0xff]  }
 0x6ee   : > { %v3382_v55 = vpop.f32.mrf.mxu1  ;;  %v3540_v57 = vpop.f32.mrf.mxu0 }
 0x6ef   : > { %v3546_v53 = vadd.f32 %v3540_v57, %v3386_v38  ;;  %v8521_v57 = vld [vmem:[%s11528_s16 + $0x20] ss:$8 sps:$4 sm:$0xff]   ;;  %v8535_v38 = vld [vmem:[%s11528_s16 + $0x94] ss:$8 sps:$4 sm:$0xff]  }
 0x6f0   : > { %v3383_v35 = vpop.f32.mrf.mxu1  ;;  %v3542_v58 = vpop.f32.mrf.mxu0 }
 0x6f1   : > { %v8524_v35 = vld [vmem:[%s11528_s16 + $0xa0] ss:$8 sps:$4 sm:$0xff]   ;;  %v8529_v58 = vld [vmem:[%s11528_s16 + $0x54] ss:$8 sps:$4 sm:$0xff]  }
 0x6f2   : > { %v3384_v59 = vpop.f32.mrf.mxu1  ;;  %v3543_v61 = vpop.f32.mrf.mxu0 }
 0x6f3   : > { %v8527_v59 = vld [vmem:[%s11528_s16 + $0x50] ss:$8 sps:$4 sm:$0xff]   ;;  %v8532_v61 = vld [vmem:[%s11528_s16 + $0x44] ss:$8 sps:$4 sm:$0xff]  }
 0x6f4   : > { %v3544_v62 = vpop.f32.mrf.mxu0 }
 0x6f5   : > { %v8530_v62 = vld [vmem:[%s11528_s16 + $0x40] ss:$8 sps:$4 sm:$0xff]  }
 0x724   : > { %v3700_v56 = vpop.f32.mrf.mxu1 }
 0x725   : > { %v3706_v3 = vadd.f32 %v3700_v56, %v3546_v53  ;;  %v8533_v53 = vld [vmem:[%s11528_s16 + $0x90] ss:$8 sps:$4 sm:$0xff]   ;;  %v8538_v56 = vld [vmem:[%s11528_s16 + $0x84] ss:$8 sps:$4 sm:$0xff]  }
 0x726   : > { %v3702_v5 = vpop.f32.mrf.mxu1 }
 0x727   : > { %v3707_v7 = vmax.f32 %v3706_v3, 0.0  ;;  %v8536_v3 = vld [vmem:[%s11528_s16 + $0x80] ss:$8 sps:$4 sm:$0xff]   ;;  %v8541_v5 = vld [vmem:[%s11528_s16 + $0xd4] ss:$8 sps:$4 sm:$0xff]  }
 0x728   : > { %v3703_v8 = vpop.f32.mrf.mxu1 }
 0x729   : > { %v3708_v11 = vpack.c.bf16 %v3707_v7, %v3707_v7  ;;  %v8539_v7 = vld [vmem:[%s11528_s16 + $0xd0] ss:$8 sps:$4 sm:$0xff]   ;;  %v8544_v8 = vld [vmem:[%s11528_s16 + $0xc4] ss:$8 sps:$4 sm:$0xff]  }
 0x72a   : > { %v3704_v12 = vpop.f32.mrf.mxu1 }
 0x72b   : > { %8011 = vmatmul.mubr.msk.bf16.vlgmr.msra.gmra.mxu0 %vm3726_vm6, %v3708_v11  ;;  %v8550_v12 = vld [vmem:[%s11431_s19 + $0x154] ss:$8 sps:$4 sm:$0xff]  }
 0x72c   : > { %8015 = vmatpush3.bf16.msra.mxu0 %v8501_v10  ;;  %8018 = vmatprep.mubr.msk.bf16.mxu0 %vm9174_vm0, %v9173_v0  ;;  %v8542_v10 = vld [vmem:[%s11528_s16 + $0xc0] ss:$8 sps:$4 sm:$0xff]  }
 0x72d   : > { %8016 = vmatprep.subr.bf16.mxu0 %v9173_v0 }
 0x730   : > { %8017 = vmatpush3.bf16.msra.mxu0 %v8502_v13  ;;  %v8545_v13 = vld [vmem:[%s11431_s19 + $0x70] ss:$8 sps:$4 sm:$0xff]  }
 0x731   : > { %8022 = vmatprep.subr.bf16.mxu0 %v9173_v0 }
 0x733   : > { %8019 = vmatmul.mubr.msk.bf16.vlgmr.msra.gmra.mxu0 %vm3726_vm6, %v3708_v11  ;;  %v8547_v11 = vld [vmem:[%s11431_s19 + $0x74] ss:$8 sps:$4 sm:$0xff]  }
 0x734   : > { %8024 = vmatprep.mubr.msk.bf16.mxu0 %vm9174_vm0, %v9173_v0  ;;  %8023 = vmatpush3.bf16.msra.mxu0 %v3844_v15  ;;  %v3713_v0 = vld [vmem:[#allocation11] sm:$0x1]  ;;  %v8553_v15 = vld [vmem:[%s11431_s19 + $0x64] ss:$8 sps:$4 sm:$0xff]  }
 0x735   : > { %3939 = vmatprep.subr.bf16.mxu0 %v8505_v16  ;;  %v8556_v16 = vld [vmem:[%s11431_s19 + $0x144] ss:$8 sps:$4 sm:$0xff]  }
 0x7eb   : > { %v3764_v17 = vpop.f32.mrf.mxu0 }
 0x7ec   : > { %v3765_v18 = vadd.f32 %v3764_v17, %v3713_v0  ;;  %v8559_v0 = vld [vmem:[%s11431_s19 + $0x54] ss:$8 sps:$4 sm:$0xff]   ;;  %v8557_v17 = vld [vmem:[%s11431_s19 + $0x50] ss:$8 sps:$4 sm:$0xff]  }
 0x7ed   : > { %v8012_v19 = vpop.f32.mrf.mxu0 }
 0x7ee   : > { %3833 = vst.msk [vmem:[%s11456_s1] sm:$0x1] %vm3832_vm8, %v3765_v18  ;;  %v8562_v19 = vld [vmem:[%s11431_s19 + $0x134] ss:$8 sps:$4 sm:$0xff]   ;;  %s11533_s1 = sld [smem:[#allocation51_spill]] }
 0x7ef   : > { %v3767_v21 = vpop.f32.mrf.mxu0 }
 0x7f0   : > { %v8565_v21 = vld [vmem:[%s11431_s19 + $0x44] ss:$8 sps:$4 sm:$0xff]  }
 0x7f1   : > { %v8013_v22 = vpop.f32.mrf.mxu0 }
 0x7f2   : > { %v8568_v22 = vld [vmem:[%s11431_s19 + $0x124] ss:$8 sps:$4 sm:$0xff]  }
 0x7f3   : > { %v3821_v24 = vpop.f32.mrf.mxu0 }
 0x7f4   : > { %v3822_v25 = vadd.f32 %v3821_v24, %v3774_v23  ;;  %v8563_v23 = vld [vmem:[%s11431_s19 + $0x40] ss:$8 sps:$4 sm:$0xff]  }
 0x7f5   : > { %v8020_v26 = vpop.f32.mrf.mxu0  ;;  %v8566_v24 = vld [vmem:[%s11431_s19 + $0x120] ss:$8 sps:$4 sm:$0xff]  }
 0x7f6   : > { %v3827_v27 = vmul.f32 1.442695, %v3822_v25  ;;  %3834 = vst.msk [vmem:[%s11455_s8] sm:$0x1] %vm3832_vm8, %v3822_v25  ;;  %v8571_v25 = vld [vmem:[%s11431_s19 + $0x34] ss:$8 sps:$4 sm:$0xff]  }
 0x7f7   : > { %v3824_v28 = vpop.f32.mrf.mxu0  ;;  %v8574_v26 = vld [vmem:[%s11431_s19 + $0x114] ss:$8 sps:$4 sm:$0xff]   ;;  %s9178_s8 = smov [#allocation20]  }
 0x7f8   : > { %8781 = vpow2.f32 %v3827_v27  ;;  %v8569_v27 = vld [vmem:[%s11431_s19 + $0x30] ss:$8 sps:$4 sm:$0xff]   ;;  %s9049_s0 = sshll.u32 %s9178_s8, 4  ;;  %s9050_s0 = int_to_ptr.vmem [resolvable:$false] %s9049_s0 }
 0x7f9   : > { %v8021_v29 = vpop.f32.mrf.mxu0  ;;  %v8572_v28 = vld [vmem:[%s11431_s19 + $0x110] ss:$8 sps:$4 sm:$0xff]   ;;  %p9052_p6 = scmp.lt.s32.totalorder %s6696_s30, %s9050_s0 }
 0x7fa   : > { %v8577_v29 = vld [vmem:[%s11431_s19 + $0x24] ss:$8 sps:$4 sm:$0xff]  }
 0x805   : > { %v8782_v31 = vpop.eup %8781 }
 0x806   : > { %v3830_v32 = vmul.f32 %v8782_v31, %v3829_v30  ;;  %v8580_v30 = vld [vmem:[%s11431_s19 + $0x104] ss:$8 sps:$4 sm:$0xff]   ;;  %v8575_v31 = vld [vmem:[%s11431_s19 + $0x20] ss:$8 sps:$4 sm:$0xff]  }
 0x808   : > { %v3831_v33 = vadd.f32 %v3830_v32, %v3765_v18  ;;  %v8560_v18 = vld [vmem:[%s11431_s19 + $0x130] ss:$8 sps:$4 sm:$0xff]   ;;  %v8578_v32 = vld [vmem:[%s11431_s19 + $0x100] ss:$8 sps:$4 sm:$0xff]  }
 0x80a   : > { %v3835_v36 = vpack.c.bf16 %v3831_v33, %v3831_v33  ;;  %v8583_v33 = vld [vmem:[%s11431_s19 + $0x14] ss:$8 sps:$4 sm:$0xff]  }
 0x80c   : > { %8025 = vmatmul.mubr.msk.bf16.vlgmr.msra.gmra.mxu0 %vm3838_vm9, %v3835_v36  ;;  %v8581_v36 = vld [vmem:[%s11431_s19 + $0x10] ss:$8 sps:$4 sm:$0xff]  }
 0x80d   : > { %3940 = vmatpush1.bf16.msra.mxu0 %v8503_v34  ;;  %3959 = vmatprep.mubr.bf16.mxu0 %v9175_v20  ;;  %v8586_v34 = vld [vmem:[%s11431_s19 + $0xf4] ss:$8 sps:$4 sm:$0xff]  }
 0x80e   : > { %3941 = vmatprep.subr.bf16.mxu0 %v8511_v37  ;;  %v8584_v37 = vld [vmem:[%s11431_s19 + $0xf0] ss:$8 sps:$4 sm:$0xff]  }
 0x811   : > { %3942 = vmatpush1.bf16.msra.mxu0 %v8509_v40  ;;  %v8592_v40 = vld [vmem:[%s11431_s19 + $0xe4] ss:$8 sps:$4 sm:$0xff]  }
 0x812   : > { %4044 = vmatprep.subr.bf16.mxu0 %v8517_v42  ;;  %v8590_v42 = vld [vmem:[%s11431_s19 + $0xe0] ss:$8 sps:$4 sm:$0xff]  }
 0x8cc   : > { %v3880_v44 = vpop.f32.mrf.mxu0 }
 0x8cd   : > { %v3881_v45 = vadd.f32 %v3880_v44, %v3837_v43  ;;  %v8598_v43 = vld [vmem:[%s11431_s19 + $0x1b4] ss:$8 sps:$4 sm:$0xff]   ;;  %v8593_v44 = vld [vmem:[%s11431_s19 + $0xd0] ss:$8 sps:$4 sm:$0xff]  }
 0x8ce   : > { %v8026_v46 = vpop.f32.mrf.mxu0 }
 0x8cf   : > { %v3886_v47 = vmax.f32 %v3881_v45, 0.0  ;;  %v8596_v45 = vld [vmem:[%s11431_s19 + $0x1b0] ss:$8 sps:$4 sm:$0xff]   ;;  %v8601_v46 = vld [vmem:[%s11431_s19 + $0xc4] ss:$8 sps:$4 sm:$0xff]  }
 0x8d0   : > { %v3883_v48 = vpop.f32.mrf.mxu0 }
 0x8d1   : > { %v3887_v51 = vpack.c.bf16 %v3886_v47, %v3886_v47  ;;  %v8604_v47 = vld [vmem:[%s11431_s19 + $0x1a4] ss:$8 sps:$4 sm:$0xff]   ;;  %v8599_v48 = vld [vmem:[%s11431_s19 + $0xc0] ss:$8 sps:$4 sm:$0xff]  }
 0x8d2   : > { %v8027_v55 = vpop.f32.mrf.mxu0 }
 0x8d3   : > { %7494 = vmatmul.mubr.msk.bf16.vlgmr.msra.gmra.mxu0 %vm3726_vm6, %v3887_v51  ;;  %7521 = vmatmul.mubr.msk.bf16.vlgmr.msra.gmra.mxu1 %vm3726_vm6, %v3887_v51  ;;  %v8613_v55 = vld [vmem:[%s11431_s19 + $0xa4] ss:$8 sps:$4 sm:$0xff]  }
 0x8d4   : > { %4045 = vmatpush1.bf16.msra.mxu0 %v8515_v49  ;;  %4453 = vmatpush1.bf16.msra.mxu1 %v8518_v50  ;;  %v8602_v49 = vld [vmem:[%s11431_s19 + $0x1a0] ss:$8 sps:$4 sm:$0xff]   ;;  %v8607_v50 = vld [vmem:[%s11431_s19 + $0xb4] ss:$8 sps:$4 sm:$0xff]  }
 0x8d5   : > { %4046 = vmatprep.subr.bf16.mxu0 %v8523_v52  ;;  %4454 = vmatprep.subr.bf16.mxu1 %v8526_v54  ;;  %v8605_v52 = vld [vmem:[%s11431_s19 + $0xb0] ss:$8 sps:$4 sm:$0xff]  }
 0x8d6   : > { %4064 = vmatprep.mubr.bf16.mxu0 %v9175_v20  ;;  %4472 = vmatprep.mubr.bf16.mxu1 %v9175_v20  ;;  %v8608_v54 = vld [vmem:[%s11431_s19 + $0x190] ss:$8 sps:$4 sm:$0xff]  }
 0x8d8   : > { %4047 = vmatpush1.bf16.msra.mxu0 %v8521_v57  ;;  %4455 = vmatpush1.bf16.msra.mxu1 %v8524_v35  ;;  %v8616_v57 = vld [vmem:[%s11431_s19 + $0x184] ss:$8 sps:$4 sm:$0xff]   ;;  %v8611_v35 = vld [vmem:[%s11431_s19 + $0xa0] ss:$8 sps:$4 sm:$0xff]  }
 0x8d9   : > { %4146 = vmatprep.subr.bf16.mxu0 %v8529_v58  ;;  %4781 = vmatprep.subr.bf16.mxu1 %v8547_v11  ;;  %v8614_v58 = vld [vmem:[%s11431_s19 + $0x180] ss:$8 sps:$4 sm:$0xff]  }
 0x8db   : > { %7503 = vmatmul.mubr.msk.bf16.vlgmr.msra.gmra.mxu0 %vm3726_vm6, %v3887_v51  ;;  %7539 = vmatmul.mubr.msk.bf16.vlgmr.msra.gmra.mxu1 %vm3726_vm6, %v3887_v51 }
 0x8dc   : > { %4147 = vmatpush1.bf16.msra.mxu0 %v8527_v59  ;;  %4166 = vmatprep.mubr.bf16.mxu0 %v9175_v20  ;;  %v8619_v59 = vld [vmem:[%s11431_s19 + $0x94] ss:$8 sps:$4 sm:$0xff]  }
 0x8dd   : > { %4148 = vmatprep.subr.bf16.mxu0 %v8532_v61  ;;  %4782 = vmatpush1.bf16.msra.mxu1 %v8545_v13  ;;  %v8617_v61 = vld [vmem:[%s11431_s19 + $0x90] ss:$8 sps:$4 sm:$0xff]  }
 0x8de   : > { %4783 = vmatprep.subr.bf16.mxu1 %v8553_v15 }
 0x8e0   : > { %4149 = vmatpush1.bf16.msra.mxu0 %v8530_v62  ;;  %v8620_v62 = vld [vmem:[%s11431_s19 + $0x170] ss:$8 sps:$4 sm:$0xff]  }
 0x8e1   : > { %4350 = vmatprep.subr.bf16.mxu0 %v8535_v38  ;;  %4784 = vmatpush1.bf16.msra.mxu1 %v8551_v2  ;;  %v8622_v38 = vld [vmem:[%s11431_s19 + $0x174] ss:$8 sps:$4 sm:$0xff]  }
 0x8e2   : > { %4785 = vmatprep.subr.bf16.mxu1 %v8559_v0 }
 0x8e3   : > { %7512 = vmatmul.mubr.msk.bf16.vlgmr.msra.gmra.mxu0 %vm3726_vm6, %v3887_v51 }
 0x8e4   : > { %4351 = vmatpush1.bf16.msra.mxu0 %v8533_v53  ;;  %4370 = vmatprep.mubr.bf16.mxu0 %v9175_v20  ;;  %v8625_v53 = vld [vmem:[%s11431_s19 + $0x84] ss:$8 sps:$4 sm:$0xff]  }
 0x8e5   : > { %4352 = vmatprep.subr.bf16.mxu0 %v8538_v56  ;;  %4786 = vmatpush1.bf16.msra.mxu1 %v8557_v17  ;;  %v8628_v56 = vld [vmem:[%s11431_s19 + $0x164] ss:$8 sps:$4 sm:$0xff]  }
 0x8e6   : > { %4787 = vmatprep.subr.bf16.mxu1 %v8565_v21 }
 0x8e8   : > { %4353 = vmatpush1.bf16.msra.mxu0 %v8536_v3  ;;  %v8623_v3 = vld [vmem:[%s11431_s19 + $0x80] ss:$8 sps:$4 sm:$0xff]  }
 0x8e9   : > { %4554 = vmatprep.subr.bf16.mxu0 %v8541_v5  ;;  %4788 = vmatpush1.bf16.msra.mxu1 %v8563_v23  ;;  %v8626_v5 = vld [vmem:[%s11431_s19 + $0x160] ss:$8 sps:$4 sm:$0xff]  }
 0x8ea   : > { %4789 = vmatprep.subr.bf16.mxu1 %v8571_v25  ;;  %v4000_v23 = vld [vmem:[#allocation15 + $0x2] sm:$0x3] }
 0x8eb   : > { %7530 = vmatmul.mubr.msk.bf16.vlgmr.msra.gmra.mxu0 %vm3726_vm6, %v3887_v51 }
 0x8ec   : > { %4555 = vmatpush1.bf16.msra.mxu0 %v8539_v7  ;;  %4574 = vmatprep.mubr.bf16.mxu0 %v9175_v20  ;;  %v3892_v7 = vld [vmem:[#allocation15] sm:$0x3] }
 0x8ed   : > { %4556 = vmatprep.subr.bf16.mxu0 %v8544_v8  ;;  %4790 = vmatpush1.bf16.msra.mxu1 %v8569_v27  ;;  %v4204_v8 = vld [vmem:[#allocation15 + $0x6] sm:$0x3] }
 0x8ee   : > { %4791 = vmatprep.subr.bf16.mxu1 %v8577_v29  ;;  %v4229_v13 = vrot.slane %v4204_v8, %v9634_v4  ;;  %v4233_v15 = vrot.slane %v4204_v8, %v9637_v9 }
 0x8f0   : > { %4557 = vmatpush1.bf16.msra.mxu0 %v8542_v10  ;;  %v9176_v10 = vmov 1966171168  }
 0x8f1   : > { %4995 = vmatprep.subr.bf16.mxu0 %v8550_v12  ;;  %4792 = vmatpush1.bf16.msra.mxu1 %v8575_v31  ;;  %v3974_v11 = vunpack.c.l.s4 %v9176_v10  ;;  %v3917_v12 = vrot.slane %v3892_v7, %v9634_v4 }
 0x8f2   : > { %4793 = vmatprep.subr.bf16.mxu1 %v8583_v33 }
 0x8f3   : > { %7548 = vmatmul.mubr.msk.bf16.vlgmr.msra.gmra.mxu0 %vm3726_vm6, %v3887_v51  ;;  %v8610_v51 = vld [vmem:[%s11431_s19 + $0x194] ss:$8 sps:$4 sm:$0xff]  }
 0x8f4   : > { %4996 = vmatpush1.bf16.msra.mxu0 %v8548_v14  ;;  %v3921_v14 = vrot.slane %v3892_v7, %v9637_v9 }
 0x8f5   : > { %4997 = vmatprep.subr.bf16.mxu0 %v8556_v16  ;;  %4794 = vmatpush1.bf16.msra.mxu1 %v8581_v36  ;;  %v3975_v16 = vunpack.c.0.s8 %v3974_v11 }
 0x8f6   : > { %4795 = vmatprep.subr.bf16.mxu1 %v8589_v39 }
 0x8f7   : > { %v10755_v25 = vsub.s32 %v3975_v16, %v9631_v63 }
 0x8f8   : > { %4998 = vmatpush1.bf16.msra.mxu0 %v8554_v6 }
 0x8f9   : > { %4999 = vmatprep.subr.bf16.mxu0 %v8562_v19  ;;  %4796 = vmatpush1.bf16.msra.mxu1 %v8587_v41 }
 0x8fa   : > { %4801 = vmatprep.subr.bf16.mxu1 %v8595_v1 }
 0x8fc   : > { %5000 = vmatpush1.bf16.msra.mxu0 %v8560_v18 }
 0x8fd   : > { %5001 = vmatprep.subr.bf16.mxu0 %v8568_v22  ;;  %4802 = vmatpush2.bf16.msra.mxu1 %v8593_v44 }
 0x8fe   : > { %4803 = vmatprep.subr.bf16.mxu1 %v8601_v46 }
 0x900   : > { %5002 = vmatpush1.bf16.msra.mxu0 %v8566_v24  ;;  %v4408_v24 = vld [vmem:[#allocation15 + $0xa] sm:$0x3] }
 0x901   : > { %5003 = vmatprep.subr.bf16.mxu0 %v8574_v26  ;;  %4804 = vmatpush2.bf16.msra.mxu1 %v8599_v48  ;;  %v4433_v36 = vrot.slane %v4408_v24, %v9634_v4  ;;  %v4437_v63 = vrot.slane %v4408_v24, %v9637_v9 }
 0x902   : > { %4805 = vmatprep.subr.bf16.mxu1 %v8607_v50 }
 0x904   : > { %5004 = vmatpush1.bf16.msra.mxu0 %v8572_v28 }
 0x905   : > { %5005 = vmatprep.subr.bf16.mxu0 %v8580_v30  ;;  %4806 = vmatpush2.bf16.msra.mxu1 %v8605_v52 }
 0x906   : > { %4807 = vmatprep.subr.bf16.mxu1 %v8613_v55 }
 0x908   : > { %5006 = vmatpush1.bf16.msra.mxu0 %v8578_v32 }
 0x909   : > { %5007 = vmatprep.subr.bf16.mxu0 %v8586_v34  ;;  %4808 = vmatpush2.bf16.msra.mxu1 %v8611_v35  ;;  %v4025_v34 = vrot.slane %v4000_v23, %v9634_v4 }
 0x90a   : > { %4809 = vmatprep.subr.bf16.mxu1 %v8619_v59 }
 0x90c   : > { %5008 = vmatpush1.bf16.msra.mxu0 %v8584_v37 }
 0x90d   : > { %5009 = vmatprep.subr.bf16.mxu0 %v8592_v40  ;;  %4810 = vmatpush2.bf16.msra.mxu1 %v8617_v61 }
 0x90e   : > { %4811 = vmatprep.subr.bf16.mxu1 %v8625_v53 }
 0x910   : > { %5010 = vmatpush1.bf16.msra.mxu0 %v8590_v42  ;;  %v4029_v42 = vrot.slane %v4000_v23, %v9637_v9 }
 0x911   : > { %5015 = vmatprep.subr.bf16.mxu0 %v8598_v43  ;;  %4812 = vmatpush2.bf16.msra.mxu1 %v8623_v3 }
 0x914   : > { %5016 = vmatpush2.bf16.msra.mxu0 %v8596_v45 }
 0x915   : > { %5017 = vmatprep.subr.bf16.mxu0 %v8604_v47 }
 0x918   : > { %5018 = vmatpush2.bf16.msra.mxu0 %v8602_v49  ;;  %v4102_v49 = vld [vmem:[#allocation15 + $0x4] sm:$0x3] }
 0x919   : > { %5019 = vmatprep.subr.bf16.mxu0 %v8610_v51  ;;  %v4127_v60 = vrot.slane %v4102_v49, %v9634_v4  ;;  %v4131_v53 = vrot.slane %v4102_v49, %v9637_v9 }
 0x91c   : > { %5020 = vmatpush2.bf16.msra.mxu0 %v8608_v54 }
 0x91d   : > { %5021 = vmatprep.subr.bf16.mxu0 %v8616_v57 }
 0x920   : > { %5022 = vmatpush2.bf16.msra.mxu0 %v8614_v58 }
 0x921   : > { %5023 = vmatprep.subr.bf16.mxu0 %v8622_v38 }
 0x924   : > { %5024 = vmatpush2.bf16.msra.mxu0 %v8620_v62 }
 0x925   : > { %5025 = vmatprep.subr.bf16.mxu0 %v8628_v56 }
 0x928   : > { %5026 = vmatpush2.bf16.msra.mxu0 %v8626_v5 }
 0x993   : > { %v3961_v2 = vpop.f32.mrf.mxu0  ;;  %v4270_v6 = vpop.f32.mrf.mxu1 }
 0x994   : > { %v3962_v0 = vadd.f32 %v3961_v2, %v3917_v12  ;;  %v4271_v17 = vadd.f32 %v4270_v6, %v4229_v13  ;;  %v4306_v12 = vld [vmem:[#allocation15 + $0x8] sm:$0x3] }
 0x995   : > { %v3963_v18 = vpop.f32.mrf.mxu0  ;;  %v4272_v19 = vpop.f32.mrf.mxu1 }
 0x996   : > { %v3964_v21 = vadd.f32 %v3963_v18, %v3921_v14  ;;  %v4273_v22 = vadd.f32 %v4272_v19, %v4233_v15  ;;  %v3968_v28 = vmax.f32 %v3962_v0, 0.0  ;;  %v4277_v29 = vmax.f32 %v4271_v17, 0.0 }
 0x997   : > { %v3965_v26 = vpop.f32.mrf.mxu0  ;;  %v4274_v27 = vpop.f32.mrf.mxu1  ;;  %v4331_v0 = vrot.slane %v4306_v12, %v9634_v4  ;;  %v4335_v19 = vrot.slane %v4306_v12, %v9637_v9 }
 0x998   : > { %v3969_v30 = vmax.f32 %v3964_v21, 0.0  ;;  %v4278_v31 = vmax.f32 %v4273_v22, 0.0  ;;  %v4510_v26 = vld [vmem:[#allocation15 + $0xc] sm:$0x3] }
 0x999   : > { %v3966_v32 = vpop.f32.mrf.mxu0  ;;  %v4275_v33 = vpop.f32.mrf.mxu1 }
 0x99a   : > { %v3972_v37 = vcombine.low %v3968_v28, %v3969_v30  ;;  %v4281_v39 = vcombine.low %v4277_v29, %v4278_v31  ;;  %v4535_v32 = vrot.slane %v4510_v26, %v9634_v4 }
 0x99b   : > { %v4066_v40 = vpop.f32.mrf.mxu0  ;;  %v4474_v41 = vpop.f32.mrf.mxu1 }
 0x99c   : > { %v3979_v1 = vrot.slane %v3972_v37, %v10755_v25  ;;  %v4288_v43 = vrot.slane %v4281_v39, %v10755_v25  ;;  %v4067_v45 = vadd.f32 %v4066_v40, %v4025_v34  ;;  %v4475_v46 = vadd.f32 %v4474_v41, %v4433_v36 }
 0x99d   : > { %v4068_v47 = vpop.f32.mrf.mxu0  ;;  %v4476_v48 = vpop.f32.mrf.mxu1  ;;  %v4539_v36 = vrot.slane %v4510_v26, %v9637_v9  ;;  %v8649_v26 = vld [vmem:[%s11431_s19 + $0x1d0] ss:$8 sps:$4 sm:$0xff]  }
 0x99e   : > { %v3986_v50 = vrot.slane %v3979_v1, %v10755_v25  ;;  %v4295_v51 = vrot.slane %v4288_v43, %v10755_v25  ;;  %v4069_v52 = vadd.f32 %v4068_v47, %v4029_v42  ;;  %v4477_v54 = vadd.f32 %v4476_v48, %v4437_v63 }
 0x99f   : > { %v4070_v55 = vpop.f32.mrf.mxu0  ;;  %v4478_v57 = vpop.f32.mrf.mxu1  ;;  %v4073_v35 = vmax.f32 %v4067_v45, 0.0  ;;  %v4481_v58 = vmax.f32 %v4475_v46, 0.0 }
 0x9a0   : > { %3992 = vst.msk [vmem:[#allocation2] ss:$8 sm:$0x3] %vm10764_vm10, %v3986_v50  ;;  %4298 = vst.msk [vmem:[#allocation2 + $0x3] ss:$8 sm:$0x3] %vm10764_vm10, %v4295_v51 }
 0x9a1   : > { %v4074_v59 = vmax.f32 %v4069_v52, 0.0  ;;  %v4482_v61 = vmax.f32 %v4477_v54, 0.0  ;;  %v4071_v62 = vpop.f32.mrf.mxu0  ;;  %v4479_v38 = vpop.f32.mrf.mxu1 }
 0x9a3   : > { %v4077_v56 = vcombine.low %v4073_v35, %v4074_v59  ;;  %v4485_v3 = vcombine.low %v4481_v58, %v4482_v61  ;;  %v4168_v5 = vpop.f32.mrf.mxu0 }
 0x9a4   : > { %v4169_v7 = vadd.f32 %v4168_v5, %v4127_v60 }
 0x9a5   : > { %v4084_v8 = vrot.slane %v4077_v56, %v10755_v25  ;;  %v4492_v10 = vrot.slane %v4485_v3, %v10755_v25  ;;  %v4170_v11 = vpop.f32.mrf.mxu0 }
 0x9a6   : > { %v4171_v13 = vadd.f32 %v4170_v11, %v4131_v53  ;;  %v4175_v2 = vmax.f32 %v4169_v7, 0.0  ;;  %v8633_v7 = vld [vmem:[%s11431_s19 + $0x234] ss:$8 sps:$4 sm:$0xff]  }
 0x9a7   : > { %v4091_v14 = vrot.slane %v4084_v8, %v10755_v25  ;;  %v4499_v15 = vrot.slane %v4492_v10, %v10755_v25  ;;  %v4172_v16 = vpop.f32.mrf.mxu0 }
 0x9a8   : > { %v4176_v6 = vmax.f32 %v4171_v13, 0.0  ;;  %v8629_v13 = vld [vmem:[%s11430_s18 + $0x8] sm:$0x7f]  }
 0x9a9   : > { %4094 = vst.msk [vmem:[#allocation2 + $0x1] ss:$8 sm:$0x3] %vm10764_vm10, %v4091_v14  ;;  %4502 = vst.msk [vmem:[#allocation2 + $0x5] ss:$8 sm:$0x3] %vm10764_vm10, %v4499_v15  ;;  %v4173_v17 = vpop.f32.mrf.mxu0 }
 0x9aa   : > { %v4179_v18 = vcombine.low %v4175_v2, %v4176_v6  ;;  %v8630_v14 = vld [vmem:[%s11430_s18] sm:$0x7f]   ;;  %v8631_v15 = vld [vmem:[%s11431_s19 + $0x230] ss:$8 sps:$4 sm:$0xff]   ;;  %v8639_v6 = vld [vmem:[%s11431_s19 + $0x214] ss:$8 sps:$4 sm:$0xff]  }
 0x9ab   : > { %v4372_v21 = vpop.f32.mrf.mxu0  ;;  %v8636_v16 = vld [vmem:[%s11431_s19 + $0x224] ss:$8 sps:$4 sm:$0xff]   ;;  %v8634_v2 = vld [vmem:[%s11431_s19 + $0x220] ss:$8 sps:$4 sm:$0xff]  }
 0x9ac   : > { %v4186_v22 = vrot.slane %v4179_v18, %v10755_v25  ;;  %v4373_v23 = vadd.f32 %v4372_v21, %v4331_v0  ;;  %v8637_v0 = vld [vmem:[%s11431_s19 + $0x210] ss:$8 sps:$4 sm:$0xff]   ;;  %v8642_v17 = vld [vmem:[%s11431_s19 + $0x204] ss:$8 sps:$4 sm:$0xff]   ;;  %v8640_v18 = vld [vmem:[%s11431_s19 + $0x200] ss:$8 sps:$4 sm:$0xff]  }
 0x9ad   : > { %v4374_v24 = vpop.f32.mrf.mxu0  ;;  %v8643_v21 = vld [vmem:[%s11431_s19 + $0x1f0] ss:$8 sps:$4 sm:$0xff]  }
 0x9ae   : > { %v4193_v27 = vrot.slane %v4186_v22, %v10755_v25  ;;  %v4375_v28 = vadd.f32 %v4374_v24, %v4335_v19  ;;  %v4379_v30 = vmax.f32 %v4373_v23, 0.0  ;;  %v8645_v19 = vld [vmem:[%s11431_s19 + $0x1f4] ss:$8 sps:$4 sm:$0xff]   ;;  %v8648_v22 = vld [vmem:[%s11431_s19 + $0x1e4] ss:$8 sps:$4 sm:$0xff]  }
 0x9af   : > { %v4376_v29 = vpop.f32.mrf.mxu0  ;;  %v8646_v23 = vld [vmem:[%s11431_s19 + $0x1e0] ss:$8 sps:$4 sm:$0xff]   ;;  %v8651_v24 = vld [vmem:[%s11431_s19 + $0x1d4] ss:$8 sps:$4 sm:$0xff]  }
 0x9b0   : > { %4196 = vst.msk [vmem:[#allocation2 + $0x2] ss:$8 sm:$0x3] %vm10764_vm10, %v4193_v27  ;;  %v4380_v31 = vmax.f32 %v4375_v28, 0.0  ;;  %v8654_v27 = vld [vmem:[%s11431_s19 + $0x1c4] ss:$8 sps:$4 sm:$0xff]  }
 0x9b1   : > { %v4377_v33 = vpop.f32.mrf.mxu0  ;;  %v8652_v28 = vld [vmem:[%s11431_s19 + $0x1c0] ss:$8 sps:$4 sm:$0xff]   ;;  %v8657_v29 = vld [vmem:[%s11431_s19 + $0x294] ss:$8 sps:$4 sm:$0xff]  }
 0x9b2   : > { %v4383_v34 = vcombine.low %v4379_v30, %v4380_v31  ;;  %v8655_v30 = vld [vmem:[%s11431_s19 + $0x290] ss:$8 sps:$4 sm:$0xff]   ;;  %v8660_v31 = vld [vmem:[%s11431_s19 + $0x284] ss:$8 sps:$4 sm:$0xff]   ;;  %v8663_v33 = vld [vmem:[%s11431_s19 + $0x274] ss:$8 sps:$4 sm:$0xff]  }
 0x9b3   : > { %v4576_v37 = vpop.f32.mrf.mxu0 }
 0x9b4   : > { %v4390_v39 = vrot.slane %v4383_v34, %v10755_v25  ;;  %v4577_v40 = vadd.f32 %v4576_v37, %v4535_v32  ;;  %v8658_v32 = vld [vmem:[%s11431_s19 + $0x280] ss:$8 sps:$4 sm:$0xff]   ;;  %v8661_v34 = vld [vmem:[%s11431_s19 + $0x270] ss:$8 sps:$4 sm:$0xff]  }
 0x9b5   : > { %v4578_v41 = vpop.f32.mrf.mxu0  ;;  %v8664_v37 = vld [vmem:[%s11431_s19 + $0x260] ss:$8 sps:$4 sm:$0xff]  }
 0x9b6   : > { %v4397_v42 = vrot.slane %v4390_v39, %v10755_v25  ;;  %v4579_v63 = vadd.f32 %v4578_v41, %v4539_v36  ;;  %v4583_v43 = vmax.f32 %v4577_v40, 0.0  ;;  %v8666_v36 = vld [vmem:[%s11431_s19 + $0x264] ss:$8 sps:$4 sm:$0xff]   ;;  %v8669_v39 = vld [vmem:[%s11431_s19 + $0x254] ss:$8 sps:$4 sm:$0xff]  }
 0x9b7   : > { %v4580_v1 = vpop.f32.mrf.mxu0  ;;  %v8667_v40 = vld [vmem:[%s11431_s19 + $0x250] ss:$8 sps:$4 sm:$0xff]   ;;  %v8672_v41 = vld [vmem:[%s11431_s19 + $0x244] ss:$8 sps:$4 sm:$0xff]  }
 0x9b8   : > { %4400 = vst.msk [vmem:[#allocation2 + $0x4] ss:$8 sm:$0x3] %vm10764_vm10, %v4397_v42  ;;  %v4584_v45 = vmax.f32 %v4579_v63, 0.0  ;;  %v8670_v42 = vld [vmem:[%s11431_s19 + $0x240] ss:$8 sps:$4 sm:$0xff]  }
 0x9b9   : > { %v4581_v46 = vpop.f32.mrf.mxu0 }
 0x9ba   : > { %v4587_v47 = vcombine.low %v4583_v43, %v4584_v45 }
 0x9bc   : > { %v4594_v48 = vrot.slane %v4587_v47, %v10755_v25 }
 0x9be   : > { %v4601_v49 = vrot.slane %v4594_v48, %v10755_v25  ;;  %v9177_v25 = vmov 65535  }
 0x9bf   : > { %v5051_v44 = vsel %vm5050_vm11, 4294967295, %v9177_v25 }
 0x9c0   : > { %4604 = vst.msk [vmem:[#allocation2 + $0x6] ss:$8 sm:$0x3] %vm10764_vm10, %v4601_v49  ;;  %v10813_v61 = vsel %vm3842_vm7, %v5051_v44, 0 }
 0x9c7   : > { %v4607_v50 = vld [vmem:[#allocation2 + $0x8] sm:$0x7f]  ;;  %v4606_v51 = vld [vmem:[#allocation2] sm:$0x7f] }
 0x9c8   : > { %v10800_v52 = vpack.c.bf16 %v4607_v50, %v4607_v50  ;;  %v10802_v54 = vpack.c.bf16 %v4606_v51, %v4606_v51 }
 0x9ca   : > { %7577 = vmatprep.mubr.msk.bf16.mxu1 %vm1812_vm5, %v10800_v52  ;;  %7634 = vmatprep.mubr.msk.bf16.mxu0 %vm1812_vm5, %v10800_v52 }
 0x9cb   : > { %4814 = vmatmul.mubr.bf16.vlgmr.msra.gmra.mxu1 %v10802_v54  ;;  %5028 = vmatmul.mubr.bf16.vlgmr.msra.gmra.mxu0 %v10802_v54 }
 0x9cc   : > { %5091 = vmatprep.mubr.bf16.mxu1 %v9175_v20  ;;  %5148 = vmatprep.mubr.bf16.mxu0 %v9175_v20 }
 0xa8b   : > { %v4815_v55 = vpop.f32.mrf.mxu1  ;;  %v5029_v57 = vpop.f32.mrf.mxu0 }
 0xa8c   : > { %v4824_v60 = vpack.c.bf16 %v4815_v55, %v4815_v55  ;;  %v5039_v35 = vpack.c.bf16 %v5029_v57, %v5029_v57 }
 0xa8d   : > { %v4817_v58 = vpop.f32.mrf.mxu1  ;;  %v5031_v59 = vpop.f32.mrf.mxu0 }
 0xa8e   : > { %v4825_v62 = vpack.c.bf16 %v4817_v58, %v4817_v58  ;;  %v5040_v38 = vpack.c.bf16 %v5031_v59, %v5031_v59  ;;  %v5111_v8 = vand.u32 %v10813_v61, %v4824_v60  ;;  %v5054_v10 = vand.u32 %v10813_v61, %v5039_v35  ;;  %v8676_v58 = vld [vmem:[%s11431_s19 + $0x314] ss:$8 sps:$4 sm:$0xff]  }
 0xa8f   : > { %v4819_v53 = vpop.f32.mrf.mxu1  ;;  %v5033_v56 = vpop.f32.mrf.mxu0 }
 0xa90   : > { %v5114_v3 = vand.u32 %v10813_v61, %v4825_v62  ;;  %v5057_v5 = vand.u32 %v10813_v61, %v5040_v38  ;;  %v8673_v38 = vld [vmem:[%s11430_s18 + $0x10] sm:$0x7f]   ;;  %v8679_v56 = vld [vmem:[%s11431_s19 + $0x304] ss:$8 sps:$4 sm:$0xff]  }
 0xa91   : > { %v4820_v11 = vpop.f32.mrf.mxu1  ;;  %v5034_v12 = vpop.f32.mrf.mxu0  ;;  %v8674_v53 = vld [vmem:[%s11431_s19 + $0x310] ss:$8 sps:$4 sm:$0xff]  }
 0xa92   : > { %5073 = vmatprep.subr.bf16.mxu1 %v5057_v5  ;;  %5130 = vmatprep.subr.bf16.mxu0 %v5114_v3  ;;  %v8677_v3 = vld [vmem:[%s11431_s19 + $0x300] ss:$8 sps:$4 sm:$0xff]   ;;  %v8682_v5 = vld [vmem:[%s11431_s19 + $0x2f4] ss:$8 sps:$4 sm:$0xff]   ;;  %v8686_v11 = vld [vmem:[%s11431_s19 + $0x2d0] ss:$8 sps:$4 sm:$0xff]  }
 0xa93   : > { %5074 = vmatpush1.bf16.msra.mxu1 %v5054_v10  ;;  %5131 = vmatpush1.bf16.msra.mxu0 %v5111_v8  ;;  %v8685_v8 = vld [vmem:[%s11431_s19 + $0x2e4] ss:$8 sps:$4 sm:$0xff]   ;;  %v8688_v10 = vld [vmem:[%s11431_s19 + $0x2d4] ss:$8 sps:$4 sm:$0xff]  }
 0xa94   : > { %5328 = vmatprep.subr.bf16.mxu1 %v8633_v7  ;;  %v8680_v7 = vld [vmem:[%s11431_s19 + $0x2f0] ss:$8 sps:$4 sm:$0xff]   ;;  %v8691_v12 = vld [vmem:[%s11431_s19 + $0x2c4] ss:$8 sps:$4 sm:$0xff]  }
 0xa96   : > { %7638 = vmatmul.mubr.msk.bf16.vlgmr.msra.gmra.mxu1 %vm5046_vm12, %v8629_v13  ;;  %7640 = vmatmul.mubr.msk.bf16.vlgmr.msra.gmra.mxu0 %vm5046_vm12, %v8630_v14  ;;  %v8689_v13 = vld [vmem:[%s11431_s19 + $0x2c0] ss:$8 sps:$4 sm:$0xff]   ;;  %v8694_v14 = vld [vmem:[%s11431_s19 + $0x2b4] ss:$8 sps:$4 sm:$0xff]  }
 0xa97   : > { %5329 = vmatpush1.bf16.msra.mxu1 %v8631_v15  ;;  %7697 = vmatprep.mubr.msk.bf16.mxu1 %vm1812_vm5, %v10800_v52  ;;  %v8692_v15 = vld [vmem:[%s11431_s19 + $0x2b0] ss:$8 sps:$4 sm:$0xff]  }
 0xa98   : > { %5330 = vmatprep.subr.bf16.mxu1 %v8636_v16  ;;  %5420 = vmatprep.mubr.bf16.mxu0 %v9175_v20  ;;  %v8697_v16 = vld [vmem:[%s11431_s19 + $0x2a4] ss:$8 sps:$4 sm:$0xff]  }
 0xa9b   : > { %5331 = vmatpush1.bf16.msra.mxu1 %v8634_v2  ;;  %v8695_v2 = vld [vmem:[%s11431_s19 + $0x2a0] ss:$8 sps:$4 sm:$0xff]  }
 0xa9c   : > { %5332 = vmatprep.subr.bf16.mxu1 %v8639_v6  ;;  %v8700_v6 = vld [vmem:[%s11431_s19 + $0x374] ss:$8 sps:$4 sm:$0xff]  }
 0xa9f   : > { %5333 = vmatpush1.bf16.msra.mxu1 %v8637_v0  ;;  %v8698_v0 = vld [vmem:[%s11431_s19 + $0x370] ss:$8 sps:$4 sm:$0xff]  }
 0xaa0   : > { %5334 = vmatprep.subr.bf16.mxu1 %v8642_v17  ;;  %v8703_v17 = vld [vmem:[%s11431_s19 + $0x364] ss:$8 sps:$4 sm:$0xff]  }
 0xaa3   : > { %5335 = vmatpush1.bf16.msra.mxu1 %v8640_v18  ;;  %v8701_v18 = vld [vmem:[%s11431_s19 + $0x360] ss:$8 sps:$4 sm:$0xff]  }
 0xaa4   : > { %5336 = vmatprep.subr.bf16.mxu1 %v8645_v19  ;;  %v8706_v19 = vld [vmem:[%s11431_s19 + $0x354] ss:$8 sps:$4 sm:$0xff]  }
 0xaa7   : > { %5337 = vmatpush1.bf16.msra.mxu1 %v8643_v21  ;;  %v8704_v21 = vld [vmem:[%s11431_s19 + $0x350] ss:$8 sps:$4 sm:$0xff]  }
 0xaa8   : > { %5338 = vmatprep.subr.bf16.mxu1 %v8648_v22  ;;  %v8709_v22 = vld [vmem:[%s11431_s19 + $0x344] ss:$8 sps:$4 sm:$0xff]  }
 0xaab   : > { %5339 = vmatpush1.bf16.msra.mxu1 %v8646_v23  ;;  %v8707_v23 = vld [vmem:[%s11431_s19 + $0x340] ss:$8 sps:$4 sm:$0xff]  }
 0xaac   : > { %5340 = vmatprep.subr.bf16.mxu1 %v8651_v24  ;;  %v8712_v24 = vld [vmem:[%s11431_s19 + $0x334] ss:$8 sps:$4 sm:$0xff]  }
 0xaaf   : > { %5341 = vmatpush1.bf16.msra.mxu1 %v8649_v26  ;;  %v8710_v26 = vld [vmem:[%s11431_s19 + $0x330] ss:$8 sps:$4 sm:$0xff]  }
 0xab0   : > { %5342 = vmatprep.subr.bf16.mxu1 %v8654_v27  ;;  %v8715_v27 = vld [vmem:[%s11431_s19 + $0x324] ss:$8 sps:$4 sm:$0xff]  }
 0xab3   : > { %5343 = vmatpush1.bf16.msra.mxu1 %v8652_v28  ;;  %v8713_v28 = vld [vmem:[%s11431_s19 + $0x320] ss:$8 sps:$4 sm:$0xff]  }
 0xab4   : > { %5348 = vmatprep.subr.bf16.mxu1 %v8657_v29  ;;  %v8718_v29 = vld [vmem:[%s11533_s1 + $0xa8] sm:$0xff]  }
 0xab7   : > { %5349 = vmatpush2.bf16.msra.mxu1 %v8655_v30  ;;  %v8720_v30 = vld [vmem:[%s11533_s1 + $0xa0] sm:$0xff]  }
 0xab8   : > { %5350 = vmatprep.subr.bf16.mxu1 %v8660_v31  ;;  %v8722_v31 = vld [vmem:[%s11533_s1 + $0x98] sm:$0xff]  }
 0xabb   : > { %5351 = vmatpush2.bf16.msra.mxu1 %v8658_v32  ;;  %v8726_v32 = vld [vmem:[%s11533_s1 + $0x88] sm:$0xff]  }
 0xabc   : > { %5352 = vmatprep.subr.bf16.mxu1 %v8663_v33  ;;  %v8728_v33 = vld [vmem:[%s11533_s1 + $0x80] sm:$0xff]  }
 0xabf   : > { %5353 = vmatpush2.bf16.msra.mxu1 %v8661_v34  ;;  %v8730_v34 = vld [vmem:[%s11533_s1 + $0x78] sm:$0xff]  }
 0xac0   : > { %5354 = vmatprep.subr.bf16.mxu1 %v8666_v36  ;;  %v8732_v36 = vld [vmem:[%s11533_s1 + $0x70] sm:$0xff]  }
 0xac3   : > { %5355 = vmatpush2.bf16.msra.mxu1 %v8664_v37  ;;  %v8734_v37 = vld [vmem:[%s11533_s1 + $0xd8] sm:$0xff]  }
 0xac4   : > { %5356 = vmatprep.subr.bf16.mxu1 %v8669_v39  ;;  %v8736_v39 = vld [vmem:[%s11533_s1 + $0xd0] sm:$0xff]  }
 0xac7   : > { %5357 = vmatpush2.bf16.msra.mxu1 %v8667_v40 }
 0xac8   : > { %5358 = vmatprep.subr.bf16.mxu1 %v8672_v41 }
 0xacb   : > { %5359 = vmatpush2.bf16.msra.mxu1 %v8670_v42 }
 0xace   : > { %5361 = vmatmul.mubr.bf16.vlgmr.msra.gmra.mxu1 %v10802_v54 }
 0xacf   : > { %5696 = vmatprep.mubr.bf16.mxu1 %v9175_v20 }
 0xb56   : > { %v5093_v63 = vpop.f32.mrf.mxu1  ;;  %v5150_v1 = vpop.f32.mrf.mxu0 }
 0xb57   : > { %v10916_v43 = vadd.f32 %v5150_v1, %v5093_v63 }
 0xb58   : > { %v5095_v45 = vpop.f32.mrf.mxu1  ;;  %v5152_v46 = vpop.f32.mrf.mxu0 }
 0xb59   : > { %v10918_v47 = vadd.f32 %v5152_v46, %v5095_v45 }
 0xb5a   : > { %v5097_v48 = vpop.f32.mrf.mxu1  ;;  %v5154_v49 = vpop.f32.mrf.mxu0 }
 0xb5b   : > { %v10920_v50 = vadd.f32 %v5154_v49, %v5097_v48 }
 0xb5c   : > { %v10922_v51 = vpop.f32.mrf.mxu1  ;;  %v5156_v40 = vpop.f32.mrf.mxu0 }
 0xb5d   : > { %v5157_v46 = vadd.f32 %v5156_v40, %v10922_v51  ;;  %v8716_v51 = vld [vmem:[%s11430_s18 + $0x18] sm:$0x7f]  }
 0xb8e   : > { %v5362_v25 = vpop.f32.mrf.mxu1 }
 0xb8f   : > { %v5372_v44 = vpack.c.bf16 %v5362_v25, %v5362_v25 }
 0xb90   : > { %v5364_v55 = vpop.f32.mrf.mxu1 }
 0xb91   : > { %v5373_v57 = vpack.c.bf16 %v5364_v55, %v5364_v55  ;;  %v5383_v59 = vand.u32 %v5372_v44, %v10813_v61 }
 0xb92   : > { %v5366_v60 = vpop.f32.mrf.mxu1 }
 0xb93   : > { %v5386_v35 = vand.u32 %v5373_v57, %v10813_v61 }
 0xb94   : > { %v5367_v62 = vpop.f32.mrf.mxu1 }
 0xb95   : > { %5402 = vmatprep.subr.bf16.mxu0 %v5386_v35  ;;  %v8723_v62 = vld [vmem:[%s11533_s1 + $0x20] sm:$0xff]  }
 0xb96   : > { %5403 = vmatpush1.bf16.msra.mxu0 %v5383_v59  ;;  %v8721_v59 = vld [vmem:[%s11533_s1 + $0x28] sm:$0xff]  }
 0xb97   : > { %5604 = vmatprep.subr.bf16.mxu0 %v8676_v58 }
 0xb99   : > { %7701 = vmatmul.mubr.msk.bf16.vlgmr.msra.gmra.mxu0 %vm5046_vm12, %v8673_v38  ;;  %v8725_v38 = vld [vmem:[%s11533_s1 + $0x18] sm:$0xff]  }
 0xb9a   : > { %5605 = vmatpush1.bf16.msra.mxu0 %v8674_v53  ;;  %7758 = vmatprep.mubr.msk.bf16.mxu0 %vm1812_vm5, %v10800_v52  ;;  %v8683_v52 = vld [vmem:[%s11431_s19 + $0x2e0] ss:$8 sps:$4 sm:$0xff]   ;;  %v8727_v53 = vld [vmem:[%s11533_s1 + $0x10] sm:$0xff]  }
 0xb9b   : > { %5606 = vmatprep.subr.bf16.mxu0 %v8679_v56  ;;  %v8729_v56 = vld [vmem:[%s11533_s1 + $0x8] sm:$0xff]  }
 0xb9e   : > { %5607 = vmatpush1.bf16.msra.mxu0 %v8677_v3  ;;  %v8731_v3 = vld [vmem:[%s11533_s1] sm:$0xff]  }
 0xb9f   : > { %5608 = vmatprep.subr.bf16.mxu0 %v8682_v5  ;;  %v8733_v5 = vld [vmem:[%s11533_s1 + $0x68] sm:$0xff]  }
 0xba2   : > { %5609 = vmatpush1.bf16.msra.mxu0 %v8680_v7  ;;  %v8735_v7 = vld [vmem:[%s11533_s1 + $0x60] sm:$0xff]  }
 0xba3   : > { %5610 = vmatprep.subr.bf16.mxu0 %v8685_v8  ;;  %v8737_v8 = vld [vmem:[%s11533_s1 + $0x58] sm:$0xff]  }
 0xba6   : > { %5611 = vmatpush1.bf16.msra.mxu0 %v8683_v52  ;;  %v8738_v52 = vld [vmem:[%s11533_s1 + $0xc8] sm:$0xff]  }
 0xba7   : > { %5612 = vmatprep.subr.bf16.mxu0 %v8688_v10  ;;  %v8739_v10 = vld [vmem:[%s11533_s1 + $0x50] sm:$0xff]  }
 0xbaa   : > { %5613 = vmatpush1.bf16.msra.mxu0 %v8686_v11  ;;  %v8740_v11 = vld [vmem:[%s11533_s1 + $0xc0] sm:$0xff]  }
 0xbab   : > { %5614 = vmatprep.subr.bf16.mxu0 %v8691_v12  ;;  %v8741_v12 = vld [vmem:[%s11533_s1 + $0x48] sm:$0xff]  }
 0xbae   : > { %5615 = vmatpush1.bf16.msra.mxu0 %v8689_v13  ;;  %v8742_v13 = vld [vmem:[%s11533_s1 + $0xb8] sm:$0xff]  }
 0xbaf   : > { %5616 = vmatprep.subr.bf16.mxu0 %v8694_v14  ;;  %v8743_v14 = vld [vmem:[%s11533_s1 + $0x40] sm:$0xff]  }
 0xbb2   : > { %5617 = vmatpush1.bf16.msra.mxu0 %v8692_v15  ;;  %v8744_v15 = vld [vmem:[%s11533_s1 + $0xb0] sm:$0xff]  }
 0xbb3   : > { %5618 = vmatprep.subr.bf16.mxu0 %v8697_v16  ;;  %v5711_v16 = vld [vmem:[#allocation17] sm:$0x3] }
 0xbb6   : > { %5619 = vmatpush1.bf16.msra.mxu0 %v8695_v2 }
 0xbb7   : > { %5624 = vmatprep.subr.bf16.mxu0 %v8700_v6 }
 0xbba   : > { %5625 = vmatpush2.bf16.msra.mxu0 %v8698_v0  ;;  %v5716_v0 = vrot.slane %v5711_v16, %v9634_v4 }
 0xbbb   : > { %5626 = vmatprep.subr.bf16.mxu0 %v8703_v17 }
 0xbbe   : > { %5627 = vmatpush2.bf16.msra.mxu0 %v8701_v18 }
 0xbbf   : > { %5628 = vmatprep.subr.bf16.mxu0 %v8706_v19  ;;  %v5720_v19 = vrot.slane %v5711_v16, %v9637_v9  ;;  %v8745_v9 = vld [vmem:[%s11534_s9 + $0x10] sm:$0xff]  }
 0xbc2   : > { %5629 = vmatpush2.bf16.msra.mxu0 %v8704_v21 }
 0xbc3   : > { %5630 = vmatprep.subr.bf16.mxu0 %v8709_v22 }
 0xbc6   : > { %5631 = vmatpush2.bf16.msra.mxu0 %v8707_v23 }
 0xbc7   : > { %5632 = vmatprep.subr.bf16.mxu0 %v8712_v24 }
 0xbca   : > { %5633 = vmatpush2.bf16.msra.mxu0 %v8710_v26 }
 0xbcb   : > { %5634 = vmatprep.subr.bf16.mxu0 %v8715_v27 }
 0xbce   : > { %5635 = vmatpush2.bf16.msra.mxu0 %v8713_v28 }
 0xbcf   : > { %6007 = vmatprep.subr.bf16.mxu0 %v9175_v20 }
 0xbd1   : > { %5637 = vmatmul.mubr.bf16.vlgmr.msra.gmra.mxu0 %v10802_v54  ;;  %v8724_v54 = vld [vmem:[%s11533_s1 + $0x90] sm:$0xff]  }
 0xbd2   : > { %6008 = vmatpush1.bf16.msra.mxu0 %v8718_v29 }
 0xbd3   : > { %6009 = vmatprep.subr.bf16.mxu0 %v9175_v20 }
 0xbd6   : > { %6010 = vmatpush1.bf16.msra.mxu0 %v8720_v30 }
 0xbd7   : > { %6011 = vmatprep.subr.bf16.mxu0 %v9175_v20 }
 0xbda   : > { %6012 = vmatpush1.bf16.msra.mxu0 %v8722_v31 }
 0xbdb   : > { %6013 = vmatprep.subr.bf16.mxu0 %v9175_v20 }
 0xbde   : > { %6014 = vmatpush1.bf16.msra.mxu0 %v8724_v54 }
 0xbdf   : > { %6015 = vmatprep.subr.bf16.mxu0 %v9175_v20 }
 0xbe2   : > { %6016 = vmatpush1.bf16.msra.mxu0 %v8726_v32 }
 0xbe3   : > { %6017 = vmatprep.subr.bf16.mxu0 %v9175_v20 }
 0xbe6   : > { %6018 = vmatpush1.bf16.msra.mxu0 %v8728_v33 }
 0xbe7   : > { %6019 = vmatprep.subr.bf16.mxu0 %v9175_v20 }
 0xbea   : > { %6020 = vmatpush1.bf16.msra.mxu0 %v8730_v34  ;;  %v8746_v34 = vld [vmem:[%s11534_s9] sm:$0xff]  }
 0xbeb   : > { %6021 = vmatprep.subr.bf16.mxu0 %v9175_v20 }
 0xbee   : > { %6022 = vmatpush1.bf16.msra.mxu0 %v8732_v36 }
 0xbef   : > { %6027 = vmatprep.subr.bf16.mxu0 %v9175_v20 }
 0xbf2   : > { %6028 = vmatpush2.bf16.msra.mxu0 %v8734_v37 }
 0xbf3   : > { %6029 = vmatprep.subr.bf16.mxu0 %v9175_v20 }
 0xbf6   : > { %6030 = vmatpush2.bf16.msra.mxu0 %v8736_v39 }
 0xbf7   : > { %6031 = vmatprep.subr.bf16.mxu0 %v9175_v20 }
 0xbfa   : > { %6032 = vmatpush2.bf16.msra.mxu0 %v8738_v52 }
 0xbfb   : > { %6033 = vmatprep.subr.bf16.mxu0 %v9175_v20 }
 0xbfe   : > { %6034 = vmatpush2.bf16.msra.mxu0 %v8740_v11 }
 0xbff   : > { %6035 = vmatprep.subr.bf16.mxu0 %v9175_v20 }
 0xc02   : > { %6036 = vmatpush2.bf16.msra.mxu0 %v8742_v13 }
 0xc03   : > { %6037 = vmatprep.subr.bf16.mxu0 %v9175_v20 }
 0xc06   : > { %6038 = vmatpush2.bf16.msra.mxu0 %v8744_v15 }
 0xc59   : > { %v5422_v41 = vpop.f32.mrf.mxu0 }
 0xc5a   : > { %v11059_v42 = vadd.f32 %v5422_v41, %v10916_v43 }
 0xc5b   : > { %v5424_v63 = vpop.f32.mrf.mxu0 }
 0xc5c   : > { %v11062_v1 = vadd.f32 %v5424_v63, %v10918_v47 }
 0xc5d   : > { %v5426_v45 = vpop.f32.mrf.mxu0 }
 0xc5e   : > { %v11066_v48 = vadd.f32 %v5426_v45, %v10920_v50  ;;  %v8717_v50 = vld [vmem:[%s11533_s1 + $0x38] sm:$0xff]  }
 0xc5f   : > { %v5428_v49 = vpop.f32.mrf.mxu0 }
 0xc60   : > { %v11068_v25 = vadd.f32 %v5428_v49, %v5157_v46 }
 0xc91   : > { %v5638_v44 = vpop.f32.mrf.mxu0 }
 0xc92   : > { %v5648_v55 = vpack.c.bf16 %v5638_v44, %v5638_v44  ;;  %v8748_v44 = vld [vmem:[%s11534_s9 + $0x8] sm:$0x3f]  }
 0xc93   : > { %v5640_v57 = vpop.f32.mrf.mxu0 }
 0xc94   : > { %v5649_v60 = vpack.c.bf16 %v5640_v57, %v5640_v57  ;;  %v5659_v58 = vand.u32 %v5648_v55, %v10813_v61  ;;  %v8749_v55 = vld [vmem:[%s11533_s1 + $0x118] sm:$0xff]   ;;  %v8750_v57 = vld [vmem:[%s11533_s1 + $0x110] sm:$0xff]  }
 0xc95   : > { %v5642_v35 = vpop.f32.mrf.mxu0 }
 0xc96   : > { %v5662_v43 = vand.u32 %v5649_v60, %v10813_v61  ;;  %v8719_v61 = vld [vmem:[%s11533_s1 + $0x30] sm:$0xff]   ;;  %v8751_v60 = vld [vmem:[%s11533_s1 + $0x108] sm:$0xff]   ;;  %v8752_v35 = vld [vmem:[%s11533_s1 + $0x100] sm:$0xff]  }
 0xc97   : > { %v5643_v47 = vpop.f32.mrf.mxu0 }
 0xc98   : > { %5678 = vmatprep.subr.bf16.mxu1 %v5662_v43  ;;  %v8753_v43 = vld [vmem:[%s11533_s1 + $0xf8] sm:$0xff]   ;;  %v8755_v47 = vld [vmem:[%s11533_s1 + $0xe8] sm:$0xff]  }
 0xc99   : > { %5679 = vmatpush1.bf16.msra.mxu1 %v5659_v58  ;;  %v8754_v58 = vld [vmem:[%s11533_s1 + $0xf0] sm:$0xff]  }
 0xc9a   : > { %5848 = vmatprep.subr.bf16.mxu1 %v9175_v20 }
 0xc9c   : > { %7762 = vmatmul.mubr.msk.bf16.vlgmr.msra.gmra.mxu1 %vm5046_vm12, %v8716_v51  ;;  %v8756_v51 = vld [vmem:[%s11533_s1 + $0xe0] sm:$0xff]  }
 0xc9d   : > { %5849 = vmatpush1.bf16.msra.mxu1 %v8717_v50  ;;  %v8757_v50 = vld [vmem:[%s11533_s1 + $0x148] sm:$0xff]  }
 0xc9e   : > { %5850 = vmatprep.subr.bf16.mxu1 %v9175_v20 }
 0xca1   : > { %5851 = vmatpush1.bf16.msra.mxu1 %v8719_v61  ;;  %v8758_v61 = vld [vmem:[%s11533_s1 + $0x140] sm:$0xff]  }
 0xca2   : > { %5852 = vmatprep.subr.bf16.mxu1 %v9175_v20 }
 0xca5   : > { %5853 = vmatpush1.bf16.msra.mxu1 %v8721_v59  ;;  %v8759_v59 = vld [vmem:[%s11533_s1 + $0x138] sm:$0xff]  }
 0xca6   : > { %5854 = vmatprep.subr.bf16.mxu1 %v9175_v20 }
 0xca9   : > { %5855 = vmatpush1.bf16.msra.mxu1 %v8723_v62  ;;  %v8760_v62 = vld [vmem:[%s11533_s1 + $0x130] sm:$0xff]  }
 0xcaa   : > { %5856 = vmatprep.subr.bf16.mxu1 %v9175_v20 }
 0xcad   : > { %5857 = vmatpush1.bf16.msra.mxu1 %v8725_v38  ;;  %v8761_v38 = vld [vmem:[%s11533_s1 + $0x128] sm:$0xff]  }
 0xcae   : > { %5858 = vmatprep.subr.bf16.mxu1 %v9175_v20 }
 0xcb1   : > { %5859 = vmatpush1.bf16.msra.mxu1 %v8727_v53  ;;  %v8762_v53 = vld [vmem:[%s11533_s1 + $0x120] sm:$0xff]  }
 0xcb2   : > { %5860 = vmatprep.subr.bf16.mxu1 %v9175_v20 }
 0xcb5   : > { %5861 = vmatpush1.bf16.msra.mxu1 %v8729_v56  ;;  %v8763_v56 = vld [vmem:[%s11534_s9 + $0x20] sm:$0xff]  }
 0xcb6   : > { %5862 = vmatprep.subr.bf16.mxu1 %v9175_v20 }
 0xcb9   : > { %5863 = vmatpush1.bf16.msra.mxu1 %v8731_v3 }
 0xcba   : > { %5868 = vmatprep.subr.bf16.mxu1 %v9175_v20 }
 0xcbd   : > { %5869 = vmatpush2.bf16.msra.mxu1 %v8733_v5 }
 0xcbe   : > { %5870 = vmatprep.subr.bf16.mxu1 %v9175_v20 }
 0xcc1   : > { %5871 = vmatpush2.bf16.msra.mxu1 %v8735_v7 }
 0xcc2   : > { %5872 = vmatprep.subr.bf16.mxu1 %v9175_v20 }
 0xcc5   : > { %5873 = vmatpush2.bf16.msra.mxu1 %v8737_v8 }
 0xcc6   : > { %5874 = vmatprep.subr.bf16.mxu1 %v9175_v20 }
 0xcc9   : > { %5875 = vmatpush2.bf16.msra.mxu1 %v8739_v10 }
 0xcca   : > { %5876 = vmatprep.subr.bf16.mxu1 %v9175_v20 }
 0xccd   : > { %5877 = vmatpush2.bf16.msra.mxu1 %v8741_v12 }
 0xcce   : > { %5878 = vmatprep.subr.bf16.mxu1 %v9175_v20 }
 0xcd1   : > { %5879 = vmatpush2.bf16.msra.mxu1 %v8743_v14 }
 0xd5c   : > { %v5698_v2 = vpop.f32.mrf.mxu1 }
 0xd5d   : > { %v5707_v6 = vadd.f32 %v5698_v2, %v11059_v42 }
 0xd5e   : > { %v5700_v17 = vpop.f32.mrf.mxu1 }
 0xd5f   : > { %v5708_v18 = vadd.f32 %v5700_v17, %v11062_v1  ;;  %v5723_v22 = vadd.f32 %v5716_v0, %v5707_v6 }
 0xd60   : > { %v5702_v21 = vpop.f32.mrf.mxu1 }
 0xd61   : > { %v5709_v23 = vadd.f32 %v5702_v21, %v11066_v48  ;;  %v5724_v26 = vadd.f32 %v5720_v19, %v5708_v18  ;;  %v5727_v29 = vmax.f32 %v5723_v22, 0.0  ;;  %v8764_v18 = vld [vmem:[%s11534_s9 + $0x28] sm:$0x3f]   ;;  %v8766_v21 = vld [vmem:[%s11533_s1 + $0x180] sm:$0xff]   ;;  %v8767_v22 = vld [vmem:[%s11533_s1 + $0x178] sm:$0xff]  }
 0xd62   : > { %v5704_v24 = vpop.f32.mrf.mxu1 }
 0xd63   : > { %v5725_v27 = vadd.f32 %v5716_v0, %v5709_v23  ;;  %v5710_v28 = vadd.f32 %v5704_v24, %v11068_v25  ;;  %v5728_v54 = vmax.f32 %v5724_v26, 0.0  ;;  %v8747_v25 = vld [vmem:[%s11534_s9 + $0x18] sm:$0x3f]   ;;  %v8768_v23 = vld [vmem:[%s11533_s1 + $0x170] sm:$0xff]   ;;  %v8769_v24 = vld [vmem:[%s11533_s1 + $0x168] sm:$0xff]  }
 0xd64   : > { %v8770_v26 = vld [vmem:[%s11533_s1 + $0x160] sm:$0xff]  }
 0xd65   : > { %v5729_v30 = vmax.f32 %v5725_v27, 0.0  ;;  %v5726_v31 = vadd.f32 %v5720_v19, %v5710_v28  ;;  %v8765_v19 = vld [vmem:[%s11533_s1 + $0x188] sm:$0xff]   ;;  %v8771_v27 = vld [vmem:[%s11533_s1 + $0x158] sm:$0xff]   ;;  %v8772_v28 = vld [vmem:[%s11533_s1 + $0x150] sm:$0xff]  }
 0xd67   : > { %v11153_v32 = vpack.c.bf16 %v5729_v30, %v5727_v29  ;;  %v5730_v4 = vmax.f32 %v5726_v31, 0.0  ;;  %v8773_v29 = vld [vmem:[%s11533_s1 + $0x1b8] sm:$0xff]   ;;  %v8774_v30 = vld [vmem:[%s11533_s1 + $0x1b0] sm:$0xff]   ;;  %v8775_v31 = vld [vmem:[%s11533_s1 + $0x1a8] sm:$0xff]  }
 0xd69   : > { %v11155_v33 = vpack.c.bf16 %v5730_v4, %v5728_v54  ;;  %v8776_v54 = vld [vmem:[%s11533_s1 + $0x1a0] sm:$0xff]   ;;  %v8777_v4 = vld [vmem:[%s11533_s1 + $0x198] sm:$0xff]  }
 0xd6b   : > { %7777 = vmatprep.mubr.msk.bf16.mxu1 %vm1812_vm5, %v11155_v33  ;;  %7820 = vmatprep.mubr.msk.bf16.mxu0 %vm1812_vm5, %v11155_v33 }
 0xd6c   : > { %5881 = vmatmul.mubr.bf16.vlgmr.msra.gmra.mxu1 %v11153_v32  ;;  %6040 = vmatmul.mubr.bf16.vlgmr.msra.gmra.mxu0 %v11153_v32 }
 0xd6d   : > { %8030 = vmatprep.mubr.msk.bf16.mxu1 %vm1513_vm4, %v8745_v9  ;;  %8036 = vmatprep.mubr.msk.bf16.mxu0 %vm1513_vm4, %v8746_v34  ;;  %v8779_v9 = vld [vmem:[%s11534_s9 + $0x30] sm:$0xff]  }
 0xe2c   : > { %v5882_v36 = vpop.f32.mrf.mxu1  ;;  %v6041_v37 = vpop.f32.mrf.mxu0 }
 0xe2e   : > { %v5884_v39 = vpop.f32.mrf.mxu1  ;;  %v6043_v40 = vpop.f32.mrf.mxu0 }
 0xe30   : > { %v5885_v41 = vpop.f32.mrf.mxu1  ;;  %v6044_v42 = vpop.f32.mrf.mxu0 }
 0xe31   : > { %v5893_v63 = vpack.c.bf16 %v5885_v41, %v5882_v36  ;;  %v6053_v1 = vpack.c.bf16 %v6044_v42, %v6041_v37 }
 0xe32   : > { %v5887_v45 = vpop.f32.mrf.mxu1  ;;  %v6046_v46 = vpop.f32.mrf.mxu0 }
 0xe33   : > { %v6139_v48 = vsel %vm1517_vm3, %v5893_v63, 0  ;;  %v6071_v49 = vsel %vm1517_vm3, %v6053_v1, 0  ;;  %8052 = vmatprep.subr.msk.bf16.mxu1 %vm1517_vm3, %v6053_v1  ;;  %8053 = vmatprep.subr.msk.bf16.mxu0 %vm1517_vm3, %v5893_v63 }
 0xe34   : > { %8029 = vmatpush3.bf16.msra.mxu1 %v6071_v49  ;;  %8035 = vmatpush3.bf16.msra.mxu0 %v6139_v48 }
 0xe35   : > { %6303 = vmatprep.subr.bf16.mxu1 %v9175_v20 }
 0xe37   : > { %8031 = vmatmul.mubr.msk.bf16.vlgmr.msra.gmra.mxu1 %vm1513_vm4, %v8747_v25  ;;  %8037 = vmatmul.mubr.msk.bf16.vlgmr.msra.gmra.mxu0 %vm1513_vm4, %v8748_v44  ;;  %v8780_v44 = vld [vmem:[%s11534_s9 + $0x38] sm:$0x3f]   ;;  %s9051_s9 = scalar_lea.vmem %s9050_s0, 32 }
 0xe38   : > { %6304 = vmatpush1.bf16.msra.mxu1 %v8749_v55  ;;  %7875 = vmatprep.mubr.msk.bf16.mxu1 %vm1812_vm5, %v11155_v33  ;;  %p9053_p8 = scmp.lt.s32.totalorder %s9051_s9, %s9045_s12 }
 0xe39   : > { %6305 = vmatprep.subr.bf16.mxu1 %v9175_v20  ;;  %8042 = vmatprep.mubr.msk.bf16.mxu0 %vm1513_vm4, %v8763_v56 }
 0xe3a   : > { %p9054_p9 = por %p9053_p8, %p9052_p6 }
 0xe3c   : > { %6306 = vmatpush1.bf16.msra.mxu1 %v8750_v57  ;;  %p9055_p1 = pnand %p9054_p9, %p9048_p0 }
 0xe3d   : > { %6307 = vmatprep.subr.bf16.mxu1 %v9175_v20 }
 0xe40   : > { %6308 = vmatpush1.bf16.msra.mxu1 %v8751_v60 }
 0xe41   : > { %6309 = vmatprep.subr.bf16.mxu1 %v9175_v20 }
 0xe44   : > { %6310 = vmatpush1.bf16.msra.mxu1 %v8752_v35 }
 0xe45   : > { %6311 = vmatprep.subr.bf16.mxu1 %v9175_v20 }
 0xe48   : > { %6312 = vmatpush1.bf16.msra.mxu1 %v8753_v43 }
 0xe49   : > { %6313 = vmatprep.subr.bf16.mxu1 %v9175_v20 }
 0xe4c   : > { %6314 = vmatpush1.bf16.msra.mxu1 %v8754_v58 }
 0xe4d   : > { %6315 = vmatprep.subr.bf16.mxu1 %v9175_v20 }
 0xe50   : > { %6316 = vmatpush1.bf16.msra.mxu1 %v8755_v47 }
 0xe51   : > { %6317 = vmatprep.subr.bf16.mxu1 %v9175_v20 }
 0xe54   : > { %6318 = vmatpush1.bf16.msra.mxu1 %v8756_v51 }
 0xe55   : > { %6323 = vmatprep.subr.bf16.mxu1 %v9175_v20 }
 0xe58   : > { %6324 = vmatpush2.bf16.msra.mxu1 %v8757_v50 }
 0xe59   : > { %6325 = vmatprep.subr.bf16.mxu1 %v9175_v20 }
 0xe5c   : > { %6326 = vmatpush2.bf16.msra.mxu1 %v8758_v61 }
 0xe5d   : > { %6327 = vmatprep.subr.bf16.mxu1 %v9175_v20 }
 0xe60   : > { %6328 = vmatpush2.bf16.msra.mxu1 %v8759_v59 }
 0xe61   : > { %6329 = vmatprep.subr.bf16.mxu1 %v9175_v20 }
 0xe64   : > { %6330 = vmatpush2.bf16.msra.mxu1 %v8760_v62 }
 0xe65   : > { %6331 = vmatprep.subr.bf16.mxu1 %v9175_v20 }
 0xe68   : > { %6332 = vmatpush2.bf16.msra.mxu1 %v8761_v38 }
 0xe69   : > { %6333 = vmatprep.subr.bf16.mxu1 %v9175_v20 }
 0xe6c   : > { %6334 = vmatpush2.bf16.msra.mxu1 %v8762_v53 }
 0xe6f   : > { %6336 = vmatmul.mubr.bf16.vlgmr.msra.gmra.mxu1 %v11153_v32 }
 0xe70   : > { %8048 = vmatprep.mubr.msk.bf16.mxu1 %vm1513_vm4, %v8779_v9 }
 0xef7   : > { %v8032_v3 = vpop.f32.mrf.mxu1  ;;  %v8038_v5 = vpop.f32.mrf.mxu0 }
 0xef8   : > { %v11246_v7 = vadd.f32 %v8038_v5, %v8032_v3 }
 0xef9   : > { %v6107_v8 = vpop.f32.mrf.mxu1  ;;  %v6175_v52 = vpop.f32.mrf.mxu0 }
 0xefa   : > { %v11248_v10 = vadd.f32 %v6175_v52, %v6107_v8 }
 0xefb   : > { %v8033_v11 = vpop.f32.mrf.mxu1  ;;  %v8039_v12 = vpop.f32.mrf.mxu0 }
 0xefc   : > { %v11250_v13 = vadd.f32 %v8039_v12, %v8033_v11 }
 0xefd   : > { %v11252_v14 = vpop.f32.mrf.mxu1  ;;  %v6178_v34 = vpop.f32.mrf.mxu0 }
 0xf2f   : > { %v6337_v15 = vpop.f32.mrf.mxu1 }
 0xf31   : > { %v6339_v16 = vpop.f32.mrf.mxu1 }
 0xf33   : > { %v6340_v2 = vpop.f32.mrf.mxu1 }
 0xf34   : > { %v6349_v6 = vpack.c.bf16 %v6340_v2, %v6337_v15 }
 0xf35   : > { %v6342_v0 = vpop.f32.mrf.mxu1 }
 0xf36   : > { %v6367_v17 = vsel %vm1517_vm3, %v6349_v6, 0  ;;  %8054 = vmatprep.subr.msk.bf16.mxu0 %vm1517_vm3, %v6349_v6 }
 0xf37   : > { %8041 = vmatpush3.bf16.msra.mxu0 %v6367_v17 }
 0xf38   : > { %6535 = vmatprep.subr.bf16.mxu0 %v9175_v20 }
 0xf3a   : > { %8043 = vmatmul.mubr.msk.bf16.vlgmr.msra.gmra.mxu0 %vm1513_vm4, %v8764_v18 }
 0xf3b   : > { %6536 = vmatpush1.bf16.msra.mxu0 %v8765_v19  ;;  %7926 = vmatprep.mubr.msk.bf16.mxu0 %vm1812_vm5, %v11155_v33  ;;  %v8778_v33 = vld [vmem:[%s11533_s1 + $0x190] sm:$0xff]   ;;  %s6693_s1 = scalar_lea.hbm %s11536_s22, %s11462_s26 }
 0xf3c   : > { %6537 = vmatprep.subr.bf16.mxu0 %v9175_v20 }
 0xf3f   : > { %6538 = vmatpush1.bf16.msra.mxu0 %v8766_v21 }
 0xf40   : > { %6539 = vmatprep.subr.bf16.mxu0 %v9175_v20 }
 0xf43   : > { %6540 = vmatpush1.bf16.msra.mxu0 %v8767_v22 }
 0xf44   : > { %6541 = vmatprep.subr.bf16.mxu0 %v9175_v20 }
 0xf47   : > { %6542 = vmatpush1.bf16.msra.mxu0 %v8768_v23 }
 0xf48   : > { %6543 = vmatprep.subr.bf16.mxu0 %v9175_v20 }
 0xf4b   : > { %6544 = vmatpush1.bf16.msra.mxu0 %v8769_v24 }
 0xf4c   : > { %6545 = vmatprep.subr.bf16.mxu0 %v9175_v20 }
 0xf4f   : > { %6546 = vmatpush1.bf16.msra.mxu0 %v8770_v26 }
 0xf50   : > { %6547 = vmatprep.subr.bf16.mxu0 %v9175_v20 }
 0xf53   : > { %6548 = vmatpush1.bf16.msra.mxu0 %v8771_v27 }
 0xf54   : > { %6549 = vmatprep.subr.bf16.mxu0 %v9175_v20 }
 0xf57   : > { %6550 = vmatpush1.bf16.msra.mxu0 %v8772_v28 }
 0xf58   : > { %6555 = vmatprep.subr.bf16.mxu0 %v9175_v20 }
 0xf5b   : > { %6556 = vmatpush2.bf16.msra.mxu0 %v8773_v29 }
 0xf5c   : > { %6557 = vmatprep.subr.bf16.mxu0 %v9175_v20 }
 0xf5f   : > { %6558 = vmatpush2.bf16.msra.mxu0 %v8774_v30 }
 0xf60   : > { %6559 = vmatprep.subr.bf16.mxu0 %v9175_v20 }
 0xf63   : > { %6560 = vmatpush2.bf16.msra.mxu0 %v8775_v31 }
 0xf64   : > { %6561 = vmatprep.subr.bf16.mxu0 %v9175_v20 }
 0xf67   : > { %6562 = vmatpush2.bf16.msra.mxu0 %v8776_v54 }
 0xf68   : > { %6563 = vmatprep.subr.bf16.mxu0 %v9175_v20 }
 0xf6b   : > { %6564 = vmatpush2.bf16.msra.mxu0 %v8777_v4 }
 0xf6c   : > { %6565 = vmatprep.subr.bf16.mxu0 %v9175_v20 }
 0xf6f   : > { %6566 = vmatpush2.bf16.msra.mxu0 %v8778_v33 }
 0xf72   : > { %6568 = vmatmul.mubr.bf16.vlgmr.msra.gmra.mxu0 %v11153_v32  ;;  %v6179_v32 = vadd.f32 %v6178_v34, %v11252_v14 }
 0xffa   : > { %v8044_v36 = vpop.f32.mrf.mxu0 }
 0xffb   : > { %v11324_v37 = vadd.f32 %v8044_v36, %v11246_v7 }
 0xffc   : > { %v6403_v39 = vpop.f32.mrf.mxu0 }
 0xffd   : > { %v11327_v40 = vadd.f32 %v6403_v39, %v11248_v10 }
 0xffe   : > { %v8045_v20 = vpop.f32.mrf.mxu0 }
 0xfff   : > { %v11331_v41 = vadd.f32 %v8045_v20, %v11250_v13 }
0x1000   : > { %v6406_v42 = vpop.f32.mrf.mxu0 }
0x1001   : > { %v11333_v63 = vadd.f32 %v6406_v42, %v6179_v32 }
0x1032   : > { %v6569_v1 = vpop.f32.mrf.mxu0 }
0x1034   : > { %v6571_v45 = vpop.f32.mrf.mxu0 }
0x1036   : > { %v6572_v46 = vpop.f32.mrf.mxu0 }
0x1037   : > { %v6581_v48 = vpack.c.bf16 %v6572_v46, %v6569_v1 }
0x1038   : > { %v6574_v49 = vpop.f32.mrf.mxu0 }
0x1039   : > { %v6599_v25 = vsel %vm1517_vm3, %v6581_v48, 0  ;;  %8055 = vmatprep.subr.msk.bf16.mxu1 %vm1517_vm3, %v6581_v48 }
0x103a   : > { %8047 = vmatpush3.bf16.msra.mxu1 %v6599_v25 }
0x103d   : > { %8049 = vmatmul.mubr.msk.bf16.vlgmr.msra.gmra.mxu1 %vm1513_vm4, %v8780_v44 }
0x103e   : > { %9058 = shalt.err (!%p9055_p1)
}
0x103f   : > { %s9059_s5 = scalar_lea.hbm %s6693_s1, 16  ;;  %s9063_s26 = scalar_lea.hbm %s11536_s22, 32 }
0x1040   : > { %p9060_p3 = scmp.ne.s32.totalorder %s6693_s1, %s9059_s5  ;;  %p9064_p2 = scmp.lt.s32.totalorder %s6693_s1, %s11536_s22 }
0x1041   : > { %p9065_p5 = scmp.lt.s32.totalorder %s9063_s26, %s9059_s5 }
0x1042   : > { %p9061_p4 = pnand %p9060_p3, %p11537_p12 }
0x1043   : > { %p9066_p10 = por %p9065_p5, %p9064_p2 }
0x1044   : > { %p9062_p13 = pneg %p9061_p4 }
0x1046   : > { %p9067_p11 = pnand %p9066_p10, %p9062_p13 }
0x1048   : > { %9070 = shalt.err (!%p9067_p11)
}
0x1049   : > { %8094 = dma.vmem_to_hbm [thread:$0]  (%p11537_p12), %s6696_s30, 16, %s6693_s1, %s6676_s6  }
0x104a   : > { %s11538_s12 = sshll.u32 %s9336_s29, 4  ;;  %s11539_s0 = sld [smem:[#allocation55_spill]] }
0x104b   : > { %s11540_s23 = scalar_lea.vmem [#allocation21], %s9493_s13  ;;  %s6680_s15 = scalar_lea.sflag [#allocation22], %s9493_s13 }
0x104c   : > { %s6708_s16 = sshll.u32 %s11540_s23, 4  ;;  %s9179_s26 = smov [#allocation21]   ;;  %s6709_s16 = int_to_ptr.vmem [resolvable:$true] %s6708_s16 }
0x104d   : > { %s9071_s14 = scalar_lea.vmem %s6709_s16, 16  ;;  %s9075_s5 = sshll.u32 %s9179_s26, 4  ;;  %s9076_s5 = int_to_ptr.vmem [resolvable:$false] %s9075_s5 }
0x104e   : > { %p9072_p7 = scmp.ne.s32.totalorder %s6709_s16, %s9071_s14  ;;  %s9077_s17 = scalar_lea.vmem %s9076_s5, 32 }
0x104f   : > { %p9078_p8 = scmp.lt.s32.totalorder %s6709_s16, %s9076_s5  ;;  %p9079_p9 = scmp.lt.s32.totalorder %s9077_s17, %s9071_s14 }
0x1050   : > { %s6706_s20 = scalar_lea.hbm %s11539_s0, %s11538_s12  ;;  %p9073_p0 = pnand %p9072_p7, %p11537_p12 }
0x1051   : > { %p9080_p1 = por %p9079_p9, %p9078_p8 }
0x1052   : > { %p9074_p6 = pneg %p9073_p0 }
0x1054   : > { %p9081_p3 = pnand %p9080_p1, %p9074_p6 }
0x1056   : > { %9084 = shalt.err (!%p9081_p3)
}
0x1057   : > { %s9085_s29 = scalar_lea.hbm %s6706_s20, 16  ;;  %s9089_s1 = scalar_lea.hbm %s11539_s0, 32 }
0x1058   : > { %p9086_p4 = scmp.ne.s32.totalorder %s6706_s20, %s9085_s29  ;;  %p9090_p5 = scmp.lt.s32.totalorder %s6706_s20, %s11539_s0 }
0x1059   : > { %p9091_p10 = scmp.lt.s32.totalorder %s9089_s1, %s9085_s29 }
0x105a   : > { %p9087_p13 = pnand %p9086_p4, %p11537_p12 }
0x105b   : > { %p9092_p11 = por %p9091_p10, %p9090_p5 }
0x105c   : > { %p9088_p2 = pneg %p9087_p13 }
0x105e   : > { %p9093_p7 = pnand %p9092_p11, %p9088_p2 }
0x1060   : > { %9096 = shalt.err (!%p9093_p7)
}
0x1061   : > { %8095 = dma.vmem_to_hbm [thread:$0]  (%p11537_p12), %s6709_s16, 16, %s6706_s20, %s6680_s15   ;;  %v7935_v57 = vld [vmem:[#allocation18] ss:$0 sm:$0xff]  ;;  %vm6668_vm13 = vcmask 224256  }
0x1062   : > { %s11541_s17 = sshll.u32 %s9525_s11, 5  ;;  %s11542_s23 = sld [smem:[#allocation53_spill]] }
0x1068   : > { %s959_s14 = scalar_lea.vmem %s11542_s23, %s11541_s17 }
0x10fd   : > { %v8050_v55 = vpop.f32.mrf.mxu1 }
0x10fe   : > { %v6652_v60 = vadd.f32 %v8050_v55, %v11324_v37 }
0x10ff   : > { %v6635_v35 = vpop.f32.mrf.mxu1 }
0x1100   : > { %v6663_v43 = vadd.f32 %v7935_v57, %v6652_v60  ;;  %v6650_v58 = vadd.f32 %v6635_v35, %v11327_v40 }
0x1101   : > { %v8051_v47 = vpop.f32.mrf.mxu1 }
0x1102   : > { %6667 = vst.msk [vmem:[%s959_s14 + $0x10] sm:$0xff] %vm974_vm2, %v6663_v43  ;;  %v6661_v51 = vadd.f32 %v7935_v57, %v6650_v58  ;;  %v6653_v50 = vadd.f32 %v8051_v47, %v11331_v41 }
0x1103   : > { %v6638_v61 = vpop.f32.mrf.mxu1 }
0x1104   : > { %6665 = vst.msk [vmem:[%s959_s14] sm:$0xff] %vm974_vm2, %v6661_v51  ;;  %v6664_v59 = vadd.f32 %v7935_v57, %v6653_v50  ;;  %v6651_v62 = vadd.f32 %v6638_v61, %v11333_v63 }
0x1106   : > { %6669 = vst.msk [vmem:[%s959_s14 + $0x18] sm:$0xf] %vm6668_vm13, %v6664_v59  ;;  %v6662_v38 = vadd.f32 %v7935_v57, %v6651_v62 }
0x1108   : > { %6666 = vst.msk [vmem:[%s959_s14 + $0x8] sm:$0xff] %vm974_vm2, %v6662_v38 }
0x1109 PF: > { %s6728_s16 = sand.u32 1, %s9147_s27   ;;  %p11543_p12 = scmp.ne.s32.totalorder %s11505_s2, 0 }
0x110a   : > { %p11544_p0 = scmp.ge.s32.totalorder %s9159_s28, 2  ;;  %s6729_s4 = scalar_lea.sflag [#allocation5], %s6728_s16 }
0x110c   : > { %p8131_p6 = pnand %p11544_p0, %p11543_p12 }
0x110e   : > { %p8132_p8 = pneg %p8131_p6 }
0x1110   : > { %9138 = dma.done.wait (%p8132_p8), %s6729_s4, 16  }
0x1111   : > { %9140 = vsyncadd (%p8132_p8), %s6729_s4, 4294967280  ;;  %s6737_s11 = scalar_lea.sflag [#allocation22], %s6728_s16 }
0x1112   : > { %9142 = dma.done.wait (%p8132_p8), %s6737_s11, 16  }
0x1113   : > { %9144 = vsyncadd (%p8132_p8), %s6737_s11, 4294967280  ;;  %p48_p9 = scmp.ge.s32.totalorder %s9436_s10, 4   ;;  %s11545_s27 = smov %s9151_s3 }
0x1114   : > { %s11546_s3 = smov %s9155_s7  ;;  %s11547_s7 = smov %s9448_s25 }
0x1115   : > { %s11548_s28 = smov %s9436_s10  ;;  %50 = sbr.rel (!%p48_p9) target bundleno = 38 (0x26), region = 277 }
0x111a   :  { %6741 = vsyncpa [#allocation4], 1 }
0x111b   :  { %6743 = vsyncpa [#allocation4 + $0x1], 1 }
0x111c   :  { %6744 = vsyncpa [#allocation7], 1 }
0x111d   :  { %6745 = vsyncpa [#allocation10], 1 }
0x111e   :  { %6746 = vsyncpa [#allocation13], 1 }
0x111f   :  { %6747 = vsyncpa [#allocation16], 1 }
0x1120   :  { %6748 = vsyncpa [#allocation19], 1 }
0x1121   :  { %6749 = vsyncpa [#allocation5], 1 }
0x1122   :  { %6751 = vsyncpa [#allocation5 + $0x1], 1 }
0x1123   :  { %6752 = vsyncpa [#allocation22], 1 }
0x1124   :  { %6754 = vsyncpa [#allocation22 + $0x1], 1 }

</bundles_post_ra>
